<compile_context>
chip_gen: v5e
topology: v5e:2x2
jax: 0.10.0
libtpu: 0.0.40
codegen_flags: <defaults>
</compile_context>

<pallas_src>
import functools

import jax
import jax.numpy as jnp
from jax import lax
from jax.experimental import pallas as pl
from jax.experimental.pallas import tpu as pltpu


def _round_up(x, m):
    return ((x + m - 1) // m) * m


# ----------------------------------------------------------------------------
# Gapped flat-plane layout helpers
# ----------------------------------------------------------------------------
class PlaneGeom:
    """Flat plane layout: (H, W) -> lane axis of length L.

    Row r occupies lanes [P0 + r*Ws, P0 + r*Ws + W), Ws = W + 1 (one zero gap
    lane per row).  P0 >= Ws + 1 and is a multiple of 128 so chunk stores are
    lane-aligned; the tail keeps >= Ws + 1 zero lanes for the bottom-row taps.
    """

    def __init__(self, H, W, nci_max=512):
        self.H, self.W = int(H), int(W)
        self.Ws = self.W + 1
        self.Hp = self.H * self.Ws
        self.P0 = max(128, _round_up(self.Ws + 1, 128))
        self.Nci = min(_round_up(max(nci_max, 128), 128), _round_up(self.Hp, 128))
        self.n_inner = -(-self.Hp // self.Nci)
        self.L = _round_up(self.P0 + self.n_inner * self.Nci + self.Ws + 1, 128)

    def pack(self, x):
        """(B, T, C, H, W) -> (B, T, C, L) float32, zeros in all pad/gap lanes."""
        B, T, C, H, W = x.shape
        assert H == self.H and W == self.W
        xp = jnp.pad(x.astype(jnp.float32),
                     ((0, 0), (0, 0), (0, 0), (0, 0), (0, 1)))      # W -> Ws
        xp = xp.reshape(B, T, C, self.Hp)
        return jnp.pad(xp, ((0, 0), (0, 0), (0, 0),
                            (self.P0, self.L - self.P0 - self.Hp)))

    def unpack(self, y):
        """(B, T, C, L) -> (B, T, C, H, W)."""
        B, T, C, _ = y.shape
        yp = y[..., self.P0:self.P0 + self.Hp].reshape(B, T, C, self.H, self.Ws)
        return yp[..., :self.W]

    def lane_mask(self):
        """(1, L) float32: 1.0 on data lanes, 0.0 on pad/gap lanes."""
        lane = jnp.arange(self.L, dtype=jnp.int32)
        q = lane - self.P0
        valid = (q >= 0) & (q < self.Hp) & ((q % self.Ws) < self.W)
        return valid.astype(jnp.float32).reshape(1, self.L)


# ----------------------------------------------------------------------------
# Pallas kernel: multi-branch 3x3x3 conv on the gapped flat-plane layout
# ----------------------------------------------------------------------------
def _conv_kernel(*refs, cins, cout, cout_out, Ws, P0, Nci, n_inner, L,
                 relu, has_head, n_t):
    o_ref = refs[-1]
    ins = refs[:-1]
    nbr = len(cins)

    pos = 0
    w_refs = ins[pos:pos + nbr]
    pos += nbr
    b_ref = ins[pos]
    pos += 1
    if has_head:
        wh_ref = ins[pos]
        bh_ref = ins[pos + 1]
        pos += 2
    m_ref = ins[pos]
    pos += 1
    slab_refs = ins[pos:]                       # nbr * 3, (1,1,Cin,L)

    t = pl.program_id(1)
    # gate the (tiny) per-dt stacked weight block once for clipped T taps
    g_prev = jnp.where(t > 0, 1.0, 0.0).astype(jnp.bfloat16)
    g_next = jnp.where(t < n_t - 1, 1.0, 0.0).astype(jnp.bfloat16)

    halo = Ws + 1
    Wwin = Nci + 2 * halo

    # hoist slab loads / bf16 casts and gated weights out of the chunk loop
    ws, xs = [], []
    for br in range(nbr):
        for dt in range(3):
            w = w_refs[br][dt]                  # (9*cout, cin) bf16
            if dt == 0:
                w = w * g_prev
            elif dt == 2:
                w = w * g_next
            ws.append(w)
            xs.append(slab_refs[br * 3 + dt][0, 0].astype(jnp.bfloat16))

    zdt = o_ref.dtype
    # keep pad lanes zero so the output chains directly into the next conv
    o_ref[0, 0, :, 0:P0] = jnp.zeros((cout_out, P0), zdt)
    tail0 = P0 + n_inner * Nci
    if L - tail0 > 0:
        o_ref[0, 0, :, tail0:L] = jnp.zeros((cout_out, L - tail0), zdt)

    for ci in range(n_inner):
        obase = P0 + ci * Nci                   # 128-aligned -> dense stores
        wstart = obase - halo
        acc = jnp.zeros((cout, Nci), jnp.float32)
        for br in range(nbr):
            for dt in range(3):
                idx = br * 3 + dt
                win = xs[idx][:, wstart:wstart + Wwin]          # (cin, Wwin)
                res = jnp.dot(ws[idx], win,
                              preferred_element_type=jnp.float32)  # (9*cout, Wwin)
                for k in range(9):
                    dh, dw = divmod(k, 3)
                    rel = dh * Ws + dw
                    acc = acc + res[k * cout:(k + 1) * cout, rel:rel + Nci]
        acc = acc + b_ref[...]
        if relu:
            acc = jnp.maximum(acc, 0.0)
        if has_head:        # fused 1x1x1 conv epilogue
            acc = jnp.dot(wh_ref[...], acc.astype(jnp.bfloat16),
                          preferred_element_type=jnp.float32) + bh_ref[...]
        acc = acc * m_ref[:, obase:obase + Nci]   # zero gap / out-of-plane lanes
        o_ref[0, 0, :, obase:obase + Nci] = acc.astype(zdt)


def _slab_imap(dt, n_t):
    if dt == 0:
        return lambda b, t: (b, jnp.maximum(t - 1, 0), 0, 0)
    if dt == 1:
        return lambda b, t: (b, t, 0, 0)
    return lambda b, t: (b, jnp.minimum(t + 1, n_t - 1), 0, 0)


def conv3x3x3_flat(inputs, geom, weights, bias, *, relu, head=None,
                   out_dtype=jnp.float32):
    """'same' 3x3x3 conv over (T, y, x) on gapped flat-plane activations.

    inputs  : list of (B, T, Cin_i, L) float32 arrays in `geom`'s layout
              (branches; replaces a channel concat).
    weights : list of (Cout, Cin_i, 3, 3, 3) float32.
    bias    : (Cout,) float32.
    head    : optional fused 1x1x1 conv (w: (Ch, Cout, 1, 1, 1), b: (Ch,)).
    returns : (B, T, Cout_or_Ch, L) `out_dtype`, pad/gap lanes zeroed.
    """
    B, T, _, L = inputs[0].shape
    assert L == geom.L
    cout = int(weights[0].shape[0])
    cins = tuple(int(x.shape[2]) for x in inputs)

    args, specs = [], []
    # per-branch tap weights stacked on the output dim: (3, 9*Cout, Cin) bf16
    for wgt in weights:
        cin = int(wgt.shape[1])
        wt = jnp.transpose(wgt, (2, 3, 4, 0, 1)).reshape(3, 9 * cout, cin)
        args.append(wt.astype(jnp.bfloat16))
        specs.append(pl.BlockSpec((3, 9 * cout, cin), lambda b, t: (0, 0, 0)))
    args.append(bias.reshape(cout, 1).astype(jnp.float32))
    specs.append(pl.BlockSpec((cout, 1), lambda b, t: (0, 0)))
    if head is not None:
        wh, bh = head
        ch = int(wh.shape[0])
        args.append(wh.reshape(ch, cout).astype(jnp.bfloat16))
        specs.append(pl.BlockSpec((ch, cout), lambda b, t: (0, 0)))
        args.append(bh.reshape(ch, 1).astype(jnp.float32))
        specs.append(pl.BlockSpec((ch, 1), lambda b, t: (0, 0)))
        cout_out = ch
    else:
        cout_out = cout
    # precomputed validity mask (replaces per-step iota/modulo epilogue work)
    args.append(geom.lane_mask())
    specs.append(pl.BlockSpec((1, L), lambda b, t: (0, 0)))
    # activation slabs: 3 boundary-clamped T-shifts per branch, full lane axis
    for x, cin in zip(inputs, cins):
        for dt in range(3):
            args.append(x)
            specs.append(pl.BlockSpec((1, 1, cin, L), _slab_imap(dt, T)))

    # cost / VMEM sizing
    npx = geom.n_inner * geom.Nci
    flops = 2 * 27 * cout * sum(cins) * B * T * npx
    if head is not None:
        flops += 2 * cout_out * cout * B * T * npx
    out_bytes = 2 if out_dtype == jnp.bfloat16 else 4
    bytes_accessed = (3 * sum(cins) * B * T * L * 4
                      + B * T * cout_out * L * out_bytes)

    wwin = geom.Nci + 2 * (geom.Ws + 1)
    slab_blk = 3 * sum(cins) * L * 4
    out_blk = cout_out * L * out_bytes
    scratch = (3 * sum(cins) * L * 2          # bf16 slab copies
               + 2 * 9 * cout * wwin * 4      # stacked dot results
               + 6 * cout * geom.Nci * 4)     # accumulator / epilogue temps
    vmem_need = 2 * (slab_blk + out_blk) + scratch + (2 << 20)
    vmem_limit = int(min(max(vmem_need, 8 << 20), 32 << 20))   # v7x-safe cap

    out = pl.pallas_call(
        functools.partial(_conv_kernel, cins=cins, cout=cout, cout_out=cout_out,
                          Ws=geom.Ws, P0=geom.P0, Nci=geom.Nci,
                          n_inner=geom.n_inner, L=L, relu=relu,
                          has_head=head is not None, n_t=T),
        out_shape=jax.ShapeDtypeStruct((B, T, cout_out, L), out_dtype),
        grid=(B, T),
        in_specs=specs,
        out_specs=pl.BlockSpec((1, 1, cout_out, L), lambda b, t: (b, t, 0, 0)),
        compiler_params=pltpu.CompilerParams(
            dimension_semantics=("parallel", "parallel"),
            vmem_limit_bytes=vmem_limit),
        cost_estimate=pl.CostEstimate(flops=flops, transcendentals=0,
                                      bytes_accessed=bytes_accessed),
    )(*args)
    return out


# ----------------------------------------------------------------------------
# Representative 2D+time UNet (deterministic stand-in for the injected module)
# ----------------------------------------------------------------------------
def init_unet_params(key, c1=8, c2=16):
    ks = jax.random.split(key, 8)
    s = 0.1
    return {
        "w1": s * jax.random.normal(ks[0], (c1, 2, 3, 3, 3), jnp.float32),
        "b1": s * jax.random.normal(ks[1], (c1,), jnp.float32),
        "w2": s * jax.random.normal(ks[2], (c2, c1, 3, 3, 3), jnp.float32),
        "b2": s * jax.random.normal(ks[3], (c2,), jnp.float32),
        "w3": s * jax.random.normal(ks[4], (c1, c1 + c2, 3, 3, 3), jnp.float32),
        "b3": s * jax.random.normal(ks[5], (c1,), jnp.float32),
        "w4": s * jax.random.normal(ks[6], (2, c1, 1, 1, 1), jnp.float32),
        "b4": s * jax.random.normal(ks[7], (2,), jnp.float32),
    }


def img_unet(x, params, nci_max=512):
    """x: (B, T, 2, H, W) float32 -> (B, T, 2, H, W) float32."""
    B, T, C, H, W = x.shape
    c2 = int(params["w2"].shape[0])
    assert H % 2 == 0 and W % 2 == 0, "spatial dims must be even for the pool"
    g_hi = PlaneGeom(H, W, nci_max)
    g_lo = PlaneGeom(H // 2, W // 2, nci_max)

    x_f = g_hi.pack(x)
    e1_f = conv3x3x3_flat([x_f], g_hi, [params["w1"]], params["b1"], relu=True)

    # 2x2 average pool over (y, x) only.
    # TODO(synk): fuse the pool into conv1's epilogue and the nearest upsample
    # into conv3's input taps (needs in-kernel lane compaction/expansion).
    e1 = g_hi.unpack(e1_f)
    p1 = e1.reshape(B, T, -1, H // 2, 2, W // 2, 2).mean(axis=(4, 6))
    p1_f = g_lo.pack(p1)
    e2_f = conv3x3x3_flat([p1_f], g_lo, [params["w2"]], params["b2"], relu=True)

    # nearest-neighbour 2x upsample of e2
    e2 = g_lo.unpack(e2_f)
    u = jnp.repeat(jnp.repeat(e2, 2, axis=3), 2, axis=4)
    u_f = g_hi.pack(u)

    # decoder: channel concat replaced by two weight-split branches; the e1
    # skip is consumed directly in the flat layout (no crop / re-pad) and the
    # 1x1x1 conv4 + bias is fused into the epilogue.
    out_f = conv3x3x3_flat([u_f, e1_f], g_hi,
                           [params["w3"][:, :c2], params["w3"][:, c2:]],
                           params["b3"], relu=True,
                           head=(params["w4"], params["b4"]))
    return g_hi.unpack(out_f)


# ----------------------------------------------------------------------------
# Pure-XLA reference of the same UNet (bf16 conv operands, f32 accumulation)
# ----------------------------------------------------------------------------
def _conv3d_ref(x, w, b):
    xb = x.astype(jnp.bfloat16).astype(jnp.float32)
    wb = w.astype(jnp.bfloat16).astype(jnp.float32)
    xn = jnp.transpose(xb, (0, 2, 1, 3, 4))          # (B, C, T, H, W)
    y = lax.conv_general_dilated(
        xn, wb, window_strides=(1, 1, 1), padding="SAME",
        dimension_numbers=("NCDHW", "OIDHW", "NCDHW"))
    y = y + b.reshape(1, -1, 1, 1, 1)
    return jnp.transpose(y, (0, 2, 1, 3, 4))          # (B, T, C, H, W)


def img_unet_ref(x, params):
    c2 = int(params["w2"].shape[0])
    e1 = jnp.maximum(_conv3d_ref(x, params["w1"], params["b1"]), 0.0)
    B, T, C, H, W = e1.shape
    p1 = e1.reshape(B, T, C, H // 2, 2, W // 2, 2).mean(axis=(4, 6))
    e2 = jnp.maximum(_conv3d_ref(p1, params["w2"], params["b2"]), 0.0)
    u = jnp.repeat(jnp.repeat(e2, 2, axis=3), 2, axis=4)
    cat = jnp.concatenate([u, e1], axis=2)
    d1 = jnp.maximum(_conv3d_ref(cat, params["w3"], params["b3"]), 0.0)
    w4 = params["w4"].reshape(params["w4"].shape[0], -1)
    w4 = w4.astype(jnp.bfloat16).astype(jnp.float32)
    d1b = d1.astype(jnp.bfloat16).astype(jnp.float32)
    out = jnp.einsum("oc,btchw->btohw", w4, d1b)
    return out + params["b4"].reshape(1, 1, -1, 1, 1)


# ----------------------------------------------------------------------------
# ImgUNetWrapper.forward
# ----------------------------------------------------------------------------
def img_unet_wrapper_forward(x, params, mode="xyt", unet_fn=img_unet):
    """x: complex64 (Nb, Nz, Nt, Nu, Nf) -> complex64 same shape."""
    Nb, Nz, Nt, Nu, Nf = x.shape
    xr = jnp.stack([jnp.real(x), jnp.imag(x)], axis=-1)   # (b, z, t, y, x, ch)
    if mode == "xyt":
        # 'b z t y x ch -> (b z) ch t y x'; internal layout (batch, t, ch, y, x)
        xu = jnp.transpose(xr, (0, 1, 2, 5, 3, 4)).reshape(Nb * Nz, Nt, 2, Nu, Nf)
        y = unet_fn(xu.astype(jnp.float32), params)
        yr = y.reshape(Nb, Nz, Nt, 2, Nu, Nf).transpose(0, 1, 2, 4, 5, 3)
    elif mode == "xyz":
        # 'b z t y x ch -> (b t) ch y x z'; internal layout (batch, y, ch, x, z)
        xu = jnp.transpose(xr, (0, 2, 3, 5, 4, 1)).reshape(Nb * Nt, Nu, 2, Nf, Nz)
        y = unet_fn(xu.astype(jnp.float32), params)
        yr = y.reshape(Nb, Nt, Nu, 2, Nf, Nz).transpose(0, 5, 1, 2, 4, 3)
    else:
        raise ValueError(mode)
    return (yr[..., 0] + 1j * yr[..., 1]).astype(jnp.complex64)


# ----------------------------------------------------------------------------
if __name__ == "__main__":
    # small shapes consistent with (Nb, Nz, Nt, Nu, Nf); y/x even for the pool.
    Nb, Nz, Nt, Nu, Nf = 1, 2, 8, 16, 16

    key = jax.random.PRNGKey(0)
    kr, ki, kp = jax.random.split(key, 3)
    x = (jax.random.normal(kr, (Nb, Nz, Nt, Nu, Nf), jnp.float32)
         + 1j * jax.random.normal(ki, (Nb, Nz, Nt, Nu, Nf), jnp.float32)
         ).astype(jnp.complex64)
    params = init_unet_params(kp)

    fwd = jax.jit(functools.partial(img_unet_wrapper_forward, mode="xyt"))
    out = jax.block_until_ready(fwd(x, params))
    assert out.shape == (Nb, Nz, Nt, Nu, Nf) and out.dtype == jnp.complex64

    # numerical check of the Pallas path against a pure-XLA reference
    ref_fwd = jax.jit(functools.partial(img_unet_wrapper_forward, mode="xyt",
                                        unet_fn=img_unet_ref))
    ref = jax.block_until_ready(ref_fwd(x, params))
    err = float(jnp.max(jnp.abs(out - ref)))
    assert err < 1e-2, f"max |pallas - ref| = {err}"

    print("KERNEL_OK")
</pallas_src>

<mosaic_0001>
module attributes {stable_mosaic.version = 11 : i64} {
  func.func @_conv_kernel(%arg0: i32, %arg1: i32, %arg2: memref<3x72x2xbf16, #tpu.memory_space<vmem>>, %arg3: memref<8x1xf32, #tpu.memory_space<vmem>>, %arg4: memref<1x640xf32, #tpu.memory_space<vmem>>, %arg5: memref<1x1x2x640xf32, #tpu.memory_space<vmem>>, %arg6: memref<1x1x2x640xf32, #tpu.memory_space<vmem>>, %arg7: memref<1x1x2x640xf32, #tpu.memory_space<vmem>>, %arg8: memref<1x1x8x640xf32, #tpu.memory_space<vmem>>) attributes {dimension_semantics = [#tpu.dimension_semantics<parallel>, #tpu.dimension_semantics<parallel>], iteration_bounds = array<i64: 2, 8>, scalar_prefetch = 0 : i64, scratch_operands = 0 : i64, tpu.core_type = #tpu.core_type<tc>, window_params = [{pipeline_mode = #tpu.pipeline_mode<synchronous>, transform_indices = @transform_0, window_bounds = array<i64: 3, 72, 2>}, {pipeline_mode = #tpu.pipeline_mode<synchronous>, transform_indices = @transform_1, window_bounds = array<i64: 8, 1>}, {pipeline_mode = #tpu.pipeline_mode<synchronous>, transform_indices = @transform_2, window_bounds = array<i64: 1, 640>}, {transform_indices = @transform_3, window_bounds = array<i64: 1, 1, 2, 640>}, {transform_indices = @transform_4, window_bounds = array<i64: 1, 1, 2, 640>}, {transform_indices = @transform_5, window_bounds = array<i64: 1, 1, 2, 640>}, {transform_indices = @transform_6, window_bounds = array<i64: 1, 1, 8, 640>}]} {
    %c0_i32 = arith.constant 0 : i32
    %0 = arith.cmpi sgt, %arg1, %c0_i32 : i32
    %cst = arith.constant 1.000000e+00 : f32
    %cst_0 = arith.constant 0.000000e+00 : f32
    %1 = arith.select %0, %cst, %cst_0 : f32
    %2 = arith.truncf %1 : f32 to bf16
    %c7_i32 = arith.constant 7 : i32
    %3 = arith.cmpi slt, %arg1, %c7_i32 : i32
    %cst_1 = arith.constant 1.000000e+00 : f32
    %cst_2 = arith.constant 0.000000e+00 : f32
    %4 = arith.select %3, %cst_1, %cst_2 : f32
    %5 = arith.truncf %4 : f32 to bf16
    %c0 = arith.constant 0 : index
    %c0_3 = arith.constant 0 : index
    %c0_4 = arith.constant 0 : index
    %6 = vector.load %arg2[%c0, %c0_3, %c0_4] : memref<3x72x2xbf16, #tpu.memory_space<vmem>>, vector<1x72x2xbf16>
    %7 = vector.shape_cast %6 : vector<1x72x2xbf16> to vector<72x2xbf16>
    %8 = vector.broadcast %2 : bf16 to vector<72x2xbf16>
    %9 = arith.mulf %7, %8 : vector<72x2xbf16>
    %c0_5 = arith.constant 0 : index
    %c0_6 = arith.constant 0 : index
    %c0_7 = arith.constant 0 : index
    %c0_8 = arith.constant 0 : index
    %10 = vector.load %arg5[%c0_5, %c0_6, %c0_7, %c0_8] : memref<1x1x2x640xf32, #tpu.memory_space<vmem>>, vector<1x1x2x640xf32>
    %11 = vector.shape_cast %10 : vector<1x1x2x640xf32> to vector<2x640xf32>
    %12 = arith.truncf %11 : vector<2x640xf32> to vector<2x640xbf16>
    %c1 = arith.constant 1 : index
    %c0_9 = arith.constant 0 : index
    %c0_10 = arith.constant 0 : index
    %13 = vector.load %arg2[%c1, %c0_9, %c0_10] : memref<3x72x2xbf16, #tpu.memory_space<vmem>>, vector<1x72x2xbf16>
    %14 = vector.shape_cast %13 : vector<1x72x2xbf16> to vector<72x2xbf16>
    %c0_11 = arith.constant 0 : index
    %c0_12 = arith.constant 0 : index
    %c0_13 = arith.constant 0 : index
    %c0_14 = arith.constant 0 : index
    %15 = vector.load %arg6[%c0_11, %c0_12, %c0_13, %c0_14] : memref<1x1x2x640xf32, #tpu.memory_space<vmem>>, vector<1x1x2x640xf32>
    %16 = vector.shape_cast %15 : vector<1x1x2x640xf32> to vector<2x640xf32>
    %17 = arith.truncf %16 : vector<2x640xf32> to vector<2x640xbf16>
    %c2 = arith.constant 2 : index
    %c0_15 = arith.constant 0 : index
    %c0_16 = arith.constant 0 : index
    %18 = vector.load %arg2[%c2, %c0_15, %c0_16] : memref<3x72x2xbf16, #tpu.memory_space<vmem>>, vector<1x72x2xbf16>
    %19 = vector.shape_cast %18 : vector<1x72x2xbf16> to vector<72x2xbf16>
    %20 = vector.broadcast %5 : bf16 to vector<72x2xbf16>
    %21 = arith.mulf %19, %20 : vector<72x2xbf16>
    %c0_17 = arith.constant 0 : index
    %c0_18 = arith.constant 0 : index
    %c0_19 = arith.constant 0 : index
    %c0_20 = arith.constant 0 : index
    %22 = vector.load %arg7[%c0_17, %c0_18, %c0_19, %c0_20] : memref<1x1x2x640xf32, #tpu.memory_space<vmem>>, vector<1x1x2x640xf32>
    %23 = vector.shape_cast %22 : vector<1x1x2x640xf32> to vector<2x640xf32>
    %24 = arith.truncf %23 : vector<2x640xf32> to vector<2x640xbf16>
    %cst_21 = arith.constant 0.000000e+00 : f32
    %25 = vector.broadcast %cst_21 : f32 to vector<8x128xf32>
    %c0_22 = arith.constant 0 : index
    %c0_23 = arith.constant 0 : index
    %c0_24 = arith.constant 0 : index
    %c0_25 = arith.constant 0 : index
    %26 = vector.load %arg8[%c0_22, %c0_23, %c0_24, %c0_25] : memref<1x1x8x640xf32, #tpu.memory_space<vmem>>, vector<1x1x8x128xf32>
    %27 = vector.shape_cast %26 : vector<1x1x8x128xf32> to vector<8x128xf32>
    %28 = vector.shape_cast %25 : vector<8x128xf32> to vector<1x1x8x128xf32>
    tpu.vector_store %arg8[%c0_22, %c0_23, %c0_24, %c0_25], %28 {strides = array<i32>} : memref<1x1x8x640xf32, #tpu.memory_space<vmem>>, vector<1x1x8x128xf32>,
    %cst_26 = arith.constant 0.000000e+00 : f32
    %29 = vector.broadcast %cst_26 : f32 to vector<8x128xf32>
    %c0_27 = arith.constant 0 : index
    %c0_28 = arith.constant 0 : index
    %c0_29 = arith.constant 0 : index
    %c512 = arith.constant 512 : index
    %30 = vector.load %arg8[%c0_27, %c0_28, %c0_29, %c512] : memref<1x1x8x640xf32, #tpu.memory_space<vmem>>, vector<1x1x8x128xf32>
    %31 = vector.shape_cast %30 : vector<1x1x8x128xf32> to vector<8x128xf32>
    %32 = vector.shape_cast %29 : vector<8x128xf32> to vector<1x1x8x128xf32>
    tpu.vector_store %arg8[%c0_27, %c0_28, %c0_29, %c512], %32 {strides = array<i32>} : memref<1x1x8x640xf32, #tpu.memory_space<vmem>>, vector<1x1x8x128xf32>,
    %cst_30 = arith.constant 0.000000e+00 : f32
    %33 = vector.broadcast %cst_30 : f32 to vector<8x384xf32>
    %34 = vector.extract_strided_slice %12 {offsets = [0, 110], sizes = [2, 420], strides = [1, 1]} : vector<2x640xbf16> to vector<2x420xbf16>
    %cst_31 = arith.constant dense<0.000000e+00> : vector<72x420xf32>
    %35 = tpu.matmul %9, %34, %cst_31 {dimension_numbers = #tpu.dot_dimension_numbers<[1], [0], [0], [1], [0, 0, 1, 1], [], []>} : vector<72x2xbf16>, vector<2x420xbf16>, vector<72x420xf32> -> vector<72x420xf32>
    %36 = vector.extract_strided_slice %35 {offsets = [0, 0], sizes = [8, 384], strides = [1, 1]} : vector<72x420xf32> to vector<8x384xf32>
    %37 = arith.addf %33, %36 : vector<8x384xf32>
    %38 = vector.extract_strided_slice %35 {offsets = [8, 1], sizes = [8, 384], strides = [1, 1]} : vector<72x420xf32> to vector<8x384xf32>
    %39 = arith.addf %37, %38 : vector<8x384xf32>
    %40 = vector.extract_strided_slice %35 {offsets = [16, 2], sizes = [8, 384], strides = [1, 1]} : vector<72x420xf32> to vector<8x384xf32>
    %41 = arith.addf %39, %40 : vector<8x384xf32>
    %42 = vector.extract_strided_slice %35 {offsets = [24, 17], sizes = [8, 384], strides = [1, 1]} : vector<72x420xf32> to vector<8x384xf32>
    %43 = arith.addf %41, %42 : vector<8x384xf32>
    %44 = vector.extract_strided_slice %35 {offsets = [32, 18], sizes = [8, 384], strides = [1, 1]} : vector<72x420xf32> to vector<8x384xf32>
    %45 = arith.addf %43, %44 : vector<8x384xf32>
    %46 = vector.extract_strided_slice %35 {offsets = [40, 19], sizes = [8, 384], strides = [1, 1]} : vector<72x420xf32> to vector<8x384xf32>
    %47 = arith.addf %45, %46 : vector<8x384xf32>
    %48 = vector.extract_strided_slice %35 {offsets = [48, 34], sizes = [8, 384], strides = [1, 1]} : vector<72x420xf32> to vector<8x384xf32>
    %49 = arith.addf %47, %48 : vector<8x384xf32>
    %50 = vector.extract_strided_slice %35 {offsets = [56, 35], sizes = [8, 384], strides = [1, 1]} : vector<72x420xf32> to vector<8x384xf32>
    %51 = arith.addf %49, %50 : vector<8x384xf32>
    %52 = vector.extract_strided_slice %35 {offsets = [64, 36], sizes = [8, 384], strides = [1, 1]} : vector<72x420xf32> to vector<8x384xf32>
    %53 = arith.addf %51, %52 : vector<8x384xf32>
    %54 = vector.extract_strided_slice %17 {offsets = [0, 110], sizes = [2, 420], strides = [1, 1]} : vector<2x640xbf16> to vector<2x420xbf16>
    %cst_32 = arith.constant dense<0.000000e+00> : vector<72x420xf32>
    %55 = tpu.matmul %14, %54, %cst_32 {dimension_numbers = #tpu.dot_dimension_numbers<[1], [0], [0], [1], [0, 0, 1, 1], [], []>} : vector<72x2xbf16>, vector<2x420xbf16>, vector<72x420xf32> -> vector<72x420xf32>
    %56 = vector.extract_strided_slice %55 {offsets = [0, 0], sizes = [8, 384], strides = [1, 1]} : vector<72x420xf32> to vector<8x384xf32>
    %57 = arith.addf %53, %56 : vector<8x384xf32>
    %58 = vector.extract_strided_slice %55 {offsets = [8, 1], sizes = [8, 384], strides = [1, 1]} : vector<72x420xf32> to vector<8x384xf32>
    %59 = arith.addf %57, %58 : vector<8x384xf32>
    %60 = vector.extract_strided_slice %55 {offsets = [16, 2], sizes = [8, 384], strides = [1, 1]} : vector<72x420xf32> to vector<8x384xf32>
    %61 = arith.addf %59, %60 : vector<8x384xf32>
    %62 = vector.extract_strided_slice %55 {offsets = [24, 17], sizes = [8, 384], strides = [1, 1]} : vector<72x420xf32> to vector<8x384xf32>
    %63 = arith.addf %61, %62 : vector<8x384xf32>
    %64 = vector.extract_strided_slice %55 {offsets = [32, 18], sizes = [8, 384], strides = [1, 1]} : vector<72x420xf32> to vector<8x384xf32>
    %65 = arith.addf %63, %64 : vector<8x384xf32>
    %66 = vector.extract_strided_slice %55 {offsets = [40, 19], sizes = [8, 384], strides = [1, 1]} : vector<72x420xf32> to vector<8x384xf32>
    %67 = arith.addf %65, %66 : vector<8x384xf32>
    %68 = vector.extract_strided_slice %55 {offsets = [48, 34], sizes = [8, 384], strides = [1, 1]} : vector<72x420xf32> to vector<8x384xf32>
    %69 = arith.addf %67, %68 : vector<8x384xf32>
    %70 = vector.extract_strided_slice %55 {offsets = [56, 35], sizes = [8, 384], strides = [1, 1]} : vector<72x420xf32> to vector<8x384xf32>
    %71 = arith.addf %69, %70 : vector<8x384xf32>
    %72 = vector.extract_strided_slice %55 {offsets = [64, 36], sizes = [8, 384], strides = [1, 1]} : vector<72x420xf32> to vector<8x384xf32>
    %73 = arith.addf %71, %72 : vector<8x384xf32>
    %74 = vector.extract_strided_slice %24 {offsets = [0, 110], sizes = [2, 420], strides = [1, 1]} : vector<2x640xbf16> to vector<2x420xbf16>
    %cst_33 = arith.constant dense<0.000000e+00> : vector<72x420xf32>
    %75 = tpu.matmul %21, %74, %cst_33 {dimension_numbers = #tpu.dot_dimension_numbers<[1], [0], [0], [1], [0, 0, 1, 1], [], []>} : vector<72x2xbf16>, vector<2x420xbf16>, vector<72x420xf32> -> vector<72x420xf32>
    %76 = vector.extract_strided_slice %75 {offsets = [0, 0], sizes = [8, 384], strides = [1, 1]} : vector<72x420xf32> to vector<8x384xf32>
    %77 = arith.addf %73, %76 : vector<8x384xf32>
    %78 = vector.extract_strided_slice %75 {offsets = [8, 1], sizes = [8, 384], strides = [1, 1]} : vector<72x420xf32> to vector<8x384xf32>
    %79 = arith.addf %77, %78 : vector<8x384xf32>
    %80 = vector.extract_strided_slice %75 {offsets = [16, 2], sizes = [8, 384], strides = [1, 1]} : vector<72x420xf32> to vector<8x384xf32>
    %81 = arith.addf %79, %80 : vector<8x384xf32>
    %82 = vector.extract_strided_slice %75 {offsets = [24, 17], sizes = [8, 384], strides = [1, 1]} : vector<72x420xf32> to vector<8x384xf32>
    %83 = arith.addf %81, %82 : vector<8x384xf32>
    %84 = vector.extract_strided_slice %75 {offsets = [32, 18], sizes = [8, 384], strides = [1, 1]} : vector<72x420xf32> to vector<8x384xf32>
    %85 = arith.addf %83, %84 : vector<8x384xf32>
    %86 = vector.extract_strided_slice %75 {offsets = [40, 19], sizes = [8, 384], strides = [1, 1]} : vector<72x420xf32> to vector<8x384xf32>
    %87 = arith.addf %85, %86 : vector<8x384xf32>
    %88 = vector.extract_strided_slice %75 {offsets = [48, 34], sizes = [8, 384], strides = [1, 1]} : vector<72x420xf32> to vector<8x384xf32>
    %89 = arith.addf %87, %88 : vector<8x384xf32>
    %90 = vector.extract_strided_slice %75 {offsets = [56, 35], sizes = [8, 384], strides = [1, 1]} : vector<72x420xf32> to vector<8x384xf32>
    %91 = arith.addf %89, %90 : vector<8x384xf32>
    %92 = vector.extract_strided_slice %75 {offsets = [64, 36], sizes = [8, 384], strides = [1, 1]} : vector<72x420xf32> to vector<8x384xf32>
    %93 = arith.addf %91, %92 : vector<8x384xf32>
    %c0_34 = arith.constant 0 : index
    %c0_35 = arith.constant 0 : index
    %94 = vector.load %arg3[%c0_34, %c0_35] : memref<8x1xf32, #tpu.memory_space<vmem>>, vector<8x1xf32>
    %95 = vector.broadcast %94 : vector<8x1xf32> to vector<8x384xf32>
    %96 = arith.addf %93, %95 : vector<8x384xf32>
    %cst_36 = arith.constant 0.000000e+00 : f32
    %97 = vector.broadcast %cst_36 : f32 to vector<8x384xf32>
    %98 = arith.maximumf %96, %97 : vector<8x384xf32>
    %c0_37 = arith.constant 0 : index
    %c128 = arith.constant 128 : index
    %99 = vector.load %arg4[%c0_37, %c128] : memref<1x640xf32, #tpu.memory_space<vmem>>, vector<1x384xf32>
    %100 = vector.broadcast %99 : vector<1x384xf32> to vector<8x384xf32>
    %101 = arith.mulf %98, %100 : vector<8x384xf32>
    %c0_38 = arith.constant 0 : index
    %c0_39 = arith.constant 0 : index
    %c0_40 = arith.constant 0 : index
    %c128_41 = arith.constant 128 : index
    %102 = vector.load %arg8[%c0_38, %c0_39, %c0_40, %c128_41] : memref<1x1x8x640xf32, #tpu.memory_space<vmem>>, vector<1x1x8x384xf32>
    %103 = vector.shape_cast %102 : vector<1x1x8x384xf32> to vector<8x384xf32>
    %104 = vector.shape_cast %101 : vector<8x384xf32> to vector<1x1x8x384xf32>
    tpu.vector_store %arg8[%c0_38, %c0_39, %c0_40, %c128_41], %104 {strides = array<i32>} : memref<1x1x8x640xf32, #tpu.memory_space<vmem>>, vector<1x1x8x384xf32>,
    return
  }
  func.func @transform_0(%arg0: i32, %arg1: i32) -> (i32, i32, i32) {
    %c0_i32 = arith.constant 0 : i32
    %c0_i32_0 = arith.constant 0 : i32
    %c0_i32_1 = arith.constant 0 : i32
    %c0_i32_2 = arith.constant 0 : i32
    return %c0_i32, %c0_i32_0, %c0_i32_1 : i32, i32, i32
  }
  func.func @transform_1(%arg0: i32, %arg1: i32) -> (i32, i32) {
    %c0_i32 = arith.constant 0 : i32
    %c0_i32_0 = arith.constant 0 : i32
    %c0_i32_1 = arith.constant 0 : i32
    return %c0_i32, %c0_i32_0 : i32, i32
  }
  func.func @transform_2(%arg0: i32, %arg1: i32) -> (i32, i32) {
    %c0_i32 = arith.constant 0 : i32
    %c0_i32_0 = arith.constant 0 : i32
    %c0_i32_1 = arith.constant 0 : i32
    return %c0_i32, %c0_i32_0 : i32, i32
  }
  func.func @transform_3(%arg0: i32, %arg1: i32) -> (i32, i32, i32, i32) {
    %c1_i32 = arith.constant 1 : i32
    %0 = arith.subi %arg1, %c1_i32 : i32
    %c0_i32 = arith.constant 0 : i32
    %1 = arith.maxsi %0, %c0_i32 : i32
    %c0_i32_0 = arith.constant 0 : i32
    %c0_i32_1 = arith.constant 0 : i32
    %c0_i32_2 = arith.constant 0 : i32
    return %arg0, %1, %c0_i32_0, %c0_i32_1 : i32, i32, i32, i32
  }
  func.func @transform_4(%arg0: i32, %arg1: i32) -> (i32, i32, i32, i32) {
    %c0_i32 = arith.constant 0 : i32
    %c0_i32_0 = arith.constant 0 : i32
    %c0_i32_1 = arith.constant 0 : i32
    return %arg0, %arg1, %c0_i32, %c0_i32_0 : i32, i32, i32, i32
  }
  func.func @transform_5(%arg0: i32, %arg1: i32) -> (i32, i32, i32, i32) {
    %c1_i32 = arith.constant 1 : i32
    %0 = arith.addi %arg1, %c1_i32 : i32
    %c7_i32 = arith.constant 7 : i32
    %1 = arith.minsi %0, %c7_i32 : i32
    %c0_i32 = arith.constant 0 : i32
    %c0_i32_0 = arith.constant 0 : i32
    %c0_i32_1 = arith.constant 0 : i32
    return %arg0, %1, %c0_i32, %c0_i32_0 : i32, i32, i32, i32
  }
  func.func @transform_6(%arg0: i32, %arg1: i32) -> (i32, i32, i32, i32) {
    %c0_i32 = arith.constant 0 : i32
    %c0_i32_0 = arith.constant 0 : i32
    %c0_i32_1 = arith.constant 0 : i32
    return %arg0, %arg1, %c0_i32, %c0_i32_0 : i32, i32, i32, i32
  }
}

module attributes {stable_mosaic.version = 11 : i64} {
  func.func @_conv_kernel(%arg0: i32, %arg1: i32, %arg2: memref<3x144x8xbf16, #tpu.memory_space<vmem>>, %arg3: memref<16x1xf32, #tpu.memory_space<vmem>>, %arg4: memref<1x384xf32, #tpu.memory_space<vmem>>, %arg5: memref<1x1x8x384xf32, #tpu.memory_space<vmem>>, %arg6: memref<1x1x8x384xf32, #tpu.memory_space<vmem>>, %arg7: memref<1x1x8x384xf32, #tpu.memory_space<vmem>>, %arg8: memref<1x1x16x384xf32, #tpu.memory_space<vmem>>) attributes {dimension_semantics = [#tpu.dimension_semantics<parallel>, #tpu.dimension_semantics<parallel>], iteration_bounds = array<i64: 2, 8>, scalar_prefetch = 0 : i64, scratch_operands = 0 : i64, tpu.core_type = #tpu.core_type<tc>, window_params = [{pipeline_mode = #tpu.pipeline_mode<synchronous>, transform_indices = @transform_0, window_bounds = array<i64: 3, 144, 8>}, {pipeline_mode = #tpu.pipeline_mode<synchronous>, transform_indices = @transform_1, window_bounds = array<i64: 16, 1>}, {pipeline_mode = #tpu.pipeline_mode<synchronous>, transform_indices = @transform_2, window_bounds = array<i64: 1, 384>}, {transform_indices = @transform_3, window_bounds = array<i64: 1, 1, 8, 384>}, {transform_indices = @transform_4, window_bounds = array<i64: 1, 1, 8, 384>}, {transform_indices = @transform_5, window_bounds = array<i64: 1, 1, 8, 384>}, {transform_indices = @transform_6, window_bounds = array<i64: 1, 1, 16, 384>}]} {
    %c0_i32 = arith.constant 0 : i32
    %0 = arith.cmpi sgt, %arg1, %c0_i32 : i32
    %cst = arith.constant 1.000000e+00 : f32
    %cst_0 = arith.constant 0.000000e+00 : f32
    %1 = arith.select %0, %cst, %cst_0 : f32
    %2 = arith.truncf %1 : f32 to bf16
    %c7_i32 = arith.constant 7 : i32
    %3 = arith.cmpi slt, %arg1, %c7_i32 : i32
    %cst_1 = arith.constant 1.000000e+00 : f32
    %cst_2 = arith.constant 0.000000e+00 : f32
    %4 = arith.select %3, %cst_1, %cst_2 : f32
    %5 = arith.truncf %4 : f32 to bf16
    %c0 = arith.constant 0 : index
    %c0_3 = arith.constant 0 : index
    %c0_4 = arith.constant 0 : index
    %6 = vector.load %arg2[%c0, %c0_3, %c0_4] : memref<3x144x8xbf16, #tpu.memory_space<vmem>>, vector<1x144x8xbf16>
    %7 = vector.shape_cast %6 : vector<1x144x8xbf16> to vector<144x8xbf16>
    %8 = vector.broadcast %2 : bf16 to vector<144x8xbf16>
    %9 = arith.mulf %7, %8 : vector<144x8xbf16>
    %c0_5 = arith.constant 0 : index
    %c0_6 = arith.constant 0 : index
    %c0_7 = arith.constant 0 : index
    %c0_8 = arith.constant 0 : index
    %10 = vector.load %arg5[%c0_5, %c0_6, %c0_7, %c0_8] : memref<1x1x8x384xf32, #tpu.memory_space<vmem>>, vector<1x1x8x384xf32>
    %11 = vector.shape_cast %10 : vector<1x1x8x384xf32> to vector<8x384xf32>
    %12 = arith.truncf %11 : vector<8x384xf32> to vector<8x384xbf16>
    %c1 = arith.constant 1 : index
    %c0_9 = arith.constant 0 : index
    %c0_10 = arith.constant 0 : index
    %13 = vector.load %arg2[%c1, %c0_9, %c0_10] : memref<3x144x8xbf16, #tpu.memory_space<vmem>>, vector<1x144x8xbf16>
    %14 = vector.shape_cast %13 : vector<1x144x8xbf16> to vector<144x8xbf16>
    %c0_11 = arith.constant 0 : index
    %c0_12 = arith.constant 0 : index
    %c0_13 = arith.constant 0 : index
    %c0_14 = arith.constant 0 : index
    %15 = vector.load %arg6[%c0_11, %c0_12, %c0_13, %c0_14] : memref<1x1x8x384xf32, #tpu.memory_space<vmem>>, vector<1x1x8x384xf32>
    %16 = vector.shape_cast %15 : vector<1x1x8x384xf32> to vector<8x384xf32>
    %17 = arith.truncf %16 : vector<8x384xf32> to vector<8x384xbf16>
    %c2 = arith.constant 2 : index
    %c0_15 = arith.constant 0 : index
    %c0_16 = arith.constant 0 : index
    %18 = vector.load %arg2[%c2, %c0_15, %c0_16] : memref<3x144x8xbf16, #tpu.memory_space<vmem>>, vector<1x144x8xbf16>
    %19 = vector.shape_cast %18 : vector<1x144x8xbf16> to vector<144x8xbf16>
    %20 = vector.broadcast %5 : bf16 to vector<144x8xbf16>
    %21 = arith.mulf %19, %20 : vector<144x8xbf16>
    %c0_17 = arith.constant 0 : index
    %c0_18 = arith.constant 0 : index
    %c0_19 = arith.constant 0 : index
    %c0_20 = arith.constant 0 : index
    %22 = vector.load %arg7[%c0_17, %c0_18, %c0_19, %c0_20] : memref<1x1x8x384xf32, #tpu.memory_space<vmem>>, vector<1x1x8x384xf32>
    %23 = vector.shape_cast %22 : vector<1x1x8x384xf32> to vector<8x384xf32>
    %24 = arith.truncf %23 : vector<8x384xf32> to vector<8x384xbf16>
    %cst_21 = arith.constant 0.000000e+00 : f32
    %25 = vector.broadcast %cst_21 : f32 to vector<16x128xf32>
    %c0_22 = arith.constant 0 : index
    %c0_23 = arith.constant 0 : index
    %c0_24 = arith.constant 0 : index
    %c0_25 = arith.constant 0 : index
    %26 = vector.load %arg8[%c0_22, %c0_23, %c0_24, %c0_25] : memref<1x1x16x384xf32, #tpu.memory_space<vmem>>, vector<1x1x16x128xf32>
    %27 = vector.shape_cast %26 : vector<1x1x16x128xf32> to vector<16x128xf32>
    %28 = vector.shape_cast %25 : vector<16x128xf32> to vector<1x1x16x128xf32>
    tpu.vector_store %arg8[%c0_22, %c0_23, %c0_24, %c0_25], %28 {strides = array<i32>} : memref<1x1x16x384xf32, #tpu.memory_space<vmem>>, vector<1x1x16x128xf32>,
    %cst_26 = arith.constant 0.000000e+00 : f32
    %29 = vector.broadcast %cst_26 : f32 to vector<16x128xf32>
    %c0_27 = arith.constant 0 : index
    %c0_28 = arith.constant 0 : index
    %c0_29 = arith.constant 0 : index
    %c256 = arith.constant 256 : index
    %30 = vector.load %arg8[%c0_27, %c0_28, %c0_29, %c256] : memref<1x1x16x384xf32, #tpu.memory_space<vmem>>, vector<1x1x16x128xf32>
    %31 = vector.shape_cast %30 : vector<1x1x16x128xf32> to vector<16x128xf32>
    %32 = vector.shape_cast %29 : vector<16x128xf32> to vector<1x1x16x128xf32>
    tpu.vector_store %arg8[%c0_27, %c0_28, %c0_29, %c256], %32 {strides = array<i32>} : memref<1x1x16x384xf32, #tpu.memory_space<vmem>>, vector<1x1x16x128xf32>,
    %cst_30 = arith.constant 0.000000e+00 : f32
    %33 = vector.broadcast %cst_30 : f32 to vector<16x128xf32>
    %34 = vector.extract_strided_slice %12 {offsets = [0, 118], sizes = [8, 148], strides = [1, 1]} : vector<8x384xbf16> to vector<8x148xbf16>
    %cst_31 = arith.constant dense<0.000000e+00> : vector<144x148xf32>
    %35 = tpu.matmul %9, %34, %cst_31 {dimension_numbers = #tpu.dot_dimension_numbers<[1], [0], [0], [1], [0, 0, 1, 1], [], []>} : vector<144x8xbf16>, vector<8x148xbf16>, vector<144x148xf32> -> vector<144x148xf32>
    %36 = vector.extract_strided_slice %35 {offsets = [0, 0], sizes = [16, 128], strides = [1, 1]} : vector<144x148xf32> to vector<16x128xf32>
    %37 = arith.addf %33, %36 : vector<16x128xf32>
    %38 = vector.extract_strided_slice %35 {offsets = [16, 1], sizes = [16, 128], strides = [1, 1]} : vector<144x148xf32> to vector<16x128xf32>
    %39 = arith.addf %37, %38 : vector<16x128xf32>
    %40 = vector.extract_strided_slice %35 {offsets = [32, 2], sizes = [16, 128], strides = [1, 1]} : vector<144x148xf32> to vector<16x128xf32>
    %41 = arith.addf %39, %40 : vector<16x128xf32>
    %42 = vector.extract_strided_slice %35 {offsets = [48, 9], sizes = [16, 128], strides = [1, 1]} : vector<144x148xf32> to vector<16x128xf32>
    %43 = arith.addf %41, %42 : vector<16x128xf32>
    %44 = vector.extract_strided_slice %35 {offsets = [64, 10], sizes = [16, 128], strides = [1, 1]} : vector<144x148xf32> to vector<16x128xf32>
    %45 = arith.addf %43, %44 : vector<16x128xf32>
    %46 = vector.extract_strided_slice %35 {offsets = [80, 11], sizes = [16, 128], strides = [1, 1]} : vector<144x148xf32> to vector<16x128xf32>
    %47 = arith.addf %45, %46 : vector<16x128xf32>
    %48 = vector.extract_strided_slice %35 {offsets = [96, 18], sizes = [16, 128], strides = [1, 1]} : vector<144x148xf32> to vector<16x128xf32>
    %49 = arith.addf %47, %48 : vector<16x128xf32>
    %50 = vector.extract_strided_slice %35 {offsets = [112, 19], sizes = [16, 128], strides = [1, 1]} : vector<144x148xf32> to vector<16x128xf32>
    %51 = arith.addf %49, %50 : vector<16x128xf32>
    %52 = vector.extract_strided_slice %35 {offsets = [128, 20], sizes = [16, 128], strides = [1, 1]} : vector<144x148xf32> to vector<16x128xf32>
    %53 = arith.addf %51, %52 : vector<16x128xf32>
    %54 = vector.extract_strided_slice %17 {offsets = [0, 118], sizes = [8, 148], strides = [1, 1]} : vector<8x384xbf16> to vector<8x148xbf16>
    %cst_32 = arith.constant dense<0.000000e+00> : vector<144x148xf32>
    %55 = tpu.matmul %14, %54, %cst_32 {dimension_numbers = #tpu.dot_dimension_numbers<[1], [0], [0], [1], [0, 0, 1, 1], [], []>} : vector<144x8xbf16>, vector<8x148xbf16>, vector<144x148xf32> -> vector<144x148xf32>
    %56 = vector.extract_strided_slice %55 {offsets = [0, 0], sizes = [16, 128], strides = [1, 1]} : vector<144x148xf32> to vector<16x128xf32>
    %57 = arith.addf %53, %56 : vector<16x128xf32>
    %58 = vector.extract_strided_slice %55 {offsets = [16, 1], sizes = [16, 128], strides = [1, 1]} : vector<144x148xf32> to vector<16x128xf32>
    %59 = arith.addf %57, %58 : vector<16x128xf32>
    %60 = vector.extract_strided_slice %55 {offsets = [32, 2], sizes = [16, 128], strides = [1, 1]} : vector<144x148xf32> to vector<16x128xf32>
    %61 = arith.addf %59, %60 : vector<16x128xf32>
    %62 = vector.extract_strided_slice %55 {offsets = [48, 9], sizes = [16, 128], strides = [1, 1]} : vector<144x148xf32> to vector<16x128xf32>
    %63 = arith.addf %61, %62 : vector<16x128xf32>
    %64 = vector.extract_strided_slice %55 {offsets = [64, 10], sizes = [16, 128], strides = [1, 1]} : vector<144x148xf32> to vector<16x128xf32>
    %65 = arith.addf %63, %64 : vector<16x128xf32>
    %66 = vector.extract_strided_slice %55 {offsets = [80, 11], sizes = [16, 128], strides = [1, 1]} : vector<144x148xf32> to vector<16x128xf32>
    %67 = arith.addf %65, %66 : vector<16x128xf32>
    %68 = vector.extract_strided_slice %55 {offsets = [96, 18], sizes = [16, 128], strides = [1, 1]} : vector<144x148xf32> to vector<16x128xf32>
    %69 = arith.addf %67, %68 : vector<16x128xf32>
    %70 = vector.extract_strided_slice %55 {offsets = [112, 19], sizes = [16, 128], strides = [1, 1]} : vector<144x148xf32> to vector<16x128xf32>
    %71 = arith.addf %69, %70 : vector<16x128xf32>
    %72 = vector.extract_strided_slice %55 {offsets = [128, 20], sizes = [16, 128], strides = [1, 1]} : vector<144x148xf32> to vector<16x128xf32>
    %73 = arith.addf %71, %72 : vector<16x128xf32>
    %74 = vector.extract_strided_slice %24 {offsets = [0, 118], sizes = [8, 148], strides = [1, 1]} : vector<8x384xbf16> to vector<8x148xbf16>
    %cst_33 = arith.constant dense<0.000000e+00> : vector<144x148xf32>
    %75 = tpu.matmul %21, %74, %cst_33 {dimension_numbers = #tpu.dot_dimension_numbers<[1], [0], [0], [1], [0, 0, 1, 1], [], []>} : vector<144x8xbf16>, vector<8x148xbf16>, vector<144x148xf32> -> vector<144x148xf32>
    %76 = vector.extract_strided_slice %75 {offsets = [0, 0], sizes = [16, 128], strides = [1, 1]} : vector<144x148xf32> to vector<16x128xf32>
    %77 = arith.addf %73, %76 : vector<16x128xf32>
    %78 = vector.extract_strided_slice %75 {offsets = [16, 1], sizes = [16, 128], strides = [1, 1]} : vector<144x148xf32> to vector<16x128xf32>
    %79 = arith.addf %77, %78 : vector<16x128xf32>
    %80 = vector.extract_strided_slice %75 {offsets = [32, 2], sizes = [16, 128], strides = [1, 1]} : vector<144x148xf32> to vector<16x128xf32>
    %81 = arith.addf %79, %80 : vector<16x128xf32>
    %82 = vector.extract_strided_slice %75 {offsets = [48, 9], sizes = [16, 128], strides = [1, 1]} : vector<144x148xf32> to vector<16x128xf32>
    %83 = arith.addf %81, %82 : vector<16x128xf32>
    %84 = vector.extract_strided_slice %75 {offsets = [64, 10], sizes = [16, 128], strides = [1, 1]} : vector<144x148xf32> to vector<16x128xf32>
    %85 = arith.addf %83, %84 : vector<16x128xf32>
    %86 = vector.extract_strided_slice %75 {offsets = [80, 11], sizes = [16, 128], strides = [1, 1]} : vector<144x148xf32> to vector<16x128xf32>
    %87 = arith.addf %85, %86 : vector<16x128xf32>
    %88 = vector.extract_strided_slice %75 {offsets = [96, 18], sizes = [16, 128], strides = [1, 1]} : vector<144x148xf32> to vector<16x128xf32>
    %89 = arith.addf %87, %88 : vector<16x128xf32>
    %90 = vector.extract_strided_slice %75 {offsets = [112, 19], sizes = [16, 128], strides = [1, 1]} : vector<144x148xf32> to vector<16x128xf32>
    %91 = arith.addf %89, %90 : vector<16x128xf32>
    %92 = vector.extract_strided_slice %75 {offsets = [128, 20], sizes = [16, 128], strides = [1, 1]} : vector<144x148xf32> to vector<16x128xf32>
    %93 = arith.addf %91, %92 : vector<16x128xf32>
    %c0_34 = arith.constant 0 : index
    %c0_35 = arith.constant 0 : index
    %94 = vector.load %arg3[%c0_34, %c0_35] : memref<16x1xf32, #tpu.memory_space<vmem>>, vector<16x1xf32>
    %95 = vector.broadcast %94 : vector<16x1xf32> to vector<16x128xf32>
    %96 = arith.addf %93, %95 : vector<16x128xf32>
    %cst_36 = arith.constant 0.000000e+00 : f32
    %97 = vector.broadcast %cst_36 : f32 to vector<16x128xf32>
    %98 = arith.maximumf %96, %97 : vector<16x128xf32>
    %c0_37 = arith.constant 0 : index
    %c128 = arith.constant 128 : index
    %99 = vector.load %arg4[%c0_37, %c128] : memref<1x384xf32, #tpu.memory_space<vmem>>, vector<1x128xf32>
    %100 = vector.broadcast %99 : vector<1x128xf32> to vector<16x128xf32>
    %101 = arith.mulf %98, %100 : vector<16x128xf32>
    %c0_38 = arith.constant 0 : index
    %c0_39 = arith.constant 0 : index
    %c0_40 = arith.constant 0 : index
    %c128_41 = arith.constant 128 : index
    %102 = vector.load %arg8[%c0_38, %c0_39, %c0_40, %c128_41] : memref<1x1x16x384xf32, #tpu.memory_space<vmem>>, vector<1x1x16x128xf32>
    %103 = vector.shape_cast %102 : vector<1x1x16x128xf32> to vector<16x128xf32>
    %104 = vector.shape_cast %101 : vector<16x128xf32> to vector<1x1x16x128xf32>
    tpu.vector_store %arg8[%c0_38, %c0_39, %c0_40, %c128_41], %104 {strides = array<i32>} : memref<1x1x16x384xf32, #tpu.memory_space<vmem>>, vector<1x1x16x128xf32>,
    return
  }
  func.func @transform_0(%arg0: i32, %arg1: i32) -> (i32, i32, i32) {
    %c0_i32 = arith.constant 0 : i32
    %c0_i32_0 = arith.constant 0 : i32
    %c0_i32_1 = arith.constant 0 : i32
    %c0_i32_2 = arith.constant 0 : i32
    return %c0_i32, %c0_i32_0, %c0_i32_1 : i32, i32, i32
  }
  func.func @transform_1(%arg0: i32, %arg1: i32) -> (i32, i32) {
    %c0_i32 = arith.constant 0 : i32
    %c0_i32_0 = arith.constant 0 : i32
    %c0_i32_1 = arith.constant 0 : i32
    return %c0_i32, %c0_i32_0 : i32, i32
  }
  func.func @transform_2(%arg0: i32, %arg1: i32) -> (i32, i32) {
    %c0_i32 = arith.constant 0 : i32
    %c0_i32_0 = arith.constant 0 : i32
    %c0_i32_1 = arith.constant 0 : i32
    return %c0_i32, %c0_i32_0 : i32, i32
  }
  func.func @transform_3(%arg0: i32, %arg1: i32) -> (i32, i32, i32, i32) {
    %c1_i32 = arith.constant 1 : i32
    %0 = arith.subi %arg1, %c1_i32 : i32
    %c0_i32 = arith.constant 0 : i32
    %1 = arith.maxsi %0, %c0_i32 : i32
    %c0_i32_0 = arith.constant 0 : i32
    %c0_i32_1 = arith.constant 0 : i32
    %c0_i32_2 = arith.constant 0 : i32
    return %arg0, %1, %c0_i32_0, %c0_i32_1 : i32, i32, i32, i32
  }
  func.func @transform_4(%arg0: i32, %arg1: i32) -> (i32, i32, i32, i32) {
    %c0_i32 = arith.constant 0 : i32
    %c0_i32_0 = arith.constant 0 : i32
    %c0_i32_1 = arith.constant 0 : i32
    return %arg0, %arg1, %c0_i32, %c0_i32_0 : i32, i32, i32, i32
  }
  func.func @transform_5(%arg0: i32, %arg1: i32) -> (i32, i32, i32, i32) {
    %c1_i32 = arith.constant 1 : i32
    %0 = arith.addi %arg1, %c1_i32 : i32
    %c7_i32 = arith.constant 7 : i32
    %1 = arith.minsi %0, %c7_i32 : i32
    %c0_i32 = arith.constant 0 : i32
    %c0_i32_0 = arith.constant 0 : i32
    %c0_i32_1 = arith.constant 0 : i32
    return %arg0, %1, %c0_i32, %c0_i32_0 : i32, i32, i32, i32
  }
  func.func @transform_6(%arg0: i32, %arg1: i32) -> (i32, i32, i32, i32) {
    %c0_i32 = arith.constant 0 : i32
    %c0_i32_0 = arith.constant 0 : i32
    %c0_i32_1 = arith.constant 0 : i32
    return %arg0, %arg1, %c0_i32, %c0_i32_0 : i32, i32, i32, i32
  }
}

module attributes {stable_mosaic.version = 11 : i64} {
  func.func @_conv_kernel(%arg0: i32, %arg1: i32, %arg2: memref<3x72x16xbf16, #tpu.memory_space<vmem>>, %arg3: memref<3x72x8xbf16, #tpu.memory_space<vmem>>, %arg4: memref<8x1xf32, #tpu.memory_space<vmem>>, %arg5: memref<2x8xbf16, #tpu.memory_space<vmem>>, %arg6: memref<2x1xf32, #tpu.memory_space<vmem>>, %arg7: memref<1x640xf32, #tpu.memory_space<vmem>>, %arg8: memref<1x1x16x640xf32, #tpu.memory_space<vmem>>, %arg9: memref<1x1x16x640xf32, #tpu.memory_space<vmem>>, %arg10: memref<1x1x16x640xf32, #tpu.memory_space<vmem>>, %arg11: memref<1x1x8x640xf32, #tpu.memory_space<vmem>>, %arg12: memref<1x1x8x640xf32, #tpu.memory_space<vmem>>, %arg13: memref<1x1x8x640xf32, #tpu.memory_space<vmem>>, %arg14: memref<1x1x2x640xf32, #tpu.memory_space<vmem>>) attributes {dimension_semantics = [#tpu.dimension_semantics<parallel>, #tpu.dimension_semantics<parallel>], iteration_bounds = array<i64: 2, 8>, scalar_prefetch = 0 : i64, scratch_operands = 0 : i64, tpu.core_type = #tpu.core_type<tc>, window_params = [{pipeline_mode = #tpu.pipeline_mode<synchronous>, transform_indices = @transform_0, window_bounds = array<i64: 3, 72, 16>}, {pipeline_mode = #tpu.pipeline_mode<synchronous>, transform_indices = @transform_1, window_bounds = array<i64: 3, 72, 8>}, {pipeline_mode = #tpu.pipeline_mode<synchronous>, transform_indices = @transform_2, window_bounds = array<i64: 8, 1>}, {pipeline_mode = #tpu.pipeline_mode<synchronous>, transform_indices = @transform_3, window_bounds = array<i64: 2, 8>}, {pipeline_mode = #tpu.pipeline_mode<synchronous>, transform_indices = @transform_4, window_bounds = array<i64: 2, 1>}, {pipeline_mode = #tpu.pipeline_mode<synchronous>, transform_indices = @transform_5, window_bounds = array<i64: 1, 640>}, {transform_indices = @transform_6, window_bounds = array<i64: 1, 1, 16, 640>}, {transform_indices = @transform_7, window_bounds = array<i64: 1, 1, 16, 640>}, {transform_indices = @transform_8, window_bounds = array<i64: 1, 1, 16, 640>}, {transform_indices = @transform_9, window_bounds = array<i64: 1, 1, 8, 640>}, {transform_indices = @transform_10, window_bounds = array<i64: 1, 1, 8, 640>}, {transform_indices = @transform_11, window_bounds = array<i64: 1, 1, 8, 640>}, {transform_indices = @transform_12, window_bounds = array<i64: 1, 1, 2, 640>}]} {
    %c0_i32 = arith.constant 0 : i32
    %0 = arith.cmpi sgt, %arg1, %c0_i32 : i32
    %cst = arith.constant 1.000000e+00 : f32
    %cst_0 = arith.constant 0.000000e+00 : f32
    %1 = arith.select %0, %cst, %cst_0 : f32
    %2 = arith.truncf %1 : f32 to bf16
    %c7_i32 = arith.constant 7 : i32
    %3 = arith.cmpi slt, %arg1, %c7_i32 : i32
    %cst_1 = arith.constant 1.000000e+00 : f32
    %cst_2 = arith.constant 0.000000e+00 : f32
    %4 = arith.select %3, %cst_1, %cst_2 : f32
    %5 = arith.truncf %4 : f32 to bf16
    %c0 = arith.constant 0 : index
    %c0_3 = arith.constant 0 : index
    %c0_4 = arith.constant 0 : index
    %6 = vector.load %arg2[%c0, %c0_3, %c0_4] : memref<3x72x16xbf16, #tpu.memory_space<vmem>>, vector<1x72x16xbf16>
    %7 = vector.shape_cast %6 : vector<1x72x16xbf16> to vector<72x16xbf16>
    %8 = vector.broadcast %2 : bf16 to vector<72x16xbf16>
    %9 = arith.mulf %7, %8 : vector<72x16xbf16>
    %c0_5 = arith.constant 0 : index
    %c0_6 = arith.constant 0 : index
    %c0_7 = arith.constant 0 : index
    %c0_8 = arith.constant 0 : index
    %10 = vector.load %arg8[%c0_5, %c0_6, %c0_7, %c0_8] : memref<1x1x16x640xf32, #tpu.memory_space<vmem>>, vector<1x1x16x640xf32>
    %11 = vector.shape_cast %10 : vector<1x1x16x640xf32> to vector<16x640xf32>
    %12 = arith.truncf %11 : vector<16x640xf32> to vector<16x640xbf16>
    %c1 = arith.constant 1 : index
    %c0_9 = arith.constant 0 : index
    %c0_10 = arith.constant 0 : index
    %13 = vector.load %arg2[%c1, %c0_9, %c0_10] : memref<3x72x16xbf16, #tpu.memory_space<vmem>>, vector<1x72x16xbf16>
    %14 = vector.shape_cast %13 : vector<1x72x16xbf16> to vector<72x16xbf16>
    %c0_11 = arith.constant 0 : index
    %c0_12 = arith.constant 0 : index
    %c0_13 = arith.constant 0 : index
    %c0_14 = arith.constant 0 : index
    %15 = vector.load %arg9[%c0_11, %c0_12, %c0_13, %c0_14] : memref<1x1x16x640xf32, #tpu.memory_space<vmem>>, vector<1x1x16x640xf32>
    %16 = vector.shape_cast %15 : vector<1x1x16x640xf32> to vector<16x640xf32>
    %17 = arith.truncf %16 : vector<16x640xf32> to vector<16x640xbf16>
    %c2 = arith.constant 2 : index
    %c0_15 = arith.constant 0 : index
    %c0_16 = arith.constant 0 : index
    %18 = vector.load %arg2[%c2, %c0_15, %c0_16] : memref<3x72x16xbf16, #tpu.memory_space<vmem>>, vector<1x72x16xbf16>
    %19 = vector.shape_cast %18 : vector<1x72x16xbf16> to vector<72x16xbf16>
    %20 = vector.broadcast %5 : bf16 to vector<72x16xbf16>
    %21 = arith.mulf %19, %20 : vector<72x16xbf16>
    %c0_17 = arith.constant 0 : index
    %c0_18 = arith.constant 0 : index
    %c0_19 = arith.constant 0 : index
    %c0_20 = arith.constant 0 : index
    %22 = vector.load %arg10[%c0_17, %c0_18, %c0_19, %c0_20] : memref<1x1x16x640xf32, #tpu.memory_space<vmem>>, vector<1x1x16x640xf32>
    %23 = vector.shape_cast %22 : vector<1x1x16x640xf32> to vector<16x640xf32>
    %24 = arith.truncf %23 : vector<16x640xf32> to vector<16x640xbf16>
    %c0_21 = arith.constant 0 : index
    %c0_22 = arith.constant 0 : index
    %c0_23 = arith.constant 0 : index
    %25 = vector.load %arg3[%c0_21, %c0_22, %c0_23] : memref<3x72x8xbf16, #tpu.memory_space<vmem>>, vector<1x72x8xbf16>
    %26 = vector.shape_cast %25 : vector<1x72x8xbf16> to vector<72x8xbf16>
    %27 = vector.broadcast %2 : bf16 to vector<72x8xbf16>
    %28 = arith.mulf %26, %27 : vector<72x8xbf16>
    %c0_24 = arith.constant 0 : index
    %c0_25 = arith.constant 0 : index
    %c0_26 = arith.constant 0 : index
    %c0_27 = arith.constant 0 : index
    %29 = vector.load %arg11[%c0_24, %c0_25, %c0_26, %c0_27] : memref<1x1x8x640xf32, #tpu.memory_space<vmem>>, vector<1x1x8x640xf32>
    %30 = vector.shape_cast %29 : vector<1x1x8x640xf32> to vector<8x640xf32>
    %31 = arith.truncf %30 : vector<8x640xf32> to vector<8x640xbf16>
    %c1_28 = arith.constant 1 : index
    %c0_29 = arith.constant 0 : index
    %c0_30 = arith.constant 0 : index
    %32 = vector.load %arg3[%c1_28, %c0_29, %c0_30] : memref<3x72x8xbf16, #tpu.memory_space<vmem>>, vector<1x72x8xbf16>
    %33 = vector.shape_cast %32 : vector<1x72x8xbf16> to vector<72x8xbf16>
    %c0_31 = arith.constant 0 : index
    %c0_32 = arith.constant 0 : index
    %c0_33 = arith.constant 0 : index
    %c0_34 = arith.constant 0 : index
    %34 = vector.load %arg12[%c0_31, %c0_32, %c0_33, %c0_34] : memref<1x1x8x640xf32, #tpu.memory_space<vmem>>, vector<1x1x8x640xf32>
    %35 = vector.shape_cast %34 : vector<1x1x8x640xf32> to vector<8x640xf32>
    %36 = arith.truncf %35 : vector<8x640xf32> to vector<8x640xbf16>
    %c2_35 = arith.constant 2 : index
    %c0_36 = arith.constant 0 : index
    %c0_37 = arith.constant 0 : index
    %37 = vector.load %arg3[%c2_35, %c0_36, %c0_37] : memref<3x72x8xbf16, #tpu.memory_space<vmem>>, vector<1x72x8xbf16>
    %38 = vector.shape_cast %37 : vector<1x72x8xbf16> to vector<72x8xbf16>
    %39 = vector.broadcast %5 : bf16 to vector<72x8xbf16>
    %40 = arith.mulf %38, %39 : vector<72x8xbf16>
    %c0_38 = arith.constant 0 : index
    %c0_39 = arith.constant 0 : index
    %c0_40 = arith.constant 0 : index
    %c0_41 = arith.constant 0 : index
    %41 = vector.load %arg13[%c0_38, %c0_39, %c0_40, %c0_41] : memref<1x1x8x640xf32, #tpu.memory_space<vmem>>, vector<1x1x8x640xf32>
    %42 = vector.shape_cast %41 : vector<1x1x8x640xf32> to vector<8x640xf32>
    %43 = arith.truncf %42 : vector<8x640xf32> to vector<8x640xbf16>
    %cst_42 = arith.constant 0.000000e+00 : f32
    %44 = vector.broadcast %cst_42 : f32 to vector<2x128xf32>
    %c0_43 = arith.constant 0 : index
    %c0_44 = arith.constant 0 : index
    %c0_45 = arith.constant 0 : index
    %c0_46 = arith.constant 0 : index
    %45 = vector.load %arg14[%c0_43, %c0_44, %c0_45, %c0_46] : memref<1x1x2x640xf32, #tpu.memory_space<vmem>>, vector<1x1x2x128xf32>
    %46 = vector.shape_cast %45 : vector<1x1x2x128xf32> to vector<2x128xf32>
    %47 = vector.shape_cast %44 : vector<2x128xf32> to vector<1x1x2x128xf32>
    tpu.vector_store %arg14[%c0_43, %c0_44, %c0_45, %c0_46], %47 {strides = array<i32>} : memref<1x1x2x640xf32, #tpu.memory_space<vmem>>, vector<1x1x2x128xf32>,
    %cst_47 = arith.constant 0.000000e+00 : f32
    %48 = vector.broadcast %cst_47 : f32 to vector<2x128xf32>
    %c0_48 = arith.constant 0 : index
    %c0_49 = arith.constant 0 : index
    %c0_50 = arith.constant 0 : index
    %c512 = arith.constant 512 : index
    %49 = vector.load %arg14[%c0_48, %c0_49, %c0_50, %c512] : memref<1x1x2x640xf32, #tpu.memory_space<vmem>>, vector<1x1x2x128xf32>
    %50 = vector.shape_cast %49 : vector<1x1x2x128xf32> to vector<2x128xf32>
    %51 = vector.shape_cast %48 : vector<2x128xf32> to vector<1x1x2x128xf32>
    tpu.vector_store %arg14[%c0_48, %c0_49, %c0_50, %c512], %51 {strides = array<i32>} : memref<1x1x2x640xf32, #tpu.memory_space<vmem>>, vector<1x1x2x128xf32>,
    %cst_51 = arith.constant 0.000000e+00 : f32
    %52 = vector.broadcast %cst_51 : f32 to vector<8x384xf32>
    %53 = vector.extract_strided_slice %12 {offsets = [0, 110], sizes = [16, 420], strides = [1, 1]} : vector<16x640xbf16> to vector<16x420xbf16>
    %cst_52 = arith.constant dense<0.000000e+00> : vector<72x420xf32>
    %54 = tpu.matmul %9, %53, %cst_52 {dimension_numbers = #tpu.dot_dimension_numbers<[1], [0], [0], [1], [0, 0, 1, 1], [], []>} : vector<72x16xbf16>, vector<16x420xbf16>, vector<72x420xf32> -> vector<72x420xf32>
    %55 = vector.extract_strided_slice %54 {offsets = [0, 0], sizes = [8, 384], strides = [1, 1]} : vector<72x420xf32> to vector<8x384xf32>
    %56 = arith.addf %52, %55 : vector<8x384xf32>
    %57 = vector.extract_strided_slice %54 {offsets = [8, 1], sizes = [8, 384], strides = [1, 1]} : vector<72x420xf32> to vector<8x384xf32>
    %58 = arith.addf %56, %57 : vector<8x384xf32>
    %59 = vector.extract_strided_slice %54 {offsets = [16, 2], sizes = [8, 384], strides = [1, 1]} : vector<72x420xf32> to vector<8x384xf32>
    %60 = arith.addf %58, %59 : vector<8x384xf32>
    %61 = vector.extract_strided_slice %54 {offsets = [24, 17], sizes = [8, 384], strides = [1, 1]} : vector<72x420xf32> to vector<8x384xf32>
    %62 = arith.addf %60, %61 : vector<8x384xf32>
    %63 = vector.extract_strided_slice %54 {offsets = [32, 18], sizes = [8, 384], strides = [1, 1]} : vector<72x420xf32> to vector<8x384xf32>
    %64 = arith.addf %62, %63 : vector<8x384xf32>
    %65 = vector.extract_strided_slice %54 {offsets = [40, 19], sizes = [8, 384], strides = [1, 1]} : vector<72x420xf32> to vector<8x384xf32>
    %66 = arith.addf %64, %65 : vector<8x384xf32>
    %67 = vector.extract_strided_slice %54 {offsets = [48, 34], sizes = [8, 384], strides = [1, 1]} : vector<72x420xf32> to vector<8x384xf32>
    %68 = arith.addf %66, %67 : vector<8x384xf32>
    %69 = vector.extract_strided_slice %54 {offsets = [56, 35], sizes = [8, 384], strides = [1, 1]} : vector<72x420xf32> to vector<8x384xf32>
    %70 = arith.addf %68, %69 : vector<8x384xf32>
    %71 = vector.extract_strided_slice %54 {offsets = [64, 36], sizes = [8, 384], strides = [1, 1]} : vector<72x420xf32> to vector<8x384xf32>
    %72 = arith.addf %70, %71 : vector<8x384xf32>
    %73 = vector.extract_strided_slice %17 {offsets = [0, 110], sizes = [16, 420], strides = [1, 1]} : vector<16x640xbf16> to vector<16x420xbf16>
    %cst_53 = arith.constant dense<0.000000e+00> : vector<72x420xf32>
    %74 = tpu.matmul %14, %73, %cst_53 {dimension_numbers = #tpu.dot_dimension_numbers<[1], [0], [0], [1], [0, 0, 1, 1], [], []>} : vector<72x16xbf16>, vector<16x420xbf16>, vector<72x420xf32> -> vector<72x420xf32>
    %75 = vector.extract_strided_slice %74 {offsets = [0, 0], sizes = [8, 384], strides = [1, 1]} : vector<72x420xf32> to vector<8x384xf32>
    %76 = arith.addf %72, %75 : vector<8x384xf32>
    %77 = vector.extract_strided_slice %74 {offsets = [8, 1], sizes = [8, 384], strides = [1, 1]} : vector<72x420xf32> to vector<8x384xf32>
    %78 = arith.addf %76, %77 : vector<8x384xf32>
    %79 = vector.extract_strided_slice %74 {offsets = [16, 2], sizes = [8, 384], strides = [1, 1]} : vector<72x420xf32> to vector<8x384xf32>
    %80 = arith.addf %78, %79 : vector<8x384xf32>
    %81 = vector.extract_strided_slice %74 {offsets = [24, 17], sizes = [8, 384], strides = [1, 1]} : vector<72x420xf32> to vector<8x384xf32>
    %82 = arith.addf %80, %81 : vector<8x384xf32>
    %83 = vector.extract_strided_slice %74 {offsets = [32, 18], sizes = [8, 384], strides = [1, 1]} : vector<72x420xf32> to vector<8x384xf32>
    %84 = arith.addf %82, %83 : vector<8x384xf32>
    %85 = vector.extract_strided_slice %74 {offsets = [40, 19], sizes = [8, 384], strides = [1, 1]} : vector<72x420xf32> to vector<8x384xf32>
    %86 = arith.addf %84, %85 : vector<8x384xf32>
    %87 = vector.extract_strided_slice %74 {offsets = [48, 34], sizes = [8, 384], strides = [1, 1]} : vector<72x420xf32> to vector<8x384xf32>
    %88 = arith.addf %86, %87 : vector<8x384xf32>
    %89 = vector.extract_strided_slice %74 {offsets = [56, 35], sizes = [8, 384], strides = [1, 1]} : vector<72x420xf32> to vector<8x384xf32>
    %90 = arith.addf %88, %89 : vector<8x384xf32>
    %91 = vector.extract_strided_slice %74 {offsets = [64, 36], sizes = [8, 384], strides = [1, 1]} : vector<72x420xf32> to vector<8x384xf32>
    %92 = arith.addf %90, %91 : vector<8x384xf32>
    %93 = vector.extract_strided_slice %24 {offsets = [0, 110], sizes = [16, 420], strides = [1, 1]} : vector<16x640xbf16> to vector<16x420xbf16>
    %cst_54 = arith.constant dense<0.000000e+00> : vector<72x420xf32>
    %94 = tpu.matmul %21, %93, %cst_54 {dimension_numbers = #tpu.dot_dimension_numbers<[1], [0], [0], [1], [0, 0, 1, 1], [], []>} : vector<72x16xbf16>, vector<16x420xbf16>, vector<72x420xf32> -> vector<72x420xf32>
    %95 = vector.extract_strided_slice %94 {offsets = [0, 0], sizes = [8, 384], strides = [1, 1]} : vector<72x420xf32> to vector<8x384xf32>
    %96 = arith.addf %92, %95 : vector<8x384xf32>
    %97 = vector.extract_strided_slice %94 {offsets = [8, 1], sizes = [8, 384], strides = [1, 1]} : vector<72x420xf32> to vector<8x384xf32>
    %98 = arith.addf %96, %97 : vector<8x384xf32>
    %99 = vector.extract_strided_slice %94 {offsets = [16, 2], sizes = [8, 384], strides = [1, 1]} : vector<72x420xf32> to vector<8x384xf32>
    %100 = arith.addf %98, %99 : vector<8x384xf32>
    %101 = vector.extract_strided_slice %94 {offsets = [24, 17], sizes = [8, 384], strides = [1, 1]} : vector<72x420xf32> to vector<8x384xf32>
    %102 = arith.addf %100, %101 : vector<8x384xf32>
    %103 = vector.extract_strided_slice %94 {offsets = [32, 18], sizes = [8, 384], strides = [1, 1]} : vector<72x420xf32> to vector<8x384xf32>
    %104 = arith.addf %102, %103 : vector<8x384xf32>
    %105 = vector.extract_strided_slice %94 {offsets = [40, 19], sizes = [8, 384], strides = [1, 1]} : vector<72x420xf32> to vector<8x384xf32>
    %106 = arith.addf %104, %105 : vector<8x384xf32>
    %107 = vector.extract_strided_slice %94 {offsets = [48, 34], sizes = [8, 384], strides = [1, 1]} : vector<72x420xf32> to vector<8x384xf32>
    %108 = arith.addf %106, %107 : vector<8x384xf32>
    %109 = vector.extract_strided_slice %94 {offsets = [56, 35], sizes = [8, 384], strides = [1, 1]} : vector<72x420xf32> to vector<8x384xf32>
    %110 = arith.addf %108, %109 : vector<8x384xf32>
    %111 = vector.extract_strided_slice %94 {offsets = [64, 36], sizes = [8, 384], strides = [1, 1]} : vector<72x420xf32> to vector<8x384xf32>
    %112 = arith.addf %110, %111 : vector<8x384xf32>
    %113 = vector.extract_strided_slice %31 {offsets = [0, 110], sizes = [8, 420], strides = [1, 1]} : vector<8x640xbf16> to vector<8x420xbf16>
    %cst_55 = arith.constant dense<0.000000e+00> : vector<72x420xf32>
    %114 = tpu.matmul %28, %113, %cst_55 {dimension_numbers = #tpu.dot_dimension_numbers<[1], [0], [0], [1], [0, 0, 1, 1], [], []>} : vector<72x8xbf16>, vector<8x420xbf16>, vector<72x420xf32> -> vector<72x420xf32>
    %115 = vector.extract_strided_slice %114 {offsets = [0, 0], sizes = [8, 384], strides = [1, 1]} : vector<72x420xf32> to vector<8x384xf32>
    %116 = arith.addf %112, %115 : vector<8x384xf32>
    %117 = vector.extract_strided_slice %114 {offsets = [8, 1], sizes = [8, 384], strides = [1, 1]} : vector<72x420xf32> to vector<8x384xf32>
    %118 = arith.addf %116, %117 : vector<8x384xf32>
    %119 = vector.extract_strided_slice %114 {offsets = [16, 2], sizes = [8, 384], strides = [1, 1]} : vector<72x420xf32> to vector<8x384xf32>
    %120 = arith.addf %118, %119 : vector<8x384xf32>
    %121 = vector.extract_strided_slice %114 {offsets = [24, 17], sizes = [8, 384], strides = [1, 1]} : vector<72x420xf32> to vector<8x384xf32>
    %122 = arith.addf %120, %121 : vector<8x384xf32>
    %123 = vector.extract_strided_slice %114 {offsets = [32, 18], sizes = [8, 384], strides = [1, 1]} : vector<72x420xf32> to vector<8x384xf32>
    %124 = arith.addf %122, %123 : vector<8x384xf32>
    %125 = vector.extract_strided_slice %114 {offsets = [40, 19], sizes = [8, 384], strides = [1, 1]} : vector<72x420xf32> to vector<8x384xf32>
    %126 = arith.addf %124, %125 : vector<8x384xf32>
    %127 = vector.extract_strided_slice %114 {offsets = [48, 34], sizes = [8, 384], strides = [1, 1]} : vector<72x420xf32> to vector<8x384xf32>
    %128 = arith.addf %126, %127 : vector<8x384xf32>
    %129 = vector.extract_strided_slice %114 {offsets = [56, 35], sizes = [8, 384], strides = [1, 1]} : vector<72x420xf32> to vector<8x384xf32>
    %130 = arith.addf %128, %129 : vector<8x384xf32>
    %131 = vector.extract_strided_slice %114 {offsets = [64, 36], sizes = [8, 384], strides = [1, 1]} : vector<72x420xf32> to vector<8x384xf32>
    %132 = arith.addf %130, %131 : vector<8x384xf32>
    %133 = vector.extract_strided_slice %36 {offsets = [0, 110], sizes = [8, 420], strides = [1, 1]} : vector<8x640xbf16> to vector<8x420xbf16>
    %cst_56 = arith.constant dense<0.000000e+00> : vector<72x420xf32>
    %134 = tpu.matmul %33, %133, %cst_56 {dimension_numbers = #tpu.dot_dimension_numbers<[1], [0], [0], [1], [0, 0, 1, 1], [], []>} : vector<72x8xbf16>, vector<8x420xbf16>, vector<72x420xf32> -> vector<72x420xf32>
    %135 = vector.extract_strided_slice %134 {offsets = [0, 0], sizes = [8, 384], strides = [1, 1]} : vector<72x420xf32> to vector<8x384xf32>
    %136 = arith.addf %132, %135 : vector<8x384xf32>
    %137 = vector.extract_strided_slice %134 {offsets = [8, 1], sizes = [8, 384], strides = [1, 1]} : vector<72x420xf32> to vector<8x384xf32>
    %138 = arith.addf %136, %137 : vector<8x384xf32>
    %139 = vector.extract_strided_slice %134 {offsets = [16, 2], sizes = [8, 384], strides = [1, 1]} : vector<72x420xf32> to vector<8x384xf32>
    %140 = arith.addf %138, %139 : vector<8x384xf32>
    %141 = vector.extract_strided_slice %134 {offsets = [24, 17], sizes = [8, 384], strides = [1, 1]} : vector<72x420xf32> to vector<8x384xf32>
    %142 = arith.addf %140, %141 : vector<8x384xf32>
    %143 = vector.extract_strided_slice %134 {offsets = [32, 18], sizes = [8, 384], strides = [1, 1]} : vector<72x420xf32> to vector<8x384xf32>
    %144 = arith.addf %142, %143 : vector<8x384xf32>
    %145 = vector.extract_strided_slice %134 {offsets = [40, 19], sizes = [8, 384], strides = [1, 1]} : vector<72x420xf32> to vector<8x384xf32>
    %146 = arith.addf %144, %145 : vector<8x384xf32>
    %147 = vector.extract_strided_slice %134 {offsets = [48, 34], sizes = [8, 384], strides = [1, 1]} : vector<72x420xf32> to vector<8x384xf32>
    %148 = arith.addf %146, %147 : vector<8x384xf32>
    %149 = vector.extract_strided_slice %134 {offsets = [56, 35], sizes = [8, 384], strides = [1, 1]} : vector<72x420xf32> to vector<8x384xf32>
    %150 = arith.addf %148, %149 : vector<8x384xf32>
    %151 = vector.extract_strided_slice %134 {offsets = [64, 36], sizes = [8, 384], strides = [1, 1]} : vector<72x420xf32> to vector<8x384xf32>
    %152 = arith.addf %150, %151 : vector<8x384xf32>
    %153 = vector.extract_strided_slice %43 {offsets = [0, 110], sizes = [8, 420], strides = [1, 1]} : vector<8x640xbf16> to vector<8x420xbf16>
    %cst_57 = arith.constant dense<0.000000e+00> : vector<72x420xf32>
    %154 = tpu.matmul %40, %153, %cst_57 {dimension_numbers = #tpu.dot_dimension_numbers<[1], [0], [0], [1], [0, 0, 1, 1], [], []>} : vector<72x8xbf16>, vector<8x420xbf16>, vector<72x420xf32> -> vector<72x420xf32>
    %155 = vector.extract_strided_slice %154 {offsets = [0, 0], sizes = [8, 384], strides = [1, 1]} : vector<72x420xf32> to vector<8x384xf32>
    %156 = arith.addf %152, %155 : vector<8x384xf32>
    %157 = vector.extract_strided_slice %154 {offsets = [8, 1], sizes = [8, 384], strides = [1, 1]} : vector<72x420xf32> to vector<8x384xf32>
    %158 = arith.addf %156, %157 : vector<8x384xf32>
    %159 = vector.extract_strided_slice %154 {offsets = [16, 2], sizes = [8, 384], strides = [1, 1]} : vector<72x420xf32> to vector<8x384xf32>
    %160 = arith.addf %158, %159 : vector<8x384xf32>
    %161 = vector.extract_strided_slice %154 {offsets = [24, 17], sizes = [8, 384], strides = [1, 1]} : vector<72x420xf32> to vector<8x384xf32>
    %162 = arith.addf %160, %161 : vector<8x384xf32>
    %163 = vector.extract_strided_slice %154 {offsets = [32, 18], sizes = [8, 384], strides = [1, 1]} : vector<72x420xf32> to vector<8x384xf32>
    %164 = arith.addf %162, %163 : vector<8x384xf32>
    %165 = vector.extract_strided_slice %154 {offsets = [40, 19], sizes = [8, 384], strides = [1, 1]} : vector<72x420xf32> to vector<8x384xf32>
    %166 = arith.addf %164, %165 : vector<8x384xf32>
    %167 = vector.extract_strided_slice %154 {offsets = [48, 34], sizes = [8, 384], strides = [1, 1]} : vector<72x420xf32> to vector<8x384xf32>
    %168 = arith.addf %166, %167 : vector<8x384xf32>
    %169 = vector.extract_strided_slice %154 {offsets = [56, 35], sizes = [8, 384], strides = [1, 1]} : vector<72x420xf32> to vector<8x384xf32>
    %170 = arith.addf %168, %169 : vector<8x384xf32>
    %171 = vector.extract_strided_slice %154 {offsets = [64, 36], sizes = [8, 384], strides = [1, 1]} : vector<72x420xf32> to vector<8x384xf32>
    %172 = arith.addf %170, %171 : vector<8x384xf32>
    %c0_58 = arith.constant 0 : index
    %c0_59 = arith.constant 0 : index
    %173 = vector.load %arg4[%c0_58, %c0_59] : memref<8x1xf32, #tpu.memory_space<vmem>>, vector<8x1xf32>
    %174 = vector.broadcast %173 : vector<8x1xf32> to vector<8x384xf32>
    %175 = arith.addf %172, %174 : vector<8x384xf32>
    %cst_60 = arith.constant 0.000000e+00 : f32
    %176 = vector.broadcast %cst_60 : f32 to vector<8x384xf32>
    %177 = arith.maximumf %175, %176 : vector<8x384xf32>
    %c0_61 = arith.constant 0 : index
    %c0_62 = arith.constant 0 : index
    %178 = vector.load %arg5[%c0_61, %c0_62] : memref<2x8xbf16, #tpu.memory_space<vmem>>, vector<2x8xbf16>
    %179 = arith.truncf %177 : vector<8x384xf32> to vector<8x384xbf16>
    %cst_63 = arith.constant dense<0.000000e+00> : vector<2x384xf32>
    %180 = tpu.matmul %178, %179, %cst_63 {dimension_numbers = #tpu.dot_dimension_numbers<[1], [0], [0], [1], [0, 0, 1, 1], [], []>} : vector<2x8xbf16>, vector<8x384xbf16>, vector<2x384xf32> -> vector<2x384xf32>
    %c0_64 = arith.constant 0 : index
    %c0_65 = arith.constant 0 : index
    %181 = vector.load %arg6[%c0_64, %c0_65] : memref<2x1xf32, #tpu.memory_space<vmem>>, vector<2x1xf32>
    %182 = vector.broadcast %181 : vector<2x1xf32> to vector<2x384xf32>
    %183 = arith.addf %180, %182 : vector<2x384xf32>
    %c0_66 = arith.constant 0 : index
    %c128 = arith.constant 128 : index
    %184 = vector.load %arg7[%c0_66, %c128] : memref<1x640xf32, #tpu.memory_space<vmem>>, vector<1x384xf32>
    %185 = vector.broadcast %184 : vector<1x384xf32> to vector<2x384xf32>
    %186 = arith.mulf %183, %185 : vector<2x384xf32>
    %c0_67 = arith.constant 0 : index
    %c0_68 = arith.constant 0 : index
    %c0_69 = arith.constant 0 : index
    %c128_70 = arith.constant 128 : index
    %187 = vector.load %arg14[%c0_67, %c0_68, %c0_69, %c128_70] : memref<1x1x2x640xf32, #tpu.memory_space<vmem>>, vector<1x1x2x384xf32>
    %188 = vector.shape_cast %187 : vector<1x1x2x384xf32> to vector<2x384xf32>
    %189 = vector.shape_cast %186 : vector<2x384xf32> to vector<1x1x2x384xf32>
    tpu.vector_store %arg14[%c0_67, %c0_68, %c0_69, %c128_70], %189 {strides = array<i32>} : memref<1x1x2x640xf32, #tpu.memory_space<vmem>>, vector<1x1x2x384xf32>,
    return
  }
  func.func @transform_0(%arg0: i32, %arg1: i32) -> (i32, i32, i32) {
    %c0_i32 = arith.constant 0 : i32
    %c0_i32_0 = arith.constant 0 : i32
    %c0_i32_1 = arith.constant 0 : i32
    %c0_i32_2 = arith.constant 0 : i32
    return %c0_i32, %c0_i32_0, %c0_i32_1 : i32, i32, i32
  }
  func.func @transform_1(%arg0: i32, %arg1: i32) -> (i32, i32, i32) {
    %c0_i32 = arith.constant 0 : i32
    %c0_i32_0 = arith.constant 0 : i32
    %c0_i32_1 = arith.constant 0 : i32
    %c0_i32_2 = arith.constant 0 : i32
    return %c0_i32, %c0_i32_0, %c0_i32_1 : i32, i32, i32
  }
  func.func @transform_2(%arg0: i32, %arg1: i32) -> (i32, i32) {
    %c0_i32 = arith.constant 0 : i32
    %c0_i32_0 = arith.constant 0 : i32
    %c0_i32_1 = arith.constant 0 : i32
    return %c0_i32, %c0_i32_0 : i32, i32
  }
  func.func @transform_3(%arg0: i32, %arg1: i32) -> (i32, i32) {
    %c0_i32 = arith.constant 0 : i32
    %c0_i32_0 = arith.constant 0 : i32
    %c0_i32_1 = arith.constant 0 : i32
    return %c0_i32, %c0_i32_0 : i32, i32
  }
  func.func @transform_4(%arg0: i32, %arg1: i32) -> (i32, i32) {
    %c0_i32 = arith.constant 0 : i32
    %c0_i32_0 = arith.constant 0 : i32
    %c0_i32_1 = arith.constant 0 : i32
    return %c0_i32, %c0_i32_0 : i32, i32
  }
  func.func @transform_5(%arg0: i32, %arg1: i32) -> (i32, i32) {
    %c0_i32 = arith.constant 0 : i32
    %c0_i32_0 = arith.constant 0 : i32
    %c0_i32_1 = arith.constant 0 : i32
    return %c0_i32, %c0_i32_0 : i32, i32
  }
  func.func @transform_6(%arg0: i32, %arg1: i32) -> (i32, i32, i32, i32) {
    %c1_i32 = arith.constant 1 : i32
    %0 = arith.subi %arg1, %c1_i32 : i32
    %c0_i32 = arith.constant 0 : i32
    %1 = arith.maxsi %0, %c0_i32 : i32
    %c0_i32_0 = arith.constant 0 : i32
    %c0_i32_1 = arith.constant 0 : i32
    %c0_i32_2 = arith.constant 0 : i32
    return %arg0, %1, %c0_i32_0, %c0_i32_1 : i32, i32, i32, i32
  }
  func.func @transform_7(%arg0: i32, %arg1: i32) -> (i32, i32, i32, i32) {
    %c0_i32 = arith.constant 0 : i32
    %c0_i32_0 = arith.constant 0 : i32
    %c0_i32_1 = arith.constant 0 : i32
    return %arg0, %arg1, %c0_i32, %c0_i32_0 : i32, i32, i32, i32
  }
  func.func @transform_8(%arg0: i32, %arg1: i32) -> (i32, i32, i32, i32) {
    %c1_i32 = arith.constant 1 : i32
    %0 = arith.addi %arg1, %c1_i32 : i32
    %c7_i32 = arith.constant 7 : i32
    %1 = arith.minsi %0, %c7_i32 : i32
    %c0_i32 = arith.constant 0 : i32
    %c0_i32_0 = arith.constant 0 : i32
    %c0_i32_1 = arith.constant 0 : i32
    return %arg0, %1, %c0_i32, %c0_i32_0 : i32, i32, i32, i32
  }
  func.func @transform_9(%arg0: i32, %arg1: i32) -> (i32, i32, i32, i32) {
    %c1_i32 = arith.constant 1 : i32
    %0 = arith.subi %arg1, %c1_i32 : i32
    %c0_i32 = arith.constant 0 : i32
    %1 = arith.maxsi %0, %c0_i32 : i32
    %c0_i32_0 = arith.constant 0 : i32
    %c0_i32_1 = arith.constant 0 : i32
    %c0_i32_2 = arith.constant 0 : i32
    return %arg0, %1, %c0_i32_0, %c0_i32_1 : i32, i32, i32, i32
  }
  func.func @transform_10(%arg0: i32, %arg1: i32) -> (i32, i32, i32, i32) {
    %c0_i32 = arith.constant 0 : i32
    %c0_i32_0 = arith.constant 0 : i32
    %c0_i32_1 = arith.constant 0 : i32
    return %arg0, %arg1, %c0_i32, %c0_i32_0 : i32, i32, i32, i32
  }
  func.func @transform_11(%arg0: i32, %arg1: i32) -> (i32, i32, i32, i32) {
    %c1_i32 = arith.constant 1 : i32
    %0 = arith.addi %arg1, %c1_i32 : i32
    %c7_i32 = arith.constant 7 : i32
    %1 = arith.minsi %0, %c7_i32 : i32
    %c0_i32 = arith.constant 0 : i32
    %c0_i32_0 = arith.constant 0 : i32
    %c0_i32_1 = arith.constant 0 : i32
    return %arg0, %1, %c0_i32, %c0_i32_0 : i32, i32, i32, i32
  }
  func.func @transform_12(%arg0: i32, %arg1: i32) -> (i32, i32, i32, i32) {
    %c0_i32 = arith.constant 0 : i32
    %c0_i32_0 = arith.constant 0 : i32
    %c0_i32_1 = arith.constant 0 : i32
    return %arg0, %arg1, %c0_i32, %c0_i32_0 : i32, i32, i32, i32
  }
}

</mosaic_0001>

<bundles_post_ra>
// kernel: custom-call.1
= control target key start
LH: loop header
LB: loop body
LE: loop exit
PB: predicated region body
PF: predicated region fallthrough
CT: control target
= control target key end

     0   :  { %s56_s0 = inlined_call_operand.hbm [shape: c64[1,2,8,16,16], index: 0, kind: input, shape index: {}]   ;;  %s57_s1 = inlined_call_operand.vmem [shape: f32[1,2,8,16,16], index: 1, kind: output, shape index: {}]  }
   0x1   :  { %s2_s8 = scalar_lea.hbm %s56_s0, 256 }
   0x2   :  { %3 = vsyncpa [#allocation0], 0  ;;  %s5_s9 = sshll.u32 %s2_s8, 4  ;;  %s7_s12 = sshll.u32 %s57_s1, 4  ;;  %s6_s9 = int_to_ptr.hbm [resolvable:$true] %s5_s9  ;;  %s8_s12 = int_to_ptr.vmem [resolvable:$true] %s7_s12 }
   0x3   :  { %10 = dma.hbm_to_vmem [thread:$0]  %s6_s9, 4096, %s8_s12, [#allocation0] }
   0x4   :  { %38 = dma.done.wait [#allocation0], 4096  }
   0x5   :  { %39 = vsyncadd [#allocation0], 4294963200 }
   0x6   :  { %13 = vsyncpa [#allocation0], 1 }

// kernel: custom-call
= control target key start
LH: loop header
LB: loop body
LE: loop exit
PB: predicated region body
PF: predicated region fallthrough
CT: control target
= control target key end

     0   :  { %2 = vsyncpa [#allocation0], 0  ;;  %s55_s0 = inlined_call_operand.hbm [shape: c64[1,2,8,16,16], index: 0, kind: input, shape index: {}]   ;;  %s56_s1 = inlined_call_operand.vmem [shape: f32[1,2,8,16,16], index: 1, kind: output, shape index: {}]  }
   0x1   :  { %s4_s8 = sshll.u32 %s55_s0, 4  ;;  %s6_s11 = sshll.u32 %s56_s1, 4  ;;  %s5_s8 = int_to_ptr.hbm [resolvable:$true] %s4_s8  ;;  %s7_s11 = int_to_ptr.vmem [resolvable:$true] %s6_s11 }
   0x2   :  { %9 = dma.hbm_to_vmem [thread:$0]  %s5_s8, 4096, %s7_s11, [#allocation0] }
   0x3   :  { %37 = dma.done.wait [#allocation0], 4096  }
   0x4   :  { %38 = vsyncadd [#allocation0], 4294963200 }
   0x5   :  { %12 = vsyncpa [#allocation0], 1 }

// kernel: img_unet_wrapper_forward.3
= control target key start
LH: loop header
LB: loop body
LE: loop exit
PB: predicated region body
PF: predicated region fallthrough
CT: control target
= control target key end

     0   :  { %s2138_s21 = smov 0   ;;  %s2140_s22 = smov 0   ;;  %s2629_s0 = inlined_call_operand.vmem [shape: bf16[3,72,2], index: 0, kind: input, shape index: {}]   ;;  %s2630_s1 = inlined_call_operand.vmem [shape: f32[8,1], index: 1, kind: input, shape index: {}]   ;;  %s2631_s2 = inlined_call_operand.vmem [shape: f32[1,640], index: 2, kind: input, shape index: {}]   ;;  %s2632_s3 = inlined_call_operand.vmem [shape: f32[2,8,2,640], index: 3, kind: input, shape index: {}, may-alias: {3,4,5}]   ;;  %s2633_s4 = inlined_call_operand.vmem [shape: f32[2,8,2,640], index: 4, kind: input, shape index: {}, may-alias: {3,4,5}]   ;;  %s2634_s5 = inlined_call_operand.vmem [shape: f32[2,8,2,640], index: 5, kind: input, shape index: {}, may-alias: {3,4,5}]   ;;  %s2635_s6 = inlined_call_operand.vmem [shape: f32[2,8,8,640], index: 6, kind: output, shape index: {}]  }
   0x1   :  { %s2142_s23 = smov 0   ;;  %s2144_s24 = smov 0  }
   0x2   :  { %s2146_s25 = smov 0  }
   0x3 LB: > { %s25_s26 = sadd.s32 1, %s2082_s23  ;;  %s28_s27 = sadd.s32 1, %s2086_s24  ;;  %s2090_s25 = sphi %s2146_s25, %s16_s25   ;;  %s2086_s24 = sphi %s2144_s24, %s2640_s24   ;;  %s2082_s23 = sphi %s2142_s23, %s2639_s23   ;;  %s2078_s22 = sphi %s2140_s22, %s2638_s22   ;;  %s2074_s21 = sphi %s2138_s21, %s2637_s21  }
   0x4   : > { %p26_p0 = scmp.ge.s32.totalorder %s25_s26, 8  ;;  %p1841_p1 = scmp.ge.s32.totalorder %s2090_s25, 1 }
   0x5   : > { %p288_p2 = scmp.lt.s32.totalorder %s2090_s25, 17 }
   0x6   : > { %s2642_s26 = smov (%p26_p0, %s25_s26), 0  ;;  %s2644_s27 = smov (!%p26_p0, %s28_s27), %s2086_s24 }
   0x7   : > { %p289_p3 = pnand %p1841_p1, %p288_p2  ;;  %p30_p4 = scmp.ge.s32.totalorder %s2644_s27, 2 }
   0x8   : > { %s1842_s28 = sadd.s32 (!%p289_p3), 4294967295, %s2074_s21  ;;  %p353_p5 = scmp.lt.s32.totalorder (!%p289_p3), %s2078_s22, 1 }
   0x9   : > { %s2646_s27 = smov (%p30_p4, %s2644_s27), 0  ;;  %292 = sbr.rel (%p289_p3) target bundleno = 682 (0x2aa), region = 44 }
   0xa   : > { %p351_p6 = scmp.gt.s32.totalorder (!%p289_p3), %s1842_s28, 0  ;;  %p1843_p7 = scmp.lt.s32.totalorder (!%p289_p3), %s1842_s28, 7 }
   0xb   : > { %p367_p8 = scmp.lt.s32.totalorder (!%p289_p3), %s2074_s21, 7  ;;  %s374_s10 = sadd.s32 (!%p289_p3), 1, %s2074_s21 }
   0xc   : > { %p2186_p9 = scmp.lt.s32.totalorder (!%p289_p3), %s374_s10, 7  ;;  %p399_p10 = scmp.gt.s32.totalorder (!%p289_p3), %s2074_s21, 0 }
   0xe   : > { %s2648_s22 = smov (!%p353_p5, %s2078_s22), 1  ;;  %s2650_s28 = smov (!%p351_p6, %s1842_s28), 0  ;;  %v1958_v60 = vld [vmem:[%s2629_s0] sm:$0xff]   ;;  %vm593_vm0 = vcmask 146432   ;;  %vm614_vm1 = vcmask 1040384   ;;  %vm598_vm2 = vcmask 15360  }
   0xf   : > { %s2171_s29 = smul.u32 40, %s2648_s22  ;;  %s2652_s28 = smov (!%p1843_p7, %s2650_s28), 7  ;;  %v1959_v62 = vunpack.c.l.bf16 %v1958_v60  ;;  %v1960_v63 = vunpack.c.h.bf16 %v1958_v60  ;;  %vm773_vm3 = vcmask 1039360   ;;  %vm795_vm4 = vcmask 1031168  }
  0x10   : > { %s368_s30 = scalar_select %p367_p8, %s2074_s21, 7  ;;  %vm817_vm5 = vcmask 908288   ;;  %vm839_vm6 = vcmask 900096   ;;  %vm861_vm7 = vcmask 891904   ;;  %vm883_vm8 = vcmask 769024  }
  0x11   : > { %s1996_s7 = smul.u32 5, %s2652_s28  ;;  %s2654_s10 = smov (!%p2186_p9, %s374_s10), 7  ;;  %vm905_vm9 = vcmask 760832   ;;  %vm927_vm10 = vcmask 752640  }
  0x12   : > { %s1998_s8 = smul.u32 5, %s368_s30  ;;  %s2656_s10 = smov (!%p2186_p9, %s2654_s10), 7 }
  0x13   : > { %s359_s9 = sadd.s32 %s2171_s29, %s1996_s7  ;;  %s1999_s22 = smul.u32 5, %s2656_s10 }
  0x14   : > { %s1848_s11 = sshll.u32 %s359_s9, 1  ;;  %s2180_s12 = sadd.s32 %s1998_s8, %s2171_s29 }
  0x15   : > { %s361_s15 = scalar_lea.vmem %s2632_s3, %s1848_s11  ;;  %s1849_s16 = sshll.u32 %s2180_s12, 1 }
  0x16   : > { %v461_v0 = vld [vmem:[%s361_s15 + $0x8] sm:$0x3]  ;;  %v460_v1 = vld [vmem:[%s361_s15] sm:$0xff]  ;;  %s373_s20 = scalar_lea.vmem %s2633_s4, %s1849_s16  ;;  %s383_s28 = sadd.s32 %s1999_s22, %s2171_s29 }
  0x17   : > { %466 = vst [vmem:[#allocation1 + $0x20] ss:$4 sm:$0xff] %v461_v0  ;;  %v491_v2 = vld [vmem:[%s373_s20 + $0x8] sm:$0x3]  ;;  %v490_v6 = vld [vmem:[%s373_s20] sm:$0xff]  ;;  %s1853_s30 = sshll.u32 %s383_s28, 1 }
  0x18   : > { %464 = vst [vmem:[#allocation1] ss:$4 sm:$0xff] %v460_v1  ;;  %s2092_s7 = smov 18   ;;  %s385_s11 = scalar_lea.vmem %s2634_s5, %s1853_s30 }
  0x19   : > { %v549_v18 = vld [vmem:[%s385_s11 + $0x8] sm:$0x3]  ;;  %v548_v24 = vld [vmem:[%s385_s11] sm:$0xff]  ;;  %s400_s29 = scalar_select %p399_p10, 1.0, 0.0 }
  0x1a   : > { %s2093_s9 = smov 127  }
  0x1b   : > { %s403_s10 = sshrl.u32 %s400_s29, 16  ;;  %p402_p11 = scmp.ne.f32.partialorder %s400_s29, %s400_s29 }
  0x1c   : > { %s404_s13 = sand.u32 1, %s403_s10 }
  0x1d   : > { %s405_s14 = sadd.s32 32767, %s404_s13 }
  0x1e   : > { %v471_v3 = vld.sshfl [vmem:[#allocation1 + $0x20] sm:$0xff pattern:$0x73625140]  ;;  %s406_s15 = sadd.s32 %s405_s14, %s400_s29  ;;  %s2099_s29 = smov 93  }
  0x1f   : > { %v479_v4 = vpack.c.bf16 %v471_v3, %v471_v3  ;;  %496 = vst [vmem:[#allocation1 + $0x20] ss:$4 sm:$0xff] %v491_v2  ;;  %v469_v5 = vld.sshfl [vmem:[#allocation1 + $0x10] sm:$0xff pattern:$0x73625140]  ;;  %s407_s16 = sand.u32 4294901760, %s406_s15 }
  0x20   : > { %v470_v7 = vld.sshfl [vmem:[#allocation1 + $0x18] sm:$0xff pattern:$0x73625140]  ;;  %v467_v10 = vld.sshfl [vmem:[#allocation1] sm:$0xff pattern:$0x73625140] }
  0x21   : > { %v577_v8 = vunpack.c.l.b16 %v479_v4  ;;  %v478_v9 = vpack.c.bf16 %v470_v7, %v469_v5  ;;  %v468_v11 = vld.sshfl [vmem:[#allocation1 + $0x8] sm:$0xff pattern:$0x73625140]  ;;  %s2658_s16 = smov (%p402_p11, %s407_s16), 2143289344 }
  0x22   : > { %494 = vst [vmem:[#allocation1] ss:$4 sm:$0xff] %v490_v6  ;;  %v477_v14 = vpack.c.bf16 %v468_v11, %v467_v10  ;;  %s410_s17 = sshrl.u32 %s2658_s16, 16  ;;  %s1854_s16 = sshll.u32 %s2180_s12, 3 }
  0x23   : > { %v582_v12 = vpack.c.b16 %v577_v8, %v577_v8  ;;  %v575_v13 = vunpack.c.l.b16 %v478_v9  ;;  %v576_v20 = vunpack.c.h.b16 %v478_v9  ;;  %s432_s18 = sshll.u32 %s410_s17, 16 }
  0x24   : > { %v573_v16 = vunpack.c.l.b16 %v477_v14  ;;  %v574_v19 = vunpack.c.h.b16 %v477_v14  ;;  %s433_s19 = sor.u32 %s432_s18, %s410_s17  ;;  %s2094_s17 = smov 126  }
  0x25   : > { %591 = vrot.lane.b32.xlu1 %v582_v12, %s2092_s7  ;;  %v580_v15 = vpack.c.b16 %v575_v13, %v575_v13  ;;  %v581_v27 = vpack.c.b16 %v576_v20, %v576_v20  ;;  %v434_v61 = vstv %s433_s19  ;;  %s412_s19 = scalar_select %p367_p8, 1.0, 0.0 }
  0x26   : > { %v501_v17 = vld.sshfl [vmem:[#allocation1 + $0x20] sm:$0xff pattern:$0x73625140]  ;;  %v579_v21 = vpack.c.b16 %v574_v19, %v574_v19  ;;  %v578_v22 = vpack.c.b16 %v573_v16, %v573_v16  ;;  %v2220_v0 = vunpack.c.l.bf16 %v434_v61  ;;  %s2095_s18 = smov 111  }
  0x27   : > { %587 = vrot.lane.b32.xlu0 %v580_v15, %s2092_s7  ;;  %554 = vst [vmem:[#allocation1 + $0x20] ss:$4 sm:$0xff] %v549_v18  ;;  %v509_v23 = vpack.c.bf16 %v501_v17, %v501_v17  ;;  %v1989_v15 = vld [vmem:[%s2629_s0 + $0x8] sm:$0xff]   ;;  %s415_s20 = sshrl.u32 %s412_s19, 16  ;;  %p414_p12 = scmp.ne.f32.partialorder %s412_s19, %s412_s19 }
  0x28   : > { %585 = vrot.lane.b32.xlu2 %v579_v21, %s2092_s7  ;;  %v446_v3 = vmul.f32 %v1959_v62, %v2220_v0  ;;  %v447_v4 = vmul.f32 %v1960_v63, %v2220_v0  ;;  %v1963_v19 = vunpack.c.l.bf16 %v1989_v15  ;;  %v1964_v20 = vunpack.c.h.bf16 %v1989_v15  ;;  %s416_s22 = sand.u32 1, %s415_s20 }
  0x29   : > { %v499_v25 = vld.sshfl [vmem:[#allocation1 + $0x10] sm:$0xff pattern:$0x73625140]  ;;  %v500_v26 = vld.sshfl [vmem:[#allocation1 + $0x18] sm:$0xff pattern:$0x73625140]  ;;  %v967_v31 = vunpack.c.l.b16 %v509_v23 }
  0x2a   : > { %v508_v28 = vpack.c.bf16 %v500_v26, %v499_v25  ;;  %v497_v29 = vld.sshfl [vmem:[#allocation1] sm:$0xff pattern:$0x73625140]  ;;  %v498_v30 = vld.sshfl [vmem:[#allocation1 + $0x8] sm:$0xff pattern:$0x73625140]  ;;  %v455_v8 = vpack.c.bf16 %v447_v4, %v446_v3  ;;  %v448_v23 = vmul.f32 %v1963_v19, %v2220_v0 }
  0x2b   : > { %552 = vst [vmem:[#allocation1] ss:$4 sm:$0xff] %v548_v24  ;;  %v507_v36 = vpack.c.bf16 %v498_v30, %v497_v29  ;;  %v972_v37 = vpack.c.b16 %v967_v31, %v967_v31  ;;  %v449_v24 = vmul.f32 %v1964_v20, %v2220_v0  ;;  %v1955_v3 = vld [vmem:[%s2629_s0 + $0x34] sm:$0xff]  ;;  %s417_s28 = sadd.s32 32767, %s416_s22  ;;  %s2096_s22 = smov 110  }
  0x2c   : > { %v965_v32 = vunpack.c.l.b16 %v508_v28  ;;  %v966_v33 = vunpack.c.h.b16 %v508_v28  ;;  %s418_s8 = sadd.s32 %s417_s28, %s412_s19  ;;  %s2581_s19 = scalar_lea.vmem %s2635_s6, %s1854_s16 }
  0x2d   : > { %583 = vrot.lane.b32.xlu1 %v578_v22, %s2092_s7  ;;  %v963_v39 = vunpack.c.l.b16 %v507_v36  ;;  %v964_v43 = vunpack.c.h.b16 %v507_v36  ;;  %v456_v29 = vpack.c.bf16 %v449_v24, %v448_v23  ;;  %s419_s21 = sand.u32 4294901760, %s418_s8  ;;  %s2098_s8 = smov 94  }
  0x2e   : > { %v970_v34 = vpack.c.b16 %v965_v32, %v965_v32  ;;  %v559_v35 = vld.sshfl [vmem:[#allocation1 + $0x20] sm:$0xff pattern:$0x73625140]  ;;  %v971_v40 = vpack.c.b16 %v966_v33, %v966_v33  ;;  %s2660_s21 = smov (%p414_p12, %s419_s21), 2143289344 }
  0x2f   : > { %589 = vrot.lane.b32.xlu0 %v581_v27, %s2092_s7  ;;  %v567_v38 = vpack.c.bf16 %v559_v35, %v559_v35  ;;  %v968_v42 = vpack.c.b16 %v963_v39, %v963_v39  ;;  %v969_v47 = vpack.c.b16 %v964_v43, %v964_v43  ;;  %s422_s10 = sshrl.u32 %s2660_s21, 16 }
  0x30   : > { %977 = vrot.lane.b32.xlu2 %v970_v34, %s2092_s7  ;;  %v1990_v34 = vld [vmem:[%s2629_s0 + $0x10] sm:$0xff]   ;;  %s520_s13 = sshll.u32 %s422_s10, 16 }
  0x31   : > { %v1323_v41 = vunpack.c.l.b16 %v567_v38  ;;  %v1968_v38 = vunpack.c.h.bf16 %v1990_v34  ;;  %s521_s14 = sor.u32 %s520_s13, %s422_s10  ;;  %s2100_s10 = smov 92  }
  0x32   : > { %v557_v44 = vld.sshfl [vmem:[#allocation1 + $0x10] sm:$0xff pattern:$0x73625140]  ;;  %v558_v45 = vld.sshfl [vmem:[#allocation1 + $0x18] sm:$0xff pattern:$0x73625140]  ;;  %v522_v15 = vstv %s521_s14 }
  0x33   : > { %v1328_v46 = vpack.c.b16 %v1323_v41, %v1323_v41  ;;  %v566_v48 = vpack.c.bf16 %v558_v45, %v557_v44  ;;  %v555_v50 = vld.sshfl [vmem:[#allocation1] sm:$0xff pattern:$0x73625140]  ;;  %v556_v51 = vld.sshfl [vmem:[#allocation1 + $0x8] sm:$0xff pattern:$0x73625140] }
  0x34   : > { %v565_v53 = vpack.c.bf16 %v556_v51, %v555_v50 }
  0x35   : > { %981 = vrot.lane.b32.xlu1 %v972_v37, %s2092_s7  ;;  %v1322_v49 = vunpack.c.h.b16 %v566_v48  ;;  %v1321_v56 = vunpack.c.l.b16 %v566_v48  ;;  %v1967_v37 = vunpack.c.l.bf16 %v1990_v34  ;;  %v431_v48 = vld [vmem:[%s2629_s0 + $0x20] sm:$0xf] }
  0x36   : > { %v1320_v54 = vunpack.c.h.b16 %v565_v53  ;;  %v1319_v58 = vunpack.c.l.b16 %v565_v53 }
  0x37   : > { %979 = vrot.lane.b32.xlu0 %v971_v40, %s2092_s7  ;;  %v1327_v52 = vpack.c.b16 %v1322_v49, %v1322_v49  ;;  %v1326_v57 = vpack.c.b16 %v1321_v56, %v1321_v56  ;;  %v450_v39 = vmul.f32 %v1967_v37, %v2220_v0  ;;  %v451_v40 = vmul.f32 %v1968_v38, %v2220_v0 }
  0x38   : > { %973 = vrot.lane.b32.xlu2 %v968_v42, %s2092_s7  ;;  %v1325_v55 = vpack.c.b16 %v1320_v54, %v1320_v54  ;;  %v1324_v59 = vpack.c.b16 %v1319_v58, %v1319_v58  ;;  %v1991_v42 = vld [vmem:[%s2629_s0 + $0x18] sm:$0xff]   ;;  %v444_v49 = vunpack.c.l.bf16 %v431_v48 }
  0x39   : > { %v457_v41 = vpack.c.bf16 %v451_v40, %v450_v39  ;;  %v1971_v43 = vunpack.c.l.bf16 %v1991_v42  ;;  %v1972_v44 = vunpack.c.h.bf16 %v1991_v42 }
  0x3a   : > { %v454_v53 = vmul.f32 %v2220_v0, %v444_v49 }
  0x3b   : > { %v452_v45 = vmul.f32 %v1971_v43, %v2220_v0 }
  0x3d   : > { %1337 = vrot.lane.b32.xlu1 %v1328_v46, %s2092_s7  ;;  %v453_v46 = vmul.f32 %v1972_v44, %v2220_v0 }
  0x3f   : > { %975 = vrot.lane.b32.xlu0 %v969_v47, %s2092_s7  ;;  %v458_v47 = vpack.c.bf16 %v453_v46, %v452_v45 }
  0x40   : > { %1333 = vrot.lane.b32.xlu2 %v1326_v57, %s2092_s7 }
  0x47   : > { %1335 = vrot.lane.b32.xlu0 %v1327_v52, %s2092_s7 }
  0x48   : > { %1329 = vrot.lane.b32.xlu2 %v1324_v59, %s2092_s7 }
  0x4f   : > { %1331 = vrot.lane.b32.xlu0 %v1325_v55, %s2092_s7  ;;  %v459_v55 = vpack.c.bf16 %v454_v53, %v454_v53  ;;  %s2097_s7 = smov 109  }
  0x82   : > { %v586_v2 = vpop.permute.xlu2 %585 }
  0x8a   : > { %v978_v18 = vpop.permute.xlu2 %977 }
  0x92   : > { %v974_v30 = vpop.permute.xlu2 %973 }
  0x97   : > { %v592_v1 = vpop.permute.xlu1 %591 }
  0x99   : > { %v588_v5 = vpop.permute.xlu0 %587 }
  0x9a   : > { %v595_v6 = vsel %vm593_vm0, %v586_v2, %v588_v5  ;;  %v1334_v57 = vpop.permute.xlu2 %1333 }
  0x9b   : > { %v619_v7 = vsel %vm614_vm1, %v595_v6, 0 }
  0x9c   : > { %667 = vmatpush.bf16.msra.mxu1 %v619_v7 }
  0x9f   : > { %v584_v9 = vpop.permute.xlu1 %583  ;;  %1878 = vmatmul.msk.bf16.vlgmr.msra.gmra.mxu1 %vm598_vm2, %v455_v8 }
  0xa0   : > { %v594_v10 = vsel %vm593_vm0, %v584_v9, %v586_v2  ;;  %v1954_v2 = vld [vmem:[%s2629_s0 + $0x2c] sm:$0xff] }
  0xa1   : > { %v590_v11 = vpop.permute.xlu0 %589  ;;  %v616_v12 = vsel %vm614_vm1, %v594_v10, 0 }
  0xa2   : > { %v596_v13 = vsel %vm593_vm0, %v588_v5, %v590_v11  ;;  %v597_v14 = vsel %vm593_vm0, %v590_v11, %v592_v1  ;;  %634 = vmatpush.bf16.msra.mxu0 %v616_v12  ;;  %v1330_v62 = vpop.permute.xlu2 %1329  ;;  %v1953_v1 = vld [vmem:[%s2629_s0 + $0x24] sm:$0xff]  ;;  %v1956_v5 = vld [vmem:[%s2629_s0 + $0x3c] sm:$0xff] }
  0xa3   : > { %v622_v16 = vsel %vm614_vm1, %v596_v13, 0  ;;  %v625_v17 = vsel %vm614_vm1, %v597_v14, 0 }
  0xa4   : > { %700 = vmatpush.bf16.msra.mxu2 %v622_v16  ;;  %733 = vmatpush.bf16.msra.mxu3 %v625_v17 }
  0xa5   : > { %1873 = vmatmul.msk.bf16.vlgmr.msra.gmra.mxu0 %vm598_vm2, %v455_v8 }
  0xa7   : > { %1883 = vmatmul.msk.bf16.vlgmr.msra.gmra.mxu2 %vm598_vm2, %v455_v8  ;;  %1888 = vmatmul.msk.bf16.vlgmr.msra.gmra.mxu3 %vm598_vm2, %v455_v8  ;;  %v982_v21 = vpop.permute.xlu1 %981  ;;  %v1863_v8 = vld [vmem:[%s2629_s0 + $0x44] sm:$0xf] }
  0xa8   : > { %v954_v9 = vunpack.c.l.b16 %v1863_v8 }
  0xa9   : > { %v980_v22 = vpop.permute.xlu0 %979 }
  0xaa   : > { %v985_v25 = vsel %vm593_vm0, %v978_v18, %v980_v22  ;;  %v986_v26 = vsel %vm593_vm0, %v980_v22, %v982_v21  ;;  %v959_v14 = vpack.c.b16 %v954_v9, %v954_v9  ;;  %v2335_v21 = vunpack.c.l.bf16 %v522_v15 }
  0xab   : > { %v1009_v27 = vsel %vm614_vm1, %v985_v25, 0  ;;  %v1012_v28 = vsel %vm614_vm1, %v986_v26, 0 }
  0xac   : > { %1087 = vmatpush.bf16.msrb.mxu2 %v1009_v27  ;;  %1120 = vmatpush.bf16.msrb.mxu3 %v1012_v28 }
  0xaf   : > { %1879 = vmatmul.msk.bf16.gmra.mxu1 %vm598_vm2, %v456_v29  ;;  %v1338_v51 = vpop.permute.xlu1 %1337 }
  0xb1   : > { %v976_v31 = vpop.permute.xlu0 %975 }
  0xb2   : > { %v983_v32 = vsel %vm593_vm0, %v974_v30, %v976_v31  ;;  %v984_v33 = vsel %vm593_vm0, %v976_v31, %v978_v18  ;;  %v1992_v18 = vld [vmem:[%s2629_s0 + $0x48] sm:$0xff]  }
  0xb3   : > { %v1003_v35 = vsel %vm614_vm1, %v983_v32, 0  ;;  %v1006_v36 = vsel %vm614_vm1, %v984_v33, 0  ;;  %v1975_v22 = vunpack.c.l.bf16 %v1992_v18  ;;  %v1976_v23 = vunpack.c.h.bf16 %v1992_v18  ;;  %v1993_v33 = vld [vmem:[%s2629_s0 + $0x50] sm:$0xff]   ;;  %v1872_v18 = vld [vmem:[%s2629_s0 + $0x68] sm:$0xf] }
  0xb4   : > { %1021 = vmatpush.bf16.msrb.mxu0 %v1003_v35  ;;  %1054 = vmatpush.bf16.msrb.mxu1 %v1006_v36  ;;  %v1979_v36 = vunpack.c.l.bf16 %v1993_v33  ;;  %v1980_v37 = vunpack.c.h.bf16 %v1993_v33 }
  0xb5   : > { %1874 = vmatmul.msk.bf16.gmra.mxu0 %vm598_vm2, %v456_v29  ;;  %v534_v24 = vmul.f32 %v1975_v22, %v2335_v21  ;;  %v535_v25 = vmul.f32 %v1976_v23, %v2335_v21 }
  0xb6   : > { %v536_v38 = vmul.f32 %v1979_v36, %v2335_v21  ;;  %v537_v39 = vmul.f32 %v1980_v37, %v2335_v21 }
  0xb7   : > { %1884 = vmatmul.msk.bf16.gmra.mxu2 %vm598_vm2, %v456_v29  ;;  %1889 = vmatmul.msk.bf16.gmra.mxu3 %vm598_vm2, %v456_v29  ;;  %v543_v30 = vpack.c.bf16 %v535_v25, %v534_v24 }
  0xb8   : > { %v544_v44 = vpack.c.bf16 %v537_v39, %v536_v38 }
  0xb9   : > { %v1336_v50 = vpop.permute.xlu0 %1335 }
  0xba   : > { %v1342_v52 = vsel %vm593_vm0, %v1336_v50, %v1338_v51  ;;  %v1341_v59 = vsel %vm593_vm0, %v1334_v57, %v1336_v50 }
  0xbb   : > { %v1368_v54 = vsel %vm614_vm1, %v1342_v52, 0  ;;  %v1365_v61 = vsel %vm614_vm1, %v1341_v59, 0 }
  0xbc   : > { %1476 = vmatpush.bf16.msra.mxu3 %v1368_v54  ;;  %1443 = vmatpush.bf16.msra.mxu2 %v1365_v61  ;;  %v1995_v61 = vld [vmem:[%s2629_s0 + $0x60] sm:$0xff]  }
  0xbf   : > { %1880 = vmatmul.msk.bf16.gmra.mxu1 %vm598_vm2, %v457_v41 }
  0xc1   : > { %v1332_v56 = vpop.permute.xlu0 %1331 }
  0xc2   : > { %v1340_v58 = vsel %vm593_vm0, %v1332_v56, %v1334_v57  ;;  %v1339_v63 = vsel %vm593_vm0, %v1330_v62, %v1332_v56 }
  0xc3   : > { %v1362_v60 = vsel %vm614_vm1, %v1340_v58, 0  ;;  %v1359_v0 = vsel %vm614_vm1, %v1339_v63, 0 }
  0xc4   : > { %1410 = vmatpush.bf16.msra.mxu1 %v1362_v60  ;;  %1377 = vmatpush.bf16.msra.mxu0 %v1359_v0  ;;  %v1987_v0 = vunpack.c.l.bf16 %v1995_v61 }
  0xc5   : > { %1875 = vmatmul.msk.bf16.gmra.mxu0 %vm598_vm2, %v457_v41 }
  0xc7   : > { %1885 = vmatmul.msk.bf16.gmra.mxu2 %vm598_vm2, %v457_v41  ;;  %1890 = vmatmul.msk.bf16.gmra.mxu3 %vm598_vm2, %v457_v41 }
  0xcf   : > { %1881 = vmatmul.msk.bf16.gmra.mxu1 %vm598_vm2, %v458_v47 }
  0xd5   : > { %1876 = vmatmul.msk.bf16.gmra.mxu0 %vm598_vm2, %v458_v47 }
  0xd7   : > { %1886 = vmatmul.msk.bf16.gmra.mxu2 %vm598_vm2, %v458_v47  ;;  %1891 = vmatmul.msk.bf16.gmra.mxu3 %vm598_vm2, %v458_v47  ;;  %v1994_v47 = vld [vmem:[%s2629_s0 + $0x58] sm:$0xff]  }
  0xd8   : > { %v1983_v50 = vunpack.c.l.bf16 %v1994_v47  ;;  %v1984_v51 = vunpack.c.h.bf16 %v1994_v47 }
  0xda   : > { %v538_v52 = vmul.f32 %v1983_v50, %v2335_v21  ;;  %v539_v53 = vmul.f32 %v1984_v51, %v2335_v21 }
  0xdc   : > { %v545_v58 = vpack.c.bf16 %v539_v53, %v538_v52 }
  0xdf   : > { %1882 = vmatmul.msk.bf16.gmra.mxu1 %vm598_vm2, %v459_v55 }
  0xe5   : > { %1877 = vmatmul.msk.bf16.gmra.mxu0 %vm598_vm2, %v459_v55 }
  0xe7   : > { %1887 = vmatmul.msk.bf16.gmra.mxu2 %vm598_vm2, %v459_v55  ;;  %1892 = vmatmul.msk.bf16.gmra.mxu3 %vm598_vm2, %v459_v55 }
  0xef   : > { %1914 = vmatmul.msk.bf16.vlgmr.msrb.gmra.mxu1 %vm598_vm2, %v1953_v1 }
  0xf5   : > { %1909 = vmatmul.msk.bf16.vlgmr.msrb.gmra.mxu0 %vm598_vm2, %v1953_v1 }
  0xf7   : > { %1919 = vmatmul.msk.bf16.vlgmr.msrb.gmra.mxu2 %vm598_vm2, %v1953_v1  ;;  %1924 = vmatmul.msk.bf16.vlgmr.msrb.gmra.mxu3 %vm598_vm2, %v1953_v1  ;;  %v1988_v1 = vunpack.c.h.bf16 %v1995_v61 }
  0xff   : > { %1915 = vmatmul.msk.bf16.gmra.mxu1 %vm598_vm2, %v1954_v2 }
 0x105   : > { %1910 = vmatmul.msk.bf16.gmra.mxu0 %vm598_vm2, %v1954_v2 }
 0x107   : > { %1920 = vmatmul.msk.bf16.gmra.mxu2 %vm598_vm2, %v1954_v2  ;;  %1925 = vmatmul.msk.bf16.gmra.mxu3 %vm598_vm2, %v1954_v2  ;;  %v540_v2 = vmul.f32 %v1987_v0, %v2335_v21 }
 0x10f   : > { %1916 = vmatmul.msk.bf16.gmra.mxu1 %vm598_vm2, %v1955_v3 }
 0x115   : > { %1911 = vmatmul.msk.bf16.gmra.mxu0 %vm598_vm2, %v1955_v3 }
 0x117   : > { %1921 = vmatmul.msk.bf16.gmra.mxu2 %vm598_vm2, %v1955_v3  ;;  %1926 = vmatmul.msk.bf16.gmra.mxu3 %vm598_vm2, %v1955_v3  ;;  %v541_v3 = vmul.f32 %v1988_v1, %v2335_v21 }
 0x11c   : > { %v2310_v4 = vpop.f32.mrf.mxu1 }
 0x11f   : > { %1917 = vmatmul.msk.bf16.gmra.mxu1 %vm598_vm2, %v1956_v5 }
 0x122   : > { %v2316_v6 = vpop.f32.mrf.mxu0 }
 0x124   : > { %v671_v7 = vpop.f32.mrf.mxu1 }
 0x125   : > { %767 = vrot.lane.b32.xlu2 %v671_v7, %s2093_s9  ;;  %1912 = vmatmul.msk.bf16.gmra.mxu0 %vm598_vm2, %v1956_v5 }
 0x127   : > { %1922 = vmatmul.msk.bf16.gmra.mxu2 %vm598_vm2, %v1956_v5  ;;  %1927 = vmatmul.msk.bf16.gmra.mxu3 %vm598_vm2, %v1956_v5 }
 0x12a   : > { %v2325_v10 = vpop.f32.mrf.mxu2  ;;  %v735_v11 = vpop.f32.mrf.mxu3 }
 0x12b   : > { %v638_v12 = vpop.f32.mrf.mxu0  ;;  %v546_v11 = vpack.c.bf16 %v541_v3, %v540_v2 }
 0x12c   : > { %765 = vrot.lane.b32.xlu1 %v638_v12, %s2093_s9  ;;  %v674_v13 = vpop.f32.mrf.mxu1 }
 0x12f   : > { %1918 = vmatmul.msk.bf16.gmra.mxu1 %vm598_vm2, %v959_v14 }
 0x132   : > { %v704_v16 = vpop.f32.mrf.mxu2  ;;  %v736_v17 = vpop.f32.mrf.mxu3 }
 0x133   : > { %769 = vrot.lane.b32.xlu0 %v704_v16, %s2093_s9  ;;  %v641_v19 = vpop.f32.mrf.mxu0 }
 0x134   : > { %771 = vrot.lane.b32.xlu1 %v736_v17, %s2093_s9  ;;  %787 = vrot.lane.b32.xlu2 %v641_v19, %s2094_s17  ;;  %v676_v20 = vpop.f32.mrf.mxu1 }
 0x135   : > { %1913 = vmatmul.msk.bf16.gmra.mxu0 %vm598_vm2, %v959_v14 }
 0x137   : > { %1923 = vmatmul.msk.bf16.gmra.mxu2 %vm598_vm2, %v959_v14  ;;  %1928 = vmatmul.msk.bf16.gmra.mxu3 %vm598_vm2, %v959_v14 }
 0x13a   : > { %v707_v26 = vpop.f32.mrf.mxu2  ;;  %v739_v27 = vpop.f32.mrf.mxu3 }
 0x13b   : > { %789 = vrot.lane.b32.xlu0 %v674_v13, %s2094_s17  ;;  %v643_v28 = vpop.f32.mrf.mxu0 }
 0x13c   : > { %791 = vrot.lane.b32.xlu1 %v707_v26, %s2094_s17  ;;  %809 = vrot.lane.b32.xlu2 %v643_v28, %s2095_s18  ;;  %v679_v29 = vpop.f32.mrf.mxu1 }
 0x13f   : > { %1934 = vmatmul.msk.bf16.vlgmr.msra.gmra.mxu1 %vm598_vm2, %v543_v30 }
 0x142   : > { %v709_v31 = vpop.f32.mrf.mxu2  ;;  %v741_v32 = vpop.f32.mrf.mxu3 }
 0x143   : > { %811 = vrot.lane.b32.xlu0 %v676_v20, %s2095_s18  ;;  %v646_v34 = vpop.f32.mrf.mxu0  ;;  %v532_v20 = vunpack.c.l.bf16 %v1872_v18 }
 0x144   : > { %793 = vrot.lane.b32.xlu1 %v739_v27, %s2094_s17  ;;  %815 = vrot.lane.b32.xlu2 %v741_v32, %s2095_s18  ;;  %v681_v35 = vpop.f32.mrf.mxu1 }
 0x145   : > { %1929 = vmatmul.msk.bf16.vlgmr.msra.gmra.mxu0 %vm598_vm2, %v543_v30  ;;  %v542_v23 = vmul.f32 %v2335_v21, %v532_v20 }
 0x147   : > { %1939 = vmatmul.msk.bf16.vlgmr.msra.gmra.mxu2 %vm598_vm2, %v543_v30  ;;  %1944 = vmatmul.msk.bf16.vlgmr.msra.gmra.mxu3 %vm598_vm2, %v543_v30  ;;  %v547_v24 = vpack.c.bf16 %v542_v23, %v542_v23 }
 0x14a   : > { %v712_v40 = vpop.f32.mrf.mxu2  ;;  %v744_v41 = vpop.f32.mrf.mxu3 }
 0x14b   : > { %831 = vrot.lane.b32.xlu0 %v646_v34, %s2096_s22  ;;  %v648_v42 = vpop.f32.mrf.mxu0 }
 0x14c   : > { %813 = vrot.lane.b32.xlu1 %v709_v31, %s2095_s18  ;;  %835 = vrot.lane.b32.xlu2 %v712_v40, %s2096_s22  ;;  %v684_v43 = vpop.f32.mrf.mxu1 }
 0x14f   : > { %1935 = vmatmul.msk.bf16.gmra.mxu1 %vm598_vm2, %v544_v44 }
 0x152   : > { %v714_v45 = vpop.f32.mrf.mxu2  ;;  %v746_v46 = vpop.f32.mrf.mxu3 }
 0x153   : > { %837 = vrot.lane.b32.xlu0 %v744_v41, %s2096_s22  ;;  %v651_v48 = vpop.f32.mrf.mxu0 }
 0x154   : > { %833 = vrot.lane.b32.xlu1 %v679_v29, %s2096_s22  ;;  %855 = vrot.lane.b32.xlu2 %v681_v35, %s2097_s7  ;;  %v686_v49 = vpop.f32.mrf.mxu1 }
 0x155   : > { %1930 = vmatmul.msk.bf16.gmra.mxu0 %vm598_vm2, %v544_v44 }
 0x157   : > { %1940 = vmatmul.msk.bf16.gmra.mxu2 %vm598_vm2, %v544_v44  ;;  %1945 = vmatmul.msk.bf16.gmra.mxu3 %vm598_vm2, %v544_v44 }
 0x15a   : > { %v717_v54 = vpop.f32.mrf.mxu2  ;;  %v749_v55 = vpop.f32.mrf.mxu3 }
 0x15b   : > { %857 = vrot.lane.b32.xlu0 %v714_v45, %s2097_s7  ;;  %v653_v56 = vpop.f32.mrf.mxu0 }
 0x15c   : > { %853 = vrot.lane.b32.xlu1 %v648_v42, %s2097_s7  ;;  %875 = vrot.lane.b32.xlu2 %v651_v48, %s2098_s8  ;;  %v689_v57 = vpop.f32.mrf.mxu1 }
 0x15f   : > { %1936 = vmatmul.msk.bf16.gmra.mxu1 %vm598_vm2, %v545_v58 }
 0x162   : > { %v719_v59 = vpop.f32.mrf.mxu2  ;;  %v751_v60 = vpop.f32.mrf.mxu3 }
 0x163   : > { %877 = vrot.lane.b32.xlu0 %v684_v43, %s2098_s8  ;;  %v656_v62 = vpop.f32.mrf.mxu0 }
 0x164   : > { %859 = vrot.lane.b32.xlu1 %v746_v46, %s2097_s7  ;;  %881 = vrot.lane.b32.xlu2 %v749_v55, %s2098_s8  ;;  %v691_v63 = vpop.f32.mrf.mxu1 }
 0x165   : > { %1931 = vmatmul.msk.bf16.gmra.mxu0 %vm598_vm2, %v545_v58 }
 0x167   : > { %1941 = vmatmul.msk.bf16.gmra.mxu2 %vm598_vm2, %v545_v58  ;;  %1946 = vmatmul.msk.bf16.gmra.mxu3 %vm598_vm2, %v545_v58 }
 0x16a   : > { %v722_v5 = vpop.f32.mrf.mxu2  ;;  %v754_v7 = vpop.f32.mrf.mxu3 }
 0x16b   : > { %897 = vrot.lane.b32.xlu0 %v653_v56, %s2099_s29  ;;  %v658_v8 = vpop.f32.mrf.mxu0 }
 0x16c   : > { %879 = vrot.lane.b32.xlu1 %v717_v54, %s2098_s8  ;;  %901 = vrot.lane.b32.xlu2 %v719_v59, %s2099_s29  ;;  %v2390_v9 = vpop.f32.mrf.mxu1 }
 0x16f   : > { %1937 = vmatmul.msk.bf16.gmra.mxu1 %vm598_vm2, %v546_v11 }
 0x172   : > { %v724_v12 = vpop.f32.mrf.mxu2  ;;  %v756_v13 = vpop.f32.mrf.mxu3 }
 0x173   : > { %903 = vrot.lane.b32.xlu0 %v751_v60, %s2099_s29  ;;  %v2394_v14 = vpop.f32.mrf.mxu0 }
 0x174   : > { %899 = vrot.lane.b32.xlu1 %v686_v49, %s2099_s29  ;;  %921 = vrot.lane.b32.xlu2 %v689_v57, %s2100_s10  ;;  %v1058_v15 = vpop.f32.mrf.mxu1 }
 0x175   : > { %1932 = vmatmul.msk.bf16.gmra.mxu0 %vm598_vm2, %v546_v11 }
 0x177   : > { %1942 = vmatmul.msk.bf16.gmra.mxu2 %vm598_vm2, %v546_v11  ;;  %1947 = vmatmul.msk.bf16.gmra.mxu3 %vm598_vm2, %v546_v11 }
 0x17a   : > { %v2401_v16 = vpop.f32.mrf.mxu2  ;;  %v1122_v17 = vpop.f32.mrf.mxu3 }
 0x17b   : > { %923 = vrot.lane.b32.xlu0 %v722_v5, %s2100_s10  ;;  %v1025_v19 = vpop.f32.mrf.mxu0 }
 0x17c   : > { %919 = vrot.lane.b32.xlu1 %v656_v62, %s2100_s10  ;;  %1152 = vrot.lane.b32.xlu2 %v1025_v19, %s2093_s9  ;;  %v1061_v22 = vpop.f32.mrf.mxu1 }
 0x17f   : > { %1938 = vmatmul.msk.bf16.gmra.mxu1 %vm598_vm2, %v547_v24  ;;  %v768_v28 = vpop.permute.xlu2 %767 }
 0x182   : > { %v1091_v25 = vpop.f32.mrf.mxu2  ;;  %v1123_v26 = vpop.f32.mrf.mxu3 }
 0x183   : > { %1154 = vrot.lane.b32.xlu0 %v1058_v15, %s2093_s9  ;;  %v1028_v27 = vpop.f32.mrf.mxu0 }
 0x184   : > { %925 = vrot.lane.b32.xlu1 %v754_v7, %s2100_s10  ;;  %1158 = vrot.lane.b32.xlu2 %v1123_v26, %s2093_s9  ;;  %v1063_v29 = vpop.f32.mrf.mxu1 }
 0x185   : > { %1933 = vmatmul.msk.bf16.gmra.mxu0 %vm598_vm2, %v547_v24 }
 0x187   : > { %1943 = vmatmul.msk.bf16.gmra.mxu2 %vm598_vm2, %v547_v24  ;;  %1948 = vmatmul.msk.bf16.gmra.mxu3 %vm598_vm2, %v547_v24 }
 0x18a   : > { %v1094_v21 = vpop.f32.mrf.mxu2  ;;  %v1126_v30 = vpop.f32.mrf.mxu3 }
 0x18b   : > { %1173 = vrot.lane.b32.xlu0 %v1028_v27, %s2094_s17  ;;  %v1030_v31 = vpop.f32.mrf.mxu0 }
 0x18c   : > { %1156 = vrot.lane.b32.xlu1 %v1091_v25, %s2093_s9  ;;  %1177 = vrot.lane.b32.xlu2 %v1094_v21, %s2094_s17  ;;  %v1066_v32 = vpop.f32.mrf.mxu1 }
 0x18e   : > { %v788_v33 = vpop.permute.xlu2 %787 }
 0x192   : > { %v1096_v34 = vpop.f32.mrf.mxu2  ;;  %v1128_v35 = vpop.f32.mrf.mxu3 }
 0x193   : > { %1179 = vrot.lane.b32.xlu0 %v1126_v30, %s2094_s17  ;;  %v1033_v36 = vpop.f32.mrf.mxu0 }
 0x194   : > { %1175 = vrot.lane.b32.xlu1 %v1061_v22, %s2094_s17  ;;  %1196 = vrot.lane.b32.xlu2 %v1063_v29, %s2095_s18  ;;  %v1068_v37 = vpop.f32.mrf.mxu1 }
 0x196   : > { %v810_v38 = vpop.permute.xlu2 %809 }
 0x19a   : > { %v1099_v39 = vpop.f32.mrf.mxu2  ;;  %v1131_v40 = vpop.f32.mrf.mxu3 }
 0x19b   : > { %1198 = vrot.lane.b32.xlu0 %v1096_v34, %s2095_s18  ;;  %v1035_v41 = vpop.f32.mrf.mxu0 }
 0x19c   : > { %1194 = vrot.lane.b32.xlu1 %v1030_v31, %s2095_s18  ;;  %1215 = vrot.lane.b32.xlu2 %v1033_v36, %s2096_s22  ;;  %v1071_v42 = vpop.f32.mrf.mxu1 }
 0x19e   : > { %v816_v43 = vpop.permute.xlu2 %815  ;;  %v766_v44 = vpop.permute.xlu1 %765 }
 0x19f   : > { %v774_v45 = vsel %vm773_vm3, %v766_v44, %v768_v28 }
 0x1a0   : > { %v780_v59 = vadd.f32 %v774_v45, %v2316_v6 }
 0x1a2   : > { %v1101_v46 = vpop.f32.mrf.mxu2  ;;  %v1133_v47 = vpop.f32.mrf.mxu3 }
 0x1a3   : > { %1217 = vrot.lane.b32.xlu0 %v1066_v32, %s2096_s22  ;;  %v1038_v48 = vpop.f32.mrf.mxu0 }
 0x1a4   : > { %1200 = vrot.lane.b32.xlu1 %v1128_v35, %s2095_s18  ;;  %1221 = vrot.lane.b32.xlu2 %v1131_v40, %s2096_s22  ;;  %v1073_v49 = vpop.f32.mrf.mxu1 }
 0x1a5   : > { %v770_v50 = vpop.permute.xlu0 %769 }
 0x1a6   : > { %v775_v51 = vsel %vm773_vm3, %v768_v28, %v770_v50  ;;  %v2431_v52 = vpop.permute.xlu2 %835  ;;  %v772_v53 = vpop.permute.xlu1 %771 }
 0x1a7   : > { %v776_v54 = vsel %vm773_vm3, %v770_v50, %v772_v53  ;;  %v781_v61 = vadd.f32 %v775_v51, %v2310_v4 }
 0x1a8   : > { %v782_v11 = vadd.f32 %v776_v54, %v2325_v10 }
 0x1aa   : > { %v1104_v55 = vpop.f32.mrf.mxu2  ;;  %v1136_v56 = vpop.f32.mrf.mxu3 }
 0x1ab   : > { %1236 = vrot.lane.b32.xlu0 %v1035_v41, %s2097_s7  ;;  %v1040_v57 = vpop.f32.mrf.mxu0 }
 0x1ac   : > { %1219 = vrot.lane.b32.xlu1 %v1099_v39, %s2096_s22  ;;  %1240 = vrot.lane.b32.xlu2 %v1101_v46, %s2097_s7  ;;  %v2437_v58 = vpop.f32.mrf.mxu1 }
 0x1ad   : > { %v790_v60 = vpop.permute.xlu0 %789 }
 0x1ae   : > { %v796_v62 = vsel %vm795_vm4, %v788_v33, %v790_v60  ;;  %v2442_v63 = vpop.permute.xlu2 %855  ;;  %v792_v0 = vpop.permute.xlu1 %791 }
 0x1af   : > { %v802_v1 = vadd.f32 %v796_v62, %v780_v59  ;;  %v797_v2 = vsel %vm795_vm4, %v790_v60, %v792_v0 }
 0x1b0   : > { %v803_v3 = vadd.f32 %v797_v2, %v781_v61 }
 0x1b2   : > { %v1106_v5 = vpop.f32.mrf.mxu2  ;;  %v1138_v7 = vpop.f32.mrf.mxu3 }
 0x1b3   : > { %1242 = vrot.lane.b32.xlu0 %v1133_v47, %s2097_s7  ;;  %v1043_v8 = vpop.f32.mrf.mxu0 }
 0x1b4   : > { %1238 = vrot.lane.b32.xlu1 %v1068_v37, %s2097_s7  ;;  %1259 = vrot.lane.b32.xlu2 %v1071_v42, %s2098_s8  ;;  %v1078_v4 = vpop.f32.mrf.mxu1 }
 0x1b5   : > { %v812_v6 = vpop.permute.xlu0 %811 }
 0x1b6   : > { %v818_v12 = vsel %vm817_vm5, %v810_v38, %v812_v6  ;;  %v876_v13 = vpop.permute.xlu2 %875  ;;  %v794_v15 = vpop.permute.xlu1 %793 }
 0x1b7   : > { %v824_v17 = vadd.f32 %v818_v12, %v802_v1  ;;  %v798_v18 = vsel %vm795_vm4, %v792_v0, %v794_v15 }
 0x1b8   : > { %v804_v19 = vadd.f32 %v798_v18, %v782_v11 }
 0x1ba   : > { %v1109_v20 = vpop.f32.mrf.mxu2  ;;  %v1141_v22 = vpop.f32.mrf.mxu3 }
 0x1bb   : > { %1261 = vrot.lane.b32.xlu0 %v1104_v55, %s2098_s8  ;;  %v1045_v23 = vpop.f32.mrf.mxu0 }
 0x1bc   : > { %1257 = vrot.lane.b32.xlu1 %v1038_v48, %s2098_s8  ;;  %1278 = vrot.lane.b32.xlu2 %v1040_v57, %s2099_s29  ;;  %v2454_v24 = vpop.f32.mrf.mxu1 }
 0x1bd   : > { %v832_v10 = vpop.permute.xlu0 %831 }
 0x1be   : > { %v2456_v25 = vpop.permute.xlu2 %881  ;;  %v814_v26 = vpop.permute.xlu1 %813 }
 0x1bf   : > { %v819_v27 = vsel %vm817_vm5, %v812_v6, %v814_v26  ;;  %v820_v28 = vsel %vm817_vm5, %v814_v26, %v816_v43 }
 0x1c0   : > { %v825_v29 = vadd.f32 %v819_v27, %v803_v3  ;;  %v826_v21 = vadd.f32 %v820_v28, %v804_v19 }
 0x1c2   : > { %v1111_v30 = vpop.f32.mrf.mxu2  ;;  %v1143_v31 = vpop.f32.mrf.mxu3 }
 0x1c3   : > { %1280 = vrot.lane.b32.xlu0 %v1073_v49, %s2099_s29  ;;  %v2463_v34 = vpop.f32.mrf.mxu0 }
 0x1c4   : > { %1263 = vrot.lane.b32.xlu1 %v1136_v56, %s2098_s8  ;;  %1284 = vrot.lane.b32.xlu2 %v1138_v7, %s2099_s29  ;;  %v1414_v32 = vpop.f32.mrf.mxu1 }
 0x1c5   : > { %v838_v33 = vpop.permute.xlu0 %837 }
 0x1c6   : > { %v842_v35 = vsel %vm839_vm6, %v2431_v52, %v838_v33  ;;  %v2467_v36 = vpop.permute.xlu2 %901  ;;  %v834_v37 = vpop.permute.xlu1 %833 }
 0x1c7   : > { %v848_v38 = vadd.f32 %v842_v35, %v826_v21  ;;  %v840_v39 = vsel %vm839_vm6, %v832_v10, %v834_v37  ;;  %v841_v40 = vsel %vm839_vm6, %v834_v37, %v2431_v52 }
 0x1c8   : > { %v846_v41 = vadd.f32 %v840_v39, %v824_v17  ;;  %v847_v42 = vadd.f32 %v841_v40, %v825_v29 }
 0x1ca   : > { %v2472_v43 = vpop.f32.mrf.mxu2  ;;  %v1478_v44 = vpop.f32.mrf.mxu3 }
 0x1cb   : > { %1299 = vrot.lane.b32.xlu0 %v1043_v8, %s2100_s10  ;;  %v1381_v52 = vpop.f32.mrf.mxu0 }
 0x1cc   : > { %1282 = vrot.lane.b32.xlu1 %v1106_v5, %s2099_s29  ;;  %1303 = vrot.lane.b32.xlu2 %v1109_v20, %s2100_s10  ;;  %v1417_v45 = vpop.f32.mrf.mxu1 }
 0x1cd   : > { %v858_v46 = vpop.permute.xlu0 %857 }
 0x1ce   : > { %v863_v47 = vsel %vm861_vm7, %v2442_v63, %v858_v46  ;;  %v922_v48 = vpop.permute.xlu2 %921  ;;  %v854_v49 = vpop.permute.xlu1 %853 }
 0x1cf   : > { %v869_v50 = vadd.f32 %v863_v47, %v847_v42  ;;  %v862_v51 = vsel %vm861_vm7, %v854_v49, %v2442_v63 }
 0x1d0   : > { %v868_v53 = vadd.f32 %v862_v51, %v846_v41 }
 0x1d2   : > { %v1447_v54 = vpop.f32.mrf.mxu2  ;;  %v1479_v63 = vpop.f32.mrf.mxu3 }
 0x1d3   : > { %1305 = vrot.lane.b32.xlu0 %v1141_v22, %s2100_s10  ;;  %v1384_v1 = vpop.f32.mrf.mxu0 }
 0x1d4   : > { %1301 = vrot.lane.b32.xlu1 %v2437_v58, %s2100_s10  ;;  %1510 = vrot.lane.b32.xlu2 %v1414_v32, %s2093_s9  ;;  %v1419_v56 = vpop.f32.mrf.mxu1 }
 0x1d5   : > { %v878_v55 = vpop.permute.xlu0 %877 }
 0x1d6   : > { %v884_v57 = vsel %vm883_vm8, %v876_v13, %v878_v55  ;;  %v1153_v59 = vpop.permute.xlu2 %1152  ;;  %v860_v60 = vpop.permute.xlu1 %859 }
 0x1d7   : > { %v890_v61 = vadd.f32 %v884_v57, %v868_v53  ;;  %v864_v62 = vsel %vm861_vm7, %v858_v46, %v860_v60 }
 0x1d8   : > { %v870_v0 = vadd.f32 %v864_v62, %v848_v38 }
 0x1da   : > { %v1450_v2 = vpop.f32.mrf.mxu2  ;;  %v1482_v12 = vpop.f32.mrf.mxu3 }
 0x1db   : > { %1512 = vrot.lane.b32.xlu0 %v1447_v54, %s2093_s9 }
 0x1dc   : > { %1508 = vrot.lane.b32.xlu1 %v1381_v52, %s2093_s9  ;;  %1529 = vrot.lane.b32.xlu2 %v1384_v1, %s2094_s17  ;;  %v1422_v3 = vpop.f32.mrf.mxu1 }
 0x1dd   : > { %v898_v58 = vpop.permute.xlu0 %897 }
 0x1de   : > { %v2490_v5 = vpop.permute.xlu2 %1158  ;;  %v880_v7 = vpop.permute.xlu1 %879 }
 0x1df   : > { %v885_v8 = vsel %vm883_vm8, %v878_v55, %v880_v7  ;;  %v886_v4 = vsel %vm883_vm8, %v880_v7, %v2456_v25  ;;  %v1386_v25 = vpop.f32.mrf.mxu0 }
 0x1e0   : > { %v891_v6 = vadd.f32 %v885_v8, %v869_v50  ;;  %v892_v11 = vadd.f32 %v886_v4, %v870_v0 }
 0x1e2   : > { %v1452_v13 = vpop.f32.mrf.mxu2 }
 0x1e3   : > { %1531 = vrot.lane.b32.xlu0 %v1417_v45, %s2094_s17 }
 0x1e4   : > { %1514 = vrot.lane.b32.xlu1 %v1479_v63, %s2093_s9  ;;  %1535 = vrot.lane.b32.xlu2 %v1482_v12, %s2094_s17  ;;  %v1424_v17 = vpop.f32.mrf.mxu1 }
 0x1e5   : > { %v904_v15 = vpop.permute.xlu0 %903 }
 0x1e6   : > { %v908_v18 = vsel %vm905_vm9, %v2467_v36, %v904_v15  ;;  %v2500_v19 = vpop.permute.xlu2 %1177  ;;  %v900_v20 = vpop.permute.xlu1 %899 }
 0x1e7   : > { %v914_v22 = vadd.f32 %v908_v18, %v892_v11  ;;  %v906_v23 = vsel %vm905_vm9, %v898_v58, %v900_v20  ;;  %v907_v10 = vsel %vm905_vm9, %v900_v20, %v2467_v36  ;;  %v1484_v36 = vpop.f32.mrf.mxu3  ;;  %v1389_v37 = vpop.f32.mrf.mxu0  ;;  %v2101_v11 = vmov 0  }
 0x1e8   : > { %v912_v26 = vadd.f32 %v906_v23, %v890_v61  ;;  %v913_v27 = vadd.f32 %v907_v10, %v891_v6  ;;  %2051 = vset.pattern.permute.xlu0 %v2101_v11 }
 0x1ea   : > { %v1455_v28 = vpop.f32.mrf.mxu2 }
 0x1eb   : > { %1550 = vrot.lane.b32.xlu0 %v1386_v25, %s2095_s18 }
 0x1ec   : > { %1533 = vrot.lane.b32.xlu1 %v1450_v2, %s2094_s17  ;;  %1554 = vrot.lane.b32.xlu2 %v1452_v13, %s2095_s18  ;;  %v2508_v21 = vpop.f32.mrf.mxu1 }
 0x1ed   : > { %v924_v29 = vpop.permute.xlu0 %923 }
 0x1ee   : > { %v929_v30 = vsel %vm927_vm10, %v922_v48, %v924_v29  ;;  %v2511_v31 = vpop.permute.xlu2 %1196  ;;  %v920_v32 = vpop.permute.xlu1 %919 }
 0x1ef   : > { %v935_v33 = vadd.f32 %v929_v30, %v913_v27  ;;  %v928_v35 = vsel %vm927_vm10, %v920_v32, %v922_v48  ;;  %v1487_v48 = vpop.f32.mrf.mxu3  ;;  %v1391_v51 = vpop.f32.mrf.mxu0 }
 0x1f0   : > { %v934_v38 = vadd.f32 %v928_v35, %v912_v26 }
 0x1f2   : > { %v1457_v39 = vpop.f32.mrf.mxu2  ;;  %v1145_v41 = vadd.f32 %v2394_v14, %v934_v38  ;;  %v1146_v14 = vadd.f32 %v2390_v9, %v935_v33 }
 0x1f3   : > { %1556 = vrot.lane.b32.xlu0 %v1484_v36, %s2095_s18 }
 0x1f4   : > { %1552 = vrot.lane.b32.xlu1 %v1419_v56, %s2095_s18  ;;  %1573 = vrot.lane.b32.xlu2 %v1422_v3, %s2096_s22  ;;  %v1429_v49 = vpop.f32.mrf.mxu1 }
 0x1f5   : > { %v1155_v40 = vpop.permute.xlu0 %1154 }
 0x1f6   : > { %v1160_v42 = vsel %vm773_vm3, %v1153_v59, %v1155_v40  ;;  %v1216_v44 = vpop.permute.xlu2 %1215  ;;  %v926_v45 = vpop.permute.xlu1 %925 }
 0x1f7   : > { %v1166_v46 = vadd.f32 %v1160_v42, %v1145_v41  ;;  %v930_v47 = vsel %vm927_vm10, %v924_v29, %v926_v45  ;;  %v1489_v63 = vpop.f32.mrf.mxu3  ;;  %v1394_v0 = vpop.f32.mrf.mxu0 }
 0x1f8   : > { %v936_v50 = vadd.f32 %v930_v47, %v914_v22 }
 0x1fa   : > { %v1460_v52 = vpop.f32.mrf.mxu2  ;;  %v1147_v54 = vadd.f32 %v2401_v16, %v936_v50 }
 0x1fb   : > { %1575 = vrot.lane.b32.xlu0 %v1455_v28, %s2096_s22 }
 0x1fc   : > { %1571 = vrot.lane.b32.xlu1 %v1389_v37, %s2096_s22  ;;  %1592 = vrot.lane.b32.xlu2 %v1391_v51, %s2097_s7  ;;  %v1432_v59 = vpop.f32.mrf.mxu1 }
 0x1fd   : > { %v1174_v53 = vpop.permute.xlu0 %1173 }
 0x1fe   : > { %v1157_v55 = vpop.permute.xlu1 %1156  ;;  %v1222_v60 = vpop.permute.xlu2 %1221 }
 0x1ff   : > { %v1161_v56 = vsel %vm773_vm3, %v1155_v40, %v1157_v55  ;;  %v1162_v57 = vsel %vm773_vm3, %v1157_v55, %v2490_v5  ;;  %v1492_v6 = vpop.f32.mrf.mxu3  ;;  %v1396_v15 = vpop.f32.mrf.mxu0 }
 0x200   : > { %v1167_v61 = vadd.f32 %v1161_v56, %v1146_v14  ;;  %v1168_v62 = vadd.f32 %v1162_v57, %v1147_v54  ;;  %v1672_v14 = vld [vmem:[%s2630_s1] sm:$0xff] }
 0x202   : > { %v1462_v1 = vpop.f32.mrf.mxu2 }
 0x203   : > { %1594 = vrot.lane.b32.xlu0 %v1424_v17, %s2097_s7 }
 0x204   : > { %1577 = vrot.lane.b32.xlu1 %v1487_v48, %s2096_s22  ;;  %1598 = vrot.lane.b32.xlu2 %v1489_v63, %s2097_s7  ;;  %v1434_v7 = vpop.f32.mrf.mxu1 }
 0x205   : > { %v1180_v9 = vpop.permute.xlu0 %1179 }
 0x206   : > { %v1183_v16 = vsel %vm795_vm4, %v2500_v19, %v1180_v9  ;;  %v1176_v2 = vpop.permute.xlu1 %1175  ;;  %v1241_v12 = vpop.permute.xlu2 %1240 }
 0x207   : > { %v1189_v58 = vadd.f32 %v1183_v16, %v1168_v62  ;;  %v1181_v3 = vsel %vm795_vm4, %v1174_v53, %v1176_v2  ;;  %v1182_v5 = vsel %vm795_vm4, %v1176_v2, %v2500_v19  ;;  %v1494_v25 = vpop.f32.mrf.mxu3  ;;  %v1399_v27 = vpop.f32.mrf.mxu0 }
 0x208   : > { %v1187_v8 = vadd.f32 %v1181_v3, %v1166_v46  ;;  %v1188_v4 = vadd.f32 %v1182_v5, %v1167_v61 }
 0x20a   : > { %v1465_v13 = vpop.f32.mrf.mxu2 }
 0x20b   : > { %1613 = vrot.lane.b32.xlu0 %v1394_v0, %s2098_s8 }
 0x20c   : > { %1596 = vrot.lane.b32.xlu1 %v1457_v39, %s2097_s7  ;;  %1617 = vrot.lane.b32.xlu2 %v1460_v52, %s2098_s8 }
 0x20d   : > { %v1199_v17 = vpop.permute.xlu0 %1198 }
 0x20e   : > { %v1203_v18 = vsel %vm817_vm5, %v2511_v31, %v1199_v17  ;;  %v1195_v19 = vpop.permute.xlu1 %1194  ;;  %v1260_v26 = vpop.permute.xlu2 %1259 }
 0x20f   : > { %v1209_v20 = vadd.f32 %v1203_v18, %v1188_v4  ;;  %v1202_v22 = vsel %vm817_vm5, %v1195_v19, %v2511_v31  ;;  %v1401_v35 = vpop.f32.mrf.mxu0  ;;  %v1497_v36 = vpop.f32.mrf.mxu3 }
 0x210   : > { %v1208_v23 = vadd.f32 %v1202_v22, %v1187_v8 }
 0x212   : > { %v1467_v10 = vpop.f32.mrf.mxu2 }
 0x213   : > { %1619 = vrot.lane.b32.xlu0 %v1492_v6, %s2098_s8 }
 0x214   : > { %1615 = vrot.lane.b32.xlu1 %v2508_v21, %s2098_s8  ;;  %1636 = vrot.lane.b32.xlu2 %v1429_v49, %s2099_s29 }
 0x215   : > { %v1218_v28 = vpop.permute.xlu0 %1217 }
 0x216   : > { %v1223_v29 = vsel %vm839_vm6, %v1216_v44, %v1218_v28  ;;  %v1201_v30 = vpop.permute.xlu1 %1200  ;;  %v1279_v37 = vpop.permute.xlu2 %1278 }
 0x217   : > { %v1229_v32 = vadd.f32 %v1223_v29, %v1208_v23  ;;  %v1204_v33 = vsel %vm817_vm5, %v1199_v17, %v1201_v30  ;;  %v1499_v44 = vpop.f32.mrf.mxu3 }
 0x218   : > { %v1210_v31 = vadd.f32 %v1204_v33, %v1189_v58 }
 0x21b   : > { %1638 = vrot.lane.b32.xlu0 %v1462_v1, %s2099_s29 }
 0x21c   : > { %1634 = vrot.lane.b32.xlu1 %v1396_v15, %s2099_s29  ;;  %1655 = vrot.lane.b32.xlu2 %v1399_v27, %s2100_s10 }
 0x21d   : > { %v1237_v21 = vpop.permute.xlu0 %1236 }
 0x21e   : > { %v1220_v38 = vpop.permute.xlu1 %1219  ;;  %v1285_v51 = vpop.permute.xlu2 %1284 }
 0x21f   : > { %v1224_v39 = vsel %vm839_vm6, %v1218_v28, %v1220_v38  ;;  %v1225_v40 = vsel %vm839_vm6, %v1220_v38, %v1222_v60 }
 0x220   : > { %v1230_v41 = vadd.f32 %v1224_v39, %v1209_v20  ;;  %v1231_v42 = vadd.f32 %v1225_v40, %v1210_v31 }
 0x223   : > { %1657 = vrot.lane.b32.xlu0 %v1432_v59, %s2100_s10 }
 0x224   : > { %1640 = vrot.lane.b32.xlu1 %v1494_v25, %s2099_s29  ;;  %1661 = vrot.lane.b32.xlu2 %v1497_v36, %s2100_s10 }
 0x225   : > { %v1243_v45 = vpop.permute.xlu0 %1242 }
 0x226   : > { %v1246_v46 = vsel %vm861_vm7, %v1241_v12, %v1243_v45  ;;  %v1239_v47 = vpop.permute.xlu1 %1238  ;;  %v1304_v61 = vpop.permute.xlu2 %1303 }
 0x227   : > { %v1252_v48 = vadd.f32 %v1246_v46, %v1231_v42  ;;  %v1244_v49 = vsel %vm861_vm7, %v1237_v21, %v1239_v47  ;;  %v1245_v50 = vsel %vm861_vm7, %v1239_v47, %v1241_v12 }
 0x228   : > { %v1250_v52 = vadd.f32 %v1244_v49, %v1229_v32  ;;  %v1251_v53 = vadd.f32 %v1245_v50, %v1230_v41 }
 0x22b   : > { %1675 = vperm.xlu0 %2051, %v1672_v14  }
 0x22c   : > { %1659 = vrot.lane.b32.xlu1 %v1465_v13, %s2100_s10 }
 0x22d   : > { %v1262_v54 = vpop.permute.xlu0 %1261 }
 0x22e   : > { %v1266_v55 = vsel %vm883_vm8, %v1260_v26, %v1262_v54  ;;  %v1258_v56 = vpop.permute.xlu1 %1257  ;;  %v1511_v2 = vpop.permute.xlu2 %1510 }
 0x22f   : > { %v1272_v57 = vadd.f32 %v1266_v55, %v1251_v53  ;;  %v1265_v59 = vsel %vm883_vm8, %v1258_v56, %v1260_v26 }
 0x230   : > { %v1271_v60 = vadd.f32 %v1265_v59, %v1250_v52 }
 0x235   : > { %v1281_v62 = vpop.permute.xlu0 %1280 }
 0x236   : > { %v1286_v63 = vsel %vm905_vm9, %v1279_v37, %v1281_v62  ;;  %v1264_v0 = vpop.permute.xlu1 %1263  ;;  %v1530_v11 = vpop.permute.xlu2 %1529 }
 0x237   : > { %v1292_v1 = vadd.f32 %v1286_v63, %v1271_v60  ;;  %v1267_v9 = vsel %vm883_vm8, %v1262_v54, %v1264_v0 }
 0x238   : > { %v1273_v16 = vadd.f32 %v1267_v9, %v1252_v48 }
 0x23d   : > { %v1300_v58 = vpop.permute.xlu0 %1299 }
 0x23e   : > { %v1283_v3 = vpop.permute.xlu1 %1282  ;;  %v1536_v27 = vpop.permute.xlu2 %1535 }
 0x23f   : > { %v1287_v5 = vsel %vm905_vm9, %v1281_v62, %v1283_v3  ;;  %v1288_v7 = vsel %vm905_vm9, %v1283_v3, %v1285_v51 }
 0x240   : > { %v1293_v8 = vadd.f32 %v1287_v5, %v1272_v57  ;;  %v1294_v4 = vadd.f32 %v1288_v7, %v1273_v16 }
 0x245   : > { %v1306_v6 = vpop.permute.xlu0 %1305 }
 0x246   : > { %v1309_v12 = vsel %vm927_vm10, %v1304_v61, %v1306_v6  ;;  %v1302_v13 = vpop.permute.xlu1 %1301  ;;  %v1555_v31 = vpop.permute.xlu2 %1554 }
 0x247   : > { %v1315_v15 = vadd.f32 %v1309_v12, %v1294_v4  ;;  %v1307_v17 = vsel %vm927_vm10, %v1300_v58, %v1302_v13  ;;  %v1308_v18 = vsel %vm927_vm10, %v1302_v13, %v1304_v61 }
 0x248   : > { %v1313_v19 = vadd.f32 %v1307_v17, %v1292_v1  ;;  %v1314_v20 = vadd.f32 %v1308_v18, %v1293_v8 }
 0x249   : > { %v1503_v29 = vadd.f32 %v2472_v43, %v1315_v15  ;;  %v2102_v43 = vmov 0.0  }
 0x24a   : > { %v1502_v23 = vadd.f32 %v2454_v24, %v1314_v20  ;;  %568 = vst [vmem:[%s2581_s19] sm:$0xff] %v2102_v43  ;;  %v1501_v51 = vadd.f32 %v2463_v34, %v1313_v19 }
 0x24b   : > { %569 = vst [vmem:[%s2581_s19 + $0x20] sm:$0xff] %v2102_v43 }
 0x24d   : > { %v1513_v22 = vpop.permute.xlu0 %1512 }
 0x24e   : > { %v1517_v10 = vsel %vm773_vm3, %v1511_v2, %v1513_v22  ;;  %v1509_v25 = vpop.permute.xlu1 %1508  ;;  %v1574_v21 = vpop.permute.xlu2 %1573 }
 0x24f   : > { %v1523_v26 = vadd.f32 %v1517_v10, %v1502_v23  ;;  %v1516_v50 = vsel %vm773_vm3, %v1509_v25, %v1511_v2 }
 0x250   : > { %v1522_v54 = vadd.f32 %v1516_v50, %v1501_v51 }
 0x255   : > { %v1532_v28 = vpop.permute.xlu0 %1531 }
 0x256   : > { %v1515_v30 = vpop.permute.xlu1 %1514  ;;  %v1593_v39 = vpop.permute.xlu2 %1592  ;;  %v1537_v53 = vsel %vm795_vm4, %v1530_v11, %v1532_v28 }
 0x257   : > { %v1518_v32 = vsel %vm773_vm3, %v1513_v22, %v1515_v30  ;;  %v1543_v57 = vadd.f32 %v1537_v53, %v1522_v54 }
 0x258   : > { %v1524_v33 = vadd.f32 %v1518_v32, %v1503_v29  ;;  %v1684_v29 = vld [vmem:[%s2631_s2 + $0x1] sm:$0x7] }
 0x259   : > { %v1687_v43 = vperm.slane %v1684_v29, 1 }
 0x25d   : > { %v1551_v35 = vpop.permute.xlu0 %1550 }
 0x25e   : > { %v1534_v36 = vpop.permute.xlu1 %1533  ;;  %v1599_v44 = vpop.permute.xlu2 %1598 }
 0x25f   : > { %v1538_v59 = vsel %vm795_vm4, %v1532_v28, %v1534_v36  ;;  %v1539_v60 = vsel %vm795_vm4, %v1534_v36, %v1536_v27 }
 0x260   : > { %v1544_v1 = vadd.f32 %v1538_v59, %v1523_v26  ;;  %v1545_v9 = vadd.f32 %v1539_v60, %v1524_v33 }
 0x265   : > { %v1557_v37 = vpop.permute.xlu0 %1556 }
 0x266   : > { %v1553_v38 = vpop.permute.xlu1 %1552  ;;  %v1618_v47 = vpop.permute.xlu2 %1617  ;;  %v1560_v63 = vsel %vm817_vm5, %v1555_v31, %v1557_v37  ;;  %v1686_v37 = vperm.slane %v1684_v29, 0 }
 0x267   : > { %v1558_v56 = vsel %vm817_vm5, %v1551_v35, %v1553_v38  ;;  %v1559_v34 = vsel %vm817_vm5, %v1553_v38, %v1555_v31  ;;  %v1566_v8 = vadd.f32 %v1560_v63, %v1545_v9 }
 0x268   : > { %v1564_v62 = vadd.f32 %v1558_v56, %v1543_v57  ;;  %v1565_v4 = vadd.f32 %v1559_v34, %v1544_v1 }
 0x26d   : > { %v1576_v24 = vpop.permute.xlu0 %1575 }
 0x26e   : > { %v1572_v40 = vpop.permute.xlu1 %1571  ;;  %v1637_v52 = vpop.permute.xlu2 %1636  ;;  %v1580_v58 = vsel %vm839_vm6, %v1574_v21, %v1576_v24 }
 0x26f   : > { %v1579_v61 = vsel %vm839_vm6, %v1572_v40, %v1574_v21  ;;  %v1586_v17 = vadd.f32 %v1580_v58, %v1565_v4 }
 0x270   : > { %v1585_v16 = vadd.f32 %v1579_v61, %v1564_v62 }
 0x275   : > { %v1595_v41 = vpop.permute.xlu0 %1594 }
 0x276   : > { %v1578_v42 = vpop.permute.xlu1 %1577  ;;  %v1600_v0 = vsel %vm861_vm7, %v1593_v39, %v1595_v41  ;;  %v1656_v2 = vpop.permute.xlu2 %1655 }
 0x277   : > { %v1581_v3 = vsel %vm839_vm6, %v1576_v24, %v1578_v42  ;;  %v1606_v6 = vadd.f32 %v1600_v0, %v1585_v16 }
 0x278   : > { %v1587_v18 = vadd.f32 %v1581_v3, %v1566_v8 }
 0x27d   : > { %v1614_v45 = vpop.permute.xlu0 %1613 }
 0x27e   : > { %v1597_v46 = vpop.permute.xlu1 %1596  ;;  %v1662_v31 = vpop.permute.xlu2 %1661 }
 0x27f   : > { %v1601_v12 = vsel %vm861_vm7, %v1595_v41, %v1597_v46  ;;  %v1602_v13 = vsel %vm861_vm7, %v1597_v46, %v1599_v44  ;;  %v1688_v46 = vperm.slane %v1684_v29, 2 }
 0x280   : > { %v1607_v10 = vadd.f32 %v1601_v12, %v1586_v17  ;;  %v1608_v25 = vadd.f32 %v1602_v13, %v1587_v18 }
 0x285   : > { %v1620_v48 = vpop.permute.xlu0 %1619 }
 0x286   : > { %v1616_v49 = vpop.permute.xlu1 %1615  ;;  %v1623_v20 = vsel %vm883_vm8, %v1618_v47, %v1620_v48 }
 0x287   : > { %v1621_v5 = vsel %vm883_vm8, %v1614_v45, %v1616_v49  ;;  %v1622_v22 = vsel %vm883_vm8, %v1616_v49, %v1618_v47  ;;  %v1629_v30 = vadd.f32 %v1623_v20, %v1608_v25 }
 0x288   : > { %v1627_v19 = vadd.f32 %v1621_v5, %v1606_v6  ;;  %v1628_v32 = vadd.f32 %v1622_v22, %v1607_v10 }
 0x28d   : > { %v1639_v14 = vpop.permute.xlu0 %1638 }
 0x28e   : > { %v1635_v55 = vpop.permute.xlu1 %1634  ;;  %v1643_v27 = vsel %vm905_vm9, %v1637_v52, %v1639_v14 }
 0x28f   : > { %v1642_v15 = vsel %vm905_vm9, %v1635_v55, %v1637_v52  ;;  %v1649_v36 = vadd.f32 %v1643_v27, %v1628_v32 }
 0x290   : > { %v1648_v26 = vadd.f32 %v1642_v15, %v1627_v19 }
 0x295   : > { %v1658_v7 = vpop.permute.xlu0 %1657 }
 0x296   : > { %v1641_v11 = vpop.permute.xlu1 %1640  ;;  %v1663_v23 = vsel %vm927_vm10, %v1656_v2, %v1658_v7 }
 0x297   : > { %v1644_v28 = vsel %vm905_vm9, %v1639_v14, %v1641_v11  ;;  %v1669_v33 = vadd.f32 %v1663_v23, %v1648_v26 }
 0x298   : > { %v1650_v21 = vadd.f32 %v1644_v28, %v1629_v30 }
 0x29d   : > { %v1676_v35 = vpop.permute.xlu0 %1675 }
 0x29e   : > { %v1678_v38 = vadd.f32 %v1676_v35, %v1669_v33  ;;  %v1660_v24 = vpop.permute.xlu1 %1659 }
 0x29f   : > { %v1664_v39 = vsel %vm927_vm10, %v1658_v7, %v1660_v24  ;;  %v1665_v40 = vsel %vm927_vm10, %v1660_v24, %v1662_v31 }
 0x2a0   : > { %v1681_v41 = vmax.f32 %v1678_v38, 0.0  ;;  %v1670_v42 = vadd.f32 %v1664_v39, %v1649_v36  ;;  %v1671_v44 = vadd.f32 %v1665_v40, %v1650_v21 }
 0x2a2   : > { %v1692_v45 = vmul.f32 %v1686_v37, %v1681_v41  ;;  %v1679_v47 = vadd.f32 %v1676_v35, %v1670_v42  ;;  %v1680_v48 = vadd.f32 %v1676_v35, %v1671_v44 }
 0x2a4   : > { %1695 = vst [vmem:[%s2581_s19 + $0x8] sm:$0xff] %v1692_v45  ;;  %v1682_v49 = vmax.f32 %v1679_v47, 0.0  ;;  %v1683_v50 = vmax.f32 %v1680_v48, 0.0 }
 0x2a6   : > { %v1693_v51 = vmul.f32 %v1687_v43, %v1682_v49  ;;  %v1694_v52 = vmul.f32 %v1688_v46, %v1683_v50 }
 0x2a8   : > { %1696 = vst [vmem:[%s2581_s19 + $0x10] sm:$0xff] %v1693_v51 }
 0x2a9   : > { %1697 = vst [vmem:[%s2581_s19 + $0x18] sm:$0xff] %v1694_v52 }
 0x2aa PF: > { %s16_s25 = sadd.s32 1, %s2090_s25   ;;  %s2637_s21 = smov %s2082_s23 }
 0x2ab   : > { %p13_p13 = scmp.ge.s32.totalorder %s16_s25, 18   ;;  %s2638_s22 = smov %s2086_s24 }
 0x2ac   : > { %s2639_s23 = smov %s2642_s26  ;;  %s2640_s24 = smov %s2646_s27 }
 0x2ad   :  { %15 = sbr.rel (!%p13_p13) target bundleno = 3 (0x3), region = 85 }

// kernel: img_unet_wrapper_forward.4
= control target key start
LH: loop header
LB: loop body
LE: loop exit
PB: predicated region body
PF: predicated region fallthrough
CT: control target
= control target key end

     0   :  { %s2114_s21 = smov 0   ;;  %s2116_s22 = smov 0   ;;  %s2617_s0 = inlined_call_operand.vmem [shape: bf16[3,144,8], index: 0, kind: input, shape index: {}]   ;;  %s2618_s1 = inlined_call_operand.vmem [shape: f32[16,1], index: 1, kind: input, shape index: {}]   ;;  %s2619_s2 = inlined_call_operand.vmem [shape: f32[1,384], index: 2, kind: input, shape index: {}]   ;;  %s2620_s3 = inlined_call_operand.vmem [shape: f32[2,8,8,384], index: 3, kind: input, shape index: {}, may-alias: {3,4,5}]   ;;  %s2621_s4 = inlined_call_operand.vmem [shape: f32[2,8,8,384], index: 4, kind: input, shape index: {}, may-alias: {3,4,5}]   ;;  %s2622_s5 = inlined_call_operand.vmem [shape: f32[2,8,8,384], index: 5, kind: input, shape index: {}, may-alias: {3,4,5}]   ;;  %s2623_s6 = inlined_call_operand.vmem [shape: f32[2,8,16,384], index: 6, kind: output, shape index: {}]  }
   0x1   :  { %s2118_s23 = smov 0   ;;  %s2120_s24 = smov 0  }
   0x2   :  { %s2122_s25 = smov 0  }
   0x3 LB: > { %s25_s26 = sadd.s32 1, %s2058_s23  ;;  %s28_s27 = sadd.s32 1, %s2062_s24  ;;  %s2066_s25 = sphi %s2122_s25, %s16_s25   ;;  %s2062_s24 = sphi %s2120_s24, %s2628_s24   ;;  %s2058_s23 = sphi %s2118_s23, %s2627_s23   ;;  %s2054_s22 = sphi %s2116_s22, %s2626_s22   ;;  %s2050_s21 = sphi %s2114_s21, %s2625_s21  }
   0x4   : > { %p26_p0 = scmp.ge.s32.totalorder %s25_s26, 8  ;;  %p1724_p1 = scmp.ge.s32.totalorder %s2066_s25, 1 }
   0x5   : > { %p288_p2 = scmp.lt.s32.totalorder %s2066_s25, 17 }
   0x6   : > { %s2630_s26 = smov (%p26_p0, %s25_s26), 0  ;;  %s2632_s27 = smov (!%p26_p0, %s28_s27), %s2062_s24 }
   0x7   : > { %p289_p3 = pnand %p1724_p1, %p288_p2  ;;  %p30_p4 = scmp.ge.s32.totalorder %s2632_s27, 2 }
   0x8   : > { %s1725_s28 = sadd.s32 (!%p289_p3), 4294967295, %s2050_s21  ;;  %p353_p5 = scmp.lt.s32.totalorder (!%p289_p3), %s2054_s22, 1 }
   0x9   : > { %s2634_s27 = smov (%p30_p4, %s2632_s27), 0  ;;  %292 = sbr.rel (%p289_p3) target bundleno = 674 (0x2a2), region = 44 }
   0xa   : > { %p351_p6 = scmp.gt.s32.totalorder (!%p289_p3), %s1725_s28, 0  ;;  %p1726_p7 = scmp.lt.s32.totalorder (!%p289_p3), %s1725_s28, 7 }
   0xb   : > { %p367_p8 = scmp.lt.s32.totalorder (!%p289_p3), %s2050_s21, 7  ;;  %s374_s15 = sadd.s32 (!%p289_p3), 1, %s2050_s21 }
   0xc   : > { %p2168_p9 = scmp.lt.s32.totalorder (!%p289_p3), %s374_s15, 7  ;;  %p399_p10 = scmp.gt.s32.totalorder (!%p289_p3), %s2050_s21, 0 }
   0xd   : > { %s2072_s11 = smov (!%p289_p3), 126  }
   0xe   : > { %s2636_s22 = smov (!%p353_p5, %s2054_s22), 1  ;;  %s2638_s28 = smov (!%p351_p6, %s1725_s28), 0  ;;  %v1878_v34 = vld [vmem:[%s2617_s0] sm:$0xff]   ;;  %v1953_v36 = vld [vmem:[%s2617_s0 + $0x28] sm:$0xff]   ;;  %vm612_vm0 = vcmask 80896   ;;  %vm643_vm1 = vcmask 1043456  }
   0xf   : > { %s2150_s29 = smul.u32 24, %s2636_s22  ;;  %s2640_s28 = smov (!%p1726_p7, %s2638_s28), 7  ;;  %v1879_v39 = vunpack.c.l.bf16 %v1878_v34  ;;  %v1880_v40 = vunpack.c.h.bf16 %v1878_v34  ;;  %v1899_v42 = vunpack.c.l.bf16 %v1953_v36  ;;  %v1900_v43 = vunpack.c.h.bf16 %v1953_v36  ;;  %v1949_v61 = vld [vmem:[%s2617_s0 + $0x8] sm:$0xff]   ;;  %v1954_v62 = vld [vmem:[%s2617_s0 + $0x30] sm:$0xff]  }
  0x10   : > { %s1968_s30 = smul.u32 3, %s2640_s28  ;;  %s2068_s28 = smov 10   ;;  %vm615_vm2 = vcmask 64512   ;;  %vm846_vm3 = vcmask 957440   ;;  %vm770_vm4 = vcmask 1039360   ;;  %vm865_vm5 = vcmask 900096  }
  0x11   : > { %s2156_s7 = scalar_select %p367_p8, %s2050_s21, 7  ;;  %vm789_vm6 = vcmask 1031168   ;;  %vm884_vm7 = vcmask 891904   ;;  %vm903_vm8 = vcmask 883712   ;;  %vm808_vm9 = vcmask 973824  }
  0x12   : > { %s359_s8 = sadd.s32 %s2150_s29, %s1968_s30  ;;  %s2642_s15 = smov (!%p2168_p9, %s374_s15), 7  ;;  %vm827_vm10 = vcmask 965632  }
  0x13   : > { %s1731_s9 = sshll.u32 %s359_s8, 3  ;;  %s1970_s10 = smul.u32 3, %s2156_s7 }
  0x14   : > { %s361_s13 = scalar_lea.vmem %s2620_s3, %s1731_s9  ;;  %s2644_s15 = smov (!%p2168_p9, %s2642_s15), 7 }
  0x15   : > { %v491_v0 = vld [vmem:[%s361_s13] sm:$0xff]  ;;  %v492_v1 = vld [vmem:[%s361_s13 + $0x8] sm:$0xff]  ;;  %v493_v2 = vld [vmem:[%s361_s13 + $0x10] sm:$0xff]  ;;  %s371_s14 = sadd.s32 %s1970_s10, %s2150_s29  ;;  %s1971_s30 = smul.u32 3, %s2644_s15 }
  0x16   : > { %v494_v3 = vpack.c.bf16 %v492_v1, %v491_v0  ;;  %v495_v4 = vpack.c.bf16 %v493_v2, %v493_v2  ;;  %s1732_s16 = sshll.u32 %s371_s14, 3  ;;  %v1883_v2 = vunpack.c.l.bf16 %v1949_v61 }
  0x17   : > { %s373_s19 = scalar_lea.vmem %s2621_s4, %s1732_s16  ;;  %s383_s8 = sadd.s32 %s1971_s30, %s2150_s29 }
  0x18   : > { %v600_v5 = vunpack.c.l.b16 %v494_v3  ;;  %v602_v6 = vunpack.c.l.b16 %v495_v4  ;;  %v515_v7 = vld [vmem:[%s373_s19] sm:$0xff]  ;;  %v516_v8 = vld [vmem:[%s373_s19 + $0x8] sm:$0xff]  ;;  %v517_v9 = vld [vmem:[%s373_s19 + $0x10] sm:$0xff]  ;;  %v601_v15 = vunpack.c.h.b16 %v494_v3  ;;  %s1736_s9 = sshll.u32 %s383_s8, 3  ;;  %v1884_v3 = vunpack.c.h.bf16 %v1949_v61  ;;  %s2070_s30 = smov 110  }
  0x19   : > { %v518_v10 = vpack.c.bf16 %v516_v8, %v515_v7  ;;  %v519_v14 = vpack.c.bf16 %v517_v9, %v517_v9  ;;  %s385_s12 = scalar_lea.vmem %s2622_s5, %s1736_s9  ;;  %v1903_v4 = vunpack.c.l.bf16 %v1954_v62  ;;  %v1870_v61 = vld [vmem:[%s2617_s0 + $0x58] sm:$0xff] }
  0x1a   : > { %v603_v11 = vpack.c.b16 %v600_v5, %v600_v5  ;;  %v605_v12 = vpack.c.b16 %v602_v6, %v602_v6  ;;  %v604_v19 = vpack.c.b16 %v601_v15, %v601_v15  ;;  %v589_v22 = vld [vmem:[%s385_s12] sm:$0xff]  ;;  %v590_v23 = vld [vmem:[%s385_s12 + $0x8] sm:$0xff]  ;;  %v591_v24 = vld [vmem:[%s385_s12 + $0x10] sm:$0xff]  ;;  %s400_s29 = scalar_select %p399_p10, 1.0, 0.0  ;;  %v1904_v5 = vunpack.c.h.bf16 %v1954_v62 }
  0x1b   : > { %v958_v13 = vunpack.c.h.b16 %v518_v10  ;;  %v957_v16 = vunpack.c.l.b16 %v518_v10  ;;  %v959_v18 = vunpack.c.l.b16 %v519_v14  ;;  %v592_v25 = vpack.c.bf16 %v590_v23, %v589_v22  ;;  %s2076_s12 = smov 118  }
  0x1c   : > { %606 = vrot.lane.b32.xlu0 %v603_v11, %s2068_s28  ;;  %610 = vrot.lane.b32.xlu1 %v605_v12, %s2068_s28  ;;  %v593_v26 = vpack.c.bf16 %v591_v24, %v591_v24  ;;  %s403_s13 = sshrl.u32 %s400_s29, 16  ;;  %p402_p11 = scmp.ne.f32.partialorder %s400_s29, %s400_s29 }
  0x1d   : > { %v961_v17 = vpack.c.b16 %v958_v13, %v958_v13  ;;  %v960_v20 = vpack.c.b16 %v957_v16, %v957_v16  ;;  %v962_v21 = vpack.c.b16 %v959_v18, %v959_v18  ;;  %v1259_v27 = vunpack.c.h.b16 %v592_v25  ;;  %s404_s14 = sand.u32 1, %s403_s13  ;;  %v1955_v16 = vld [vmem:[%s2617_s0 + $0x38] sm:$0xff]  }
  0x1e   : > { %v1258_v28 = vunpack.c.l.b16 %v592_v25  ;;  %v1260_v29 = vunpack.c.l.b16 %v593_v26  ;;  %s405_s15 = sadd.s32 32767, %s404_s14  ;;  %v1907_v18 = vunpack.c.l.bf16 %v1955_v16 }
  0x1f   : > { %965 = vrot.lane.b32.xlu2 %v961_v17, %s2068_s28  ;;  %v1262_v30 = vpack.c.b16 %v1259_v27, %v1259_v27  ;;  %s406_s16 = sadd.s32 %s405_s15, %s400_s29  ;;  %v1950_v17 = vld [vmem:[%s2617_s0 + $0x10] sm:$0xff]  }
  0x20   : > { %v1261_v31 = vpack.c.b16 %v1258_v28, %v1258_v28  ;;  %v1263_v32 = vpack.c.b16 %v1260_v29, %v1260_v29  ;;  %s407_s17 = sand.u32 4294901760, %s406_s16  ;;  %v1956_v28 = vld [vmem:[%s2617_s0 + $0x40] sm:$0xff]   ;;  %v1951_v29 = vld [vmem:[%s2617_s0 + $0x18] sm:$0xff]  }
  0x21   : > { %s2646_s17 = smov (%p402_p11, %s407_s17), 2143289344 }
  0x22   : > { %s410_s18 = sshrl.u32 %s2646_s17, 16 }
  0x23   : > { %s441_s19 = sshll.u32 %s410_s18, 16 }
  0x24   : > { %608 = vrot.lane.b32.xlu0 %v604_v19, %s2068_s28  ;;  %963 = vrot.lane.b32.xlu1 %v960_v20, %s2068_s28  ;;  %s442_s20 = sor.u32 %s441_s19, %s410_s18  ;;  %v1908_v19 = vunpack.c.h.bf16 %v1955_v16  ;;  %v1887_v20 = vunpack.c.l.bf16 %v1950_v17  ;;  %s2069_s18 = smov 117  }
  0x25   : > { %v443_v35 = vstv %s442_s20  ;;  %s412_s17 = scalar_select %p367_p8, 1.0, 0.0 }
  0x26   : > { %v2196_v41 = vunpack.c.l.bf16 %v443_v35 }
  0x27   : > { %967 = vrot.lane.b32.xlu2 %v962_v21, %s2068_s28  ;;  %v1888_v21 = vunpack.c.h.bf16 %v1950_v17  ;;  %s415_s8 = sshrl.u32 %s412_s17, 16  ;;  %p414_p12 = scmp.ne.f32.partialorder %s412_s17, %s412_s17 }
  0x28   : > { %v464_v44 = vmul.f32 %v1879_v39, %v2196_v41  ;;  %v465_v45 = vmul.f32 %v1880_v40, %v2196_v41  ;;  %v474_v47 = vmul.f32 %v1899_v42, %v2196_v41  ;;  %v475_v48 = vmul.f32 %v1900_v43, %v2196_v41  ;;  %s416_s9 = sand.u32 1, %s415_s8  ;;  %v1952_v40 = vld [vmem:[%s2617_s0 + $0x20] sm:$0xff]   ;;  %s2071_s8 = smov 127  }
  0x29   : > { %v466_v10 = vmul.f32 %v1883_v2, %v2196_v41  ;;  %v467_v11 = vmul.f32 %v1884_v3, %v2196_v41  ;;  %v476_v12 = vmul.f32 %v1903_v4, %v2196_v41  ;;  %v477_v13 = vmul.f32 %v1904_v5, %v2196_v41  ;;  %s417_s21 = sadd.s32 32767, %s416_s9  ;;  %v1871_v4 = vld [vmem:[%s2617_s0 + $0x60] sm:$0xff] }
  0x2a   : > { %v482_v51 = vpack.c.bf16 %v465_v45, %v464_v44  ;;  %v487_v55 = vpack.c.bf16 %v475_v48, %v474_v47  ;;  %v478_v22 = vmul.f32 %v1907_v18, %v2196_v41  ;;  %v479_v23 = vmul.f32 %v1908_v19, %v2196_v41 }
  0x2b   : > { %v483_v14 = vpack.c.bf16 %v467_v11, %v466_v10  ;;  %v488_v15 = vpack.c.bf16 %v477_v13, %v476_v12  ;;  %v468_v24 = vmul.f32 %v1887_v20, %v2196_v41  ;;  %v469_v25 = vmul.f32 %v1888_v21, %v2196_v41  ;;  %v1872_v12 = vld [vmem:[%s2617_s0 + $0x68] sm:$0xff] }
  0x2c   : > { %1266 = vrot.lane.b32.xlu1 %v1262_v30, %s2068_s28  ;;  %1264 = vrot.lane.b32.xlu0 %v1261_v31, %s2068_s28  ;;  %v489_v26 = vpack.c.bf16 %v479_v23, %v478_v22  ;;  %v1911_v30 = vunpack.c.l.bf16 %v1956_v28  ;;  %v1912_v31 = vunpack.c.h.bf16 %v1956_v28  ;;  %v1895_v42 = vunpack.c.l.bf16 %v1952_v40 }
  0x2d   : > { %v484_v27 = vpack.c.bf16 %v469_v25, %v468_v24  ;;  %v1896_v43 = vunpack.c.h.bf16 %v1952_v40 }
  0x2e   : > { %v480_v34 = vmul.f32 %v1911_v30, %v2196_v41  ;;  %v481_v35 = vmul.f32 %v1912_v31, %v2196_v41  ;;  %v472_v44 = vmul.f32 %v1895_v42, %v2196_v41  ;;  %v1874_v42 = vld [vmem:[%s2617_s0 + $0x78] sm:$0xff] }
  0x2f   : > { %1268 = vrot.lane.b32.xlu2 %v1263_v32, %s2068_s28  ;;  %v1891_v32 = vunpack.c.l.bf16 %v1951_v29  ;;  %s418_s28 = sadd.s32 %s417_s21, %s412_s17  ;;  %v473_v45 = vmul.f32 %v1896_v43, %v2196_v41  ;;  %s2075_s17 = smov 108  }
  0x30   : > { %s419_s10 = sand.u32 4294901760, %s418_s28 }
  0x31   : > { %v470_v36 = vmul.f32 %v1891_v32, %v2196_v41  ;;  %s2648_s10 = smov (%p414_p12, %s419_s10), 2143289344  ;;  %v486_v47 = vpack.c.bf16 %v473_v45, %v472_v44 }
  0x32   : > { %s422_s29 = sshrl.u32 %s2648_s10, 16 }
  0x33   : > { %s539_s13 = sshll.u32 %s422_s29, 16 }
  0x34   : > { %s540_s16 = sor.u32 %s539_s13, %s422_s29  ;;  %s2073_s13 = smov 109  }
  0x35   : > { %v541_v48 = vstv %s540_s16  ;;  %s2074_s16 = smov 119  }
  0x79   : > { %v966_v33 = vpop.permute.xlu2 %965 }
  0x81   : > { %v968_v46 = vpop.permute.xlu2 %967 }
  0x82   : > { %v970_v49 = vsel %vm612_vm0, %v966_v33, %v968_v46  ;;  %v1868_v46 = vld [vmem:[%s2617_s0 + $0x48] sm:$0xff] }
  0x83   : > { %v1002_v60 = vsel %vm643_vm1, %v970_v49, 0  ;;  %v2277_v49 = vunpack.c.l.bf16 %v541_v48 }
  0x89   : > { %v1269_v63 = vpop.permute.xlu2 %1268 }
  0x8e   : > { %v607_v37 = vpop.permute.xlu0 %606  ;;  %v611_v38 = vpop.permute.xlu1 %610 }
  0x96   : > { %v609_v50 = vpop.permute.xlu0 %608  ;;  %v964_v52 = vpop.permute.xlu1 %963 }
  0x97   : > { %v613_v53 = vsel %vm612_vm0, %v607_v37, %v609_v50  ;;  %v614_v54 = vsel %vm612_vm0, %v609_v50, %v611_v38  ;;  %v969_v56 = vsel %vm612_vm0, %v964_v52, %v966_v33  ;;  %v1892_v33 = vunpack.c.h.bf16 %v1951_v29 }
  0x98   : > { %v645_v57 = vsel %vm643_vm1, %v613_v53, 0  ;;  %v648_v58 = vsel %vm643_vm1, %v614_v54, 0  ;;  %v999_v59 = vsel %vm643_vm1, %v969_v56, 0  ;;  %v490_v38 = vpack.c.bf16 %v481_v35, %v480_v34  ;;  %v1869_v54 = vld [vmem:[%s2617_s0 + $0x50] sm:$0xff]  ;;  %v1958_v56 = vld [vmem:[%s2617_s0 + $0x98] sm:$0xff]  }
  0x99   : > { %657 = vmatpush.bf16.msra.mxu0 %v645_v57  ;;  %1966 = vmatpush.bf16.msra.mxu2 %v645_v57  ;;  %v471_v37 = vmul.f32 %v1892_v33, %v2196_v41  ;;  %v1957_v41 = vld [vmem:[%s2617_s0 + $0x90] sm:$0xff]   ;;  %v1919_v57 = vunpack.c.l.bf16 %v1958_v56  ;;  %v1962_v34 = vld [vmem:[%s2617_s0 + $0xb8] sm:$0xff]  }
  0x9a   : > { %711 = vmatpush.bf16.msra.mxu1 %v648_v58  ;;  %1967 = vmatpush.bf16.msra.mxu3 %v648_v58  ;;  %v1915_v50 = vunpack.c.l.bf16 %v1957_v41  ;;  %v1920_v58 = vunpack.c.h.bf16 %v1958_v56  ;;  %v1935_v35 = vunpack.c.l.bf16 %v1962_v34 }
  0x9b   : > { %v485_v39 = vpack.c.bf16 %v471_v37, %v470_v36  ;;  %v1936_v36 = vunpack.c.h.bf16 %v1962_v34 }
  0x9c   : > { %1774 = vmatmul.msk.bf16.vlgmr.msra.gmra.mxu0 %vm615_vm2, %v482_v51  ;;  %1779 = vmatmul.msk.bf16.vlgmr.msra.gmra.mxu2 %vm615_vm2, %v487_v55  ;;  %v562_v52 = vmul.f32 %v1915_v50, %v2277_v49  ;;  %v1963_v50 = vld [vmem:[%s2617_s0 + $0xc0] sm:$0xff]  }
  0x9d   : > { %1011 = vmatpush.bf16.msrb.mxu2 %v999_v59  ;;  %1788 = vmatmul.msk.bf16.vlgmr.msra.gmra.mxu3 %vm615_vm2, %v487_v55  ;;  %v564_v59 = vmul.f32 %v1919_v57, %v2277_v49 }
  0x9e   : > { %1065 = vmatpush.bf16.msrb.mxu3 %v1002_v60  ;;  %1783 = vmatmul.msk.bf16.vlgmr.msra.gmra.mxu1 %vm615_vm2, %v482_v51  ;;  %v1267_v0 = vpop.permute.xlu1 %1266  ;;  %v1265_v1 = vpop.permute.xlu0 %1264  ;;  %v1916_v51 = vunpack.c.h.bf16 %v1957_v41  ;;  %v565_v60 = vmul.f32 %v1920_v58, %v2277_v49 }
  0x9f   : > { %v1270_v6 = vsel %vm612_vm0, %v1265_v1, %v1267_v0  ;;  %v1271_v7 = vsel %vm612_vm0, %v1267_v0, %v1269_v63  ;;  %v1959_v63 = vld [vmem:[%s2617_s0 + $0xa0] sm:$0xff]  }
  0xa0   : > { %v1300_v8 = vsel %vm643_vm1, %v1270_v6, 0  ;;  %v1303_v9 = vsel %vm643_vm1, %v1271_v7, 0  ;;  %v563_v53 = vmul.f32 %v1916_v51, %v2277_v49  ;;  %v581_v62 = vpack.c.bf16 %v565_v60, %v564_v59  ;;  %v1960_v6 = vld [vmem:[%s2617_s0 + $0xa8] sm:$0xff]   ;;  %v1875_v59 = vld [vmem:[%s2617_s0 + $0x80] sm:$0xff] }
  0xa1   : > { %1312 = vmatpush.bf16.msrb.mxu0 %v1300_v8  ;;  %1366 = vmatpush.bf16.msrb.mxu1 %v1303_v9  ;;  %v1923_v0 = vunpack.c.l.bf16 %v1959_v63  ;;  %v1924_v1 = vunpack.c.h.bf16 %v1959_v63  ;;  %v1927_v7 = vunpack.c.l.bf16 %v1960_v6  ;;  %v1928_v8 = vunpack.c.h.bf16 %v1960_v6  ;;  %v1964_v6 = vld [vmem:[%s2617_s0 + $0xc8] sm:$0xff]  }
  0xa2   : > { %v580_v55 = vpack.c.bf16 %v563_v53, %v562_v52  ;;  %v1939_v51 = vunpack.c.l.bf16 %v1963_v50  ;;  %v1940_v52 = vunpack.c.h.bf16 %v1963_v50 }
  0xa3   : > { %v566_v2 = vmul.f32 %v1923_v0, %v2277_v49  ;;  %v567_v3 = vmul.f32 %v1924_v1, %v2277_v49  ;;  %v568_v9 = vmul.f32 %v1927_v7, %v2277_v49  ;;  %v569_v10 = vmul.f32 %v1928_v8, %v2277_v49 }
  0xa4   : > { %v1943_v7 = vunpack.c.l.bf16 %v1964_v6  ;;  %v1944_v8 = vunpack.c.h.bf16 %v1964_v6 }
  0xa5   : > { %v582_v5 = vpack.c.bf16 %v567_v3, %v566_v2  ;;  %v583_v11 = vpack.c.bf16 %v569_v10, %v568_v9 }
  0xa6   : > { %v576_v10 = vmul.f32 %v1943_v7, %v2277_v49 }
  0xac   : > { %1775 = vmatmul.msk.bf16.gmra.mxu0 %vm615_vm2, %v483_v14  ;;  %1780 = vmatmul.msk.bf16.gmra.mxu2 %vm615_vm2, %v488_v15 }
  0xad   : > { %1789 = vmatmul.msk.bf16.gmra.mxu3 %vm615_vm2, %v488_v15  ;;  %v1961_v15 = vld [vmem:[%s2617_s0 + $0xb0] sm:$0xff]  }
  0xae   : > { %1784 = vmatmul.msk.bf16.gmra.mxu1 %vm615_vm2, %v483_v14  ;;  %v1931_v18 = vunpack.c.l.bf16 %v1961_v15  ;;  %v1932_v19 = vunpack.c.h.bf16 %v1961_v15 }
  0xb0   : > { %v570_v22 = vmul.f32 %v1931_v18, %v2277_v49  ;;  %v571_v23 = vmul.f32 %v1932_v19, %v2277_v49 }
  0xbc   : > { %1781 = vmatmul.msk.bf16.gmra.mxu2 %vm615_vm2, %v489_v26  ;;  %1776 = vmatmul.msk.bf16.gmra.mxu0 %vm615_vm2, %v484_v27 }
  0xbd   : > { %1790 = vmatmul.msk.bf16.gmra.mxu3 %vm615_vm2, %v489_v26  ;;  %v1873_v26 = vld [vmem:[%s2617_s0 + $0x70] sm:$0xff] }
  0xbe   : > { %1785 = vmatmul.msk.bf16.gmra.mxu1 %vm615_vm2, %v484_v27  ;;  %v584_v27 = vpack.c.bf16 %v571_v23, %v570_v22  ;;  %v1965_v22 = vld [vmem:[%s2617_s0 + $0xd0] sm:$0xff]  }
  0xbf   : > { %v1947_v23 = vunpack.c.l.bf16 %v1965_v22 }
  0xcc   : > { %1782 = vmatmul.msk.bf16.gmra.mxu2 %vm615_vm2, %v490_v38  ;;  %1777 = vmatmul.msk.bf16.gmra.mxu0 %vm615_vm2, %v485_v39 }
  0xcd   : > { %1791 = vmatmul.msk.bf16.gmra.mxu3 %vm615_vm2, %v490_v38  ;;  %v572_v38 = vmul.f32 %v1935_v35, %v2277_v49 }
  0xce   : > { %1786 = vmatmul.msk.bf16.gmra.mxu1 %vm615_vm2, %v485_v39  ;;  %v573_v39 = vmul.f32 %v1936_v36, %v2277_v49 }
  0xd0   : > { %v585_v44 = vpack.c.bf16 %v573_v39, %v572_v38 }
  0xdc   : > { %1828 = vmatmul.msk.bf16.vlgmr.msrb.gmra.mxu2 %vm615_vm2, %v1868_v46  ;;  %1778 = vmatmul.msk.bf16.gmra.mxu0 %vm615_vm2, %v486_v47 }
  0xdd   : > { %1837 = vmatmul.msk.bf16.vlgmr.msrb.gmra.mxu3 %vm615_vm2, %v1868_v46 }
  0xde   : > { %1787 = vmatmul.msk.bf16.gmra.mxu1 %vm615_vm2, %v486_v47 }
  0xec   : > { %1829 = vmatmul.msk.bf16.gmra.mxu2 %vm615_vm2, %v1869_v54  ;;  %1846 = vmatmul.msk.bf16.vlgmr.msrb.gmra.mxu0 %vm615_vm2, %v580_v55 }
  0xed   : > { %1838 = vmatmul.msk.bf16.gmra.mxu3 %vm615_vm2, %v1869_v54  ;;  %v574_v54 = vmul.f32 %v1939_v51, %v2277_v49 }
  0xee   : > { %1855 = vmatmul.msk.bf16.vlgmr.msrb.gmra.mxu1 %vm615_vm2, %v580_v55  ;;  %v575_v55 = vmul.f32 %v1940_v52, %v2277_v49 }
  0xf0   : > { %v586_v58 = vpack.c.bf16 %v575_v55, %v574_v54 }
  0xfc   : > { %1830 = vmatmul.msk.bf16.gmra.mxu2 %vm615_vm2, %v1870_v61  ;;  %1847 = vmatmul.msk.bf16.gmra.mxu0 %vm615_vm2, %v581_v62 }
  0xfd   : > { %1839 = vmatmul.msk.bf16.gmra.mxu3 %vm615_vm2, %v1870_v61 }
  0xfe   : > { %1856 = vmatmul.msk.bf16.gmra.mxu1 %vm615_vm2, %v581_v62 }
 0x10c   : > { %1831 = vmatmul.msk.bf16.gmra.mxu2 %vm615_vm2, %v1871_v4  ;;  %1848 = vmatmul.msk.bf16.gmra.mxu0 %vm615_vm2, %v582_v5 }
 0x10d   : > { %1840 = vmatmul.msk.bf16.gmra.mxu3 %vm615_vm2, %v1871_v4  ;;  %v1876_v4 = vld [vmem:[%s2617_s0 + $0x88] sm:$0xff] }
 0x10e   : > { %1857 = vmatmul.msk.bf16.gmra.mxu1 %vm615_vm2, %v582_v5 }
 0x119   : > { %v2320_v13 = vpop.f32.mrf.mxu0 }
 0x11b   : > { %v713_v14 = vpop.f32.mrf.mxu1 }
 0x11c   : > { %1849 = vmatmul.msk.bf16.gmra.mxu0 %vm615_vm2, %v583_v11  ;;  %1832 = vmatmul.msk.bf16.gmra.mxu2 %vm615_vm2, %v1872_v12 }
 0x11d   : > { %1841 = vmatmul.msk.bf16.gmra.mxu3 %vm615_vm2, %v1872_v12 }
 0x11e   : > { %1858 = vmatmul.msk.bf16.gmra.mxu1 %vm615_vm2, %v583_v11  ;;  %v577_v11 = vmul.f32 %v1944_v8, %v2277_v49 }
 0x11f   : > { %v684_v16 = vpop.f32.mrf.mxu2 }
 0x120   : > { %v736_v17 = vpop.f32.mrf.mxu3  ;;  %838 = vrot.lane.b32.xlu1 %v684_v16, %s2069_s18  ;;  %v587_v15 = vpack.c.bf16 %v577_v11, %v576_v10 }
 0x121   : > { %v2330_v20 = vpop.f32.mrf.mxu0  ;;  %840 = vrot.lane.b32.xlu2 %v736_v17, %s2069_s18 }
 0x123   : > { %v714_v21 = vpop.f32.mrf.mxu1 }
 0x127   : > { %v686_v24 = vpop.f32.mrf.mxu2 }
 0x128   : > { %v738_v25 = vpop.f32.mrf.mxu3  ;;  %842 = vrot.lane.b32.xlu0 %v686_v24, %s2069_s18  ;;  %v1948_v24 = vunpack.c.h.bf16 %v1965_v22 }
 0x129   : > { %844 = vrot.lane.b32.xlu1 %v738_v25, %s2069_s18  ;;  %v664_v28 = vpop.f32.mrf.mxu0 }
 0x12b   : > { %v716_v29 = vpop.f32.mrf.mxu1 }
 0x12c   : > { %1833 = vmatmul.msk.bf16.gmra.mxu2 %vm615_vm2, %v1873_v26  ;;  %1850 = vmatmul.msk.bf16.gmra.mxu0 %vm615_vm2, %v584_v27 }
 0x12d   : > { %1842 = vmatmul.msk.bf16.gmra.mxu3 %vm615_vm2, %v1873_v26  ;;  %v578_v26 = vmul.f32 %v1947_v23, %v2277_v49 }
 0x12e   : > { %1859 = vmatmul.msk.bf16.gmra.mxu1 %vm615_vm2, %v584_v27  ;;  %v579_v27 = vmul.f32 %v1948_v24, %v2277_v49 }
 0x12f   : > { %v689_v30 = vpop.f32.mrf.mxu2 }
 0x130   : > { %v741_v31 = vpop.f32.mrf.mxu3  ;;  %857 = vrot.lane.b32.xlu2 %v689_v30, %s2070_s30  ;;  %762 = vrot.lane.b32.xlu0 %v664_v28, %s2071_s8  ;;  %v588_v28 = vpack.c.bf16 %v579_v27, %v578_v26 }
 0x131   : > { %764 = vrot.lane.b32.xlu1 %v716_v29, %s2071_s8  ;;  %v666_v32 = vpop.f32.mrf.mxu0 }
 0x133   : > { %v718_v33 = vpop.f32.mrf.mxu1 }
 0x137   : > { %v691_v37 = vpop.f32.mrf.mxu2 }
 0x138   : > { %v743_v40 = vpop.f32.mrf.mxu3  ;;  %859 = vrot.lane.b32.xlu0 %v741_v31, %s2070_s30  ;;  %766 = vrot.lane.b32.xlu2 %v666_v32, %s2071_s8 }
 0x139   : > { %861 = vrot.lane.b32.xlu1 %v691_v37, %s2070_s30  ;;  %v669_v43 = vpop.f32.mrf.mxu0 }
 0x13b   : > { %v721_v45 = vpop.f32.mrf.mxu1 }
 0x13c   : > { %1834 = vmatmul.msk.bf16.gmra.mxu2 %vm615_vm2, %v1874_v42  ;;  %1851 = vmatmul.msk.bf16.gmra.mxu0 %vm615_vm2, %v585_v44 }
 0x13d   : > { %1843 = vmatmul.msk.bf16.gmra.mxu3 %vm615_vm2, %v1874_v42 }
 0x13e   : > { %1860 = vmatmul.msk.bf16.gmra.mxu1 %vm615_vm2, %v585_v44 }
 0x13f   : > { %v694_v46 = vpop.f32.mrf.mxu2 }
 0x140   : > { %768 = vrot.lane.b32.xlu0 %v718_v33, %s2071_s8  ;;  %863 = vrot.lane.b32.xlu2 %v743_v40, %s2070_s30  ;;  %v746_v47 = vpop.f32.mrf.mxu3 }
 0x141   : > { %781 = vrot.lane.b32.xlu1 %v669_v43, %s2072_s11  ;;  %v671_v48 = vpop.f32.mrf.mxu0 }
 0x143   : > { %v723_v41 = vpop.f32.mrf.mxu1 }
 0x147   : > { %v696_v53 = vpop.f32.mrf.mxu2 }
 0x148   : > { %876 = vrot.lane.b32.xlu0 %v694_v46, %s2073_s13  ;;  %783 = vrot.lane.b32.xlu2 %v721_v45, %s2072_s11  ;;  %v748_v56 = vpop.f32.mrf.mxu3 }
 0x149   : > { %878 = vrot.lane.b32.xlu1 %v746_v47, %s2073_s13  ;;  %v674_v57 = vpop.f32.mrf.mxu0 }
 0x14b   : > { %v726_v60 = vpop.f32.mrf.mxu1 }
 0x14c   : > { %1852 = vmatmul.msk.bf16.gmra.mxu0 %vm615_vm2, %v586_v58  ;;  %1835 = vmatmul.msk.bf16.gmra.mxu2 %vm615_vm2, %v1875_v59 }
 0x14d   : > { %1844 = vmatmul.msk.bf16.gmra.mxu3 %vm615_vm2, %v1875_v59 }
 0x14e   : > { %1861 = vmatmul.msk.bf16.gmra.mxu1 %vm615_vm2, %v586_v58 }
 0x14f   : > { %v699_v61 = vpop.f32.mrf.mxu2 }
 0x150   : > { %880 = vrot.lane.b32.xlu2 %v696_v53, %s2073_s13  ;;  %785 = vrot.lane.b32.xlu0 %v671_v48, %s2072_s11  ;;  %v751_v62 = vpop.f32.mrf.mxu3 }
 0x151   : > { %787 = vrot.lane.b32.xlu1 %v723_v41, %s2072_s11  ;;  %v676_v63 = vpop.f32.mrf.mxu0 }
 0x153   : > { %v728_v0 = vpop.f32.mrf.mxu1 }
 0x157   : > { %v701_v1 = vpop.f32.mrf.mxu2 }
 0x158   : > { %882 = vrot.lane.b32.xlu0 %v748_v56, %s2073_s13  ;;  %800 = vrot.lane.b32.xlu2 %v674_v57, %s2074_s16  ;;  %v753_v2 = vpop.f32.mrf.mxu3 }
 0x159   : > { %895 = vrot.lane.b32.xlu1 %v699_v61, %s2075_s17  ;;  %v679_v3 = vpop.f32.mrf.mxu0 }
 0x15b   : > { %v731_v5 = vpop.f32.mrf.mxu1 }
 0x15c   : > { %1836 = vmatmul.msk.bf16.gmra.mxu2 %vm615_vm2, %v1876_v4  ;;  %1853 = vmatmul.msk.bf16.gmra.mxu0 %vm615_vm2, %v587_v15 }
 0x15d   : > { %1845 = vmatmul.msk.bf16.gmra.mxu3 %vm615_vm2, %v1876_v4 }
 0x15e   : > { %1862 = vmatmul.msk.bf16.gmra.mxu1 %vm615_vm2, %v587_v15 }
 0x15f   : > { %v2394_v9 = vpop.f32.mrf.mxu2 }
 0x160   : > { %802 = vrot.lane.b32.xlu0 %v726_v60, %s2074_s16  ;;  %897 = vrot.lane.b32.xlu2 %v751_v62, %s2075_s17  ;;  %v1067_v12 = vpop.f32.mrf.mxu3 }
 0x161   : > { %804 = vrot.lane.b32.xlu1 %v676_v63, %s2074_s16  ;;  %v681_v14 = vpop.f32.mrf.mxu0 }
 0x163   : > { %v733_v16 = vpop.f32.mrf.mxu1 }
 0x167   : > { %v2403_v17 = vpop.f32.mrf.mxu2 }
 0x168   : > { %899 = vrot.lane.b32.xlu0 %v701_v1, %s2075_s17  ;;  %806 = vrot.lane.b32.xlu2 %v728_v0, %s2074_s16  ;;  %v1068_v18 = vpop.f32.mrf.mxu3 }
 0x169   : > { %901 = vrot.lane.b32.xlu1 %v753_v2, %s2075_s17  ;;  %v2408_v19 = vpop.f32.mrf.mxu0 }
 0x16b   : > { %v1368_v21 = vpop.f32.mrf.mxu1 }
 0x16c   : > { %1854 = vmatmul.msk.bf16.gmra.mxu0 %vm615_vm2, %v588_v28 }
 0x16e   : > { %1863 = vmatmul.msk.bf16.gmra.mxu1 %vm615_vm2, %v588_v28 }
 0x16f   : > { %v1018_v25 = vpop.f32.mrf.mxu2 }
 0x170   : > { %819 = vrot.lane.b32.xlu0 %v679_v3, %s2076_s12  ;;  %823 = vrot.lane.b32.xlu2 %v681_v14, %s2076_s12  ;;  %v1070_v29 = vpop.f32.mrf.mxu3 }
 0x171   : > { %821 = vrot.lane.b32.xlu1 %v731_v5, %s2076_s12  ;;  %v2420_v31 = vpop.f32.mrf.mxu0 }
 0x173   : > { %v1369_v30 = vpop.f32.mrf.mxu1 }
 0x177   : > { %v1020_v32 = vpop.f32.mrf.mxu2 }
 0x178   : > { %825 = vrot.lane.b32.xlu0 %v733_v16, %s2076_s12  ;;  %1116 = vrot.lane.b32.xlu2 %v1018_v25, %s2071_s8  ;;  %v1072_v49 = vpop.f32.mrf.mxu3 }
 0x179   : > { %1120 = vrot.lane.b32.xlu1 %v1020_v32, %s2071_s8  ;;  %v1319_v33 = vpop.f32.mrf.mxu0 }
 0x17b   : > { %v841_v34 = vpop.permute.xlu2 %840  ;;  %v1371_v36 = vpop.f32.mrf.mxu1 }
 0x17f   : > { %v1023_v35 = vpop.f32.mrf.mxu2 }
 0x180   : > { %1118 = vrot.lane.b32.xlu0 %v1070_v29, %s2071_s8  ;;  %1122 = vrot.lane.b32.xlu2 %v1072_v49, %s2071_s8  ;;  %v1075_v37 = vpop.f32.mrf.mxu3 }
 0x181   : > { %1417 = vrot.lane.b32.xlu1 %v1319_v33, %s2071_s8  ;;  %v1321_v39 = vpop.f32.mrf.mxu0 }
 0x183   : > { %v1373_v42 = vpop.f32.mrf.mxu1 }
 0x187   : > { %v1025_v40 = vpop.f32.mrf.mxu2 }
 0x188   : > { %1134 = vrot.lane.b32.xlu0 %v1023_v35, %s2072_s11  ;;  %1419 = vrot.lane.b32.xlu2 %v1371_v36, %s2071_s8  ;;  %v1077_v46 = vpop.f32.mrf.mxu3 }
 0x189   : > { %1136 = vrot.lane.b32.xlu1 %v1075_v37, %s2072_s11  ;;  %v1324_v47 = vpop.f32.mrf.mxu0 }
 0x18a   : > { %v858_v38 = vpop.permute.xlu2 %857 }
 0x18b   : > { %v1376_v52 = vpop.f32.mrf.mxu1 }
 0x18f   : > { %v1028_v48 = vpop.f32.mrf.mxu2 }
 0x190   : > { %1138 = vrot.lane.b32.xlu2 %v1025_v40, %s2072_s11  ;;  %1421 = vrot.lane.b32.xlu0 %v1321_v39, %s2071_s8  ;;  %v1080_v54 = vpop.f32.mrf.mxu3 }
 0x191   : > { %1423 = vrot.lane.b32.xlu1 %v1373_v42, %s2071_s8  ;;  %v1326_v55 = vpop.f32.mrf.mxu0 }
 0x192   : > { %v839_v43 = vpop.permute.xlu1 %838  ;;  %v767_v44 = vpop.permute.xlu2 %766 }
 0x193   : > { %v2435_v45 = vsel %vm846_vm3, %v839_v43, %v841_v34  ;;  %v1378_v61 = vpop.f32.mrf.mxu1 }
 0x197   : > { %v1030_v59 = vpop.f32.mrf.mxu2 }
 0x198   : > { %1140 = vrot.lane.b32.xlu0 %v1077_v46, %s2072_s11  ;;  %1435 = vrot.lane.b32.xlu2 %v1324_v47, %s2072_s11  ;;  %v1082_v62 = vpop.f32.mrf.mxu3 }
 0x199   : > { %1152 = vrot.lane.b32.xlu1 %v1028_v48, %s2074_s16  ;;  %v1329_v3 = vpop.f32.mrf.mxu0 }
 0x19a   : > { %v864_v41 = vpop.permute.xlu2 %863  ;;  %v843_v50 = vpop.permute.xlu0 %842 }
 0x19b   : > { %v845_v51 = vpop.permute.xlu1 %844  ;;  %v1381_v6 = vpop.f32.mrf.mxu1 }
 0x19c   : > { %v2441_v53 = vsel %vm846_vm3, %v843_v50, %v845_v51 }
 0x19f   : > { %v1033_v5 = vpop.f32.mrf.mxu2 }
 0x1a0   : > { %1437 = vrot.lane.b32.xlu0 %v1376_v52, %s2072_s11  ;;  %1154 = vrot.lane.b32.xlu2 %v1080_v54, %s2074_s16  ;;  %v1085_v14 = vpop.f32.mrf.mxu3 }
 0x1a1   : > { %1439 = vrot.lane.b32.xlu1 %v1326_v55, %s2072_s11  ;;  %v1331_v18 = vpop.f32.mrf.mxu0 }
 0x1a2   : > { %v784_v56 = vpop.permute.xlu2 %783  ;;  %v763_v57 = vpop.permute.xlu0 %762 }
 0x1a3   : > { %v765_v58 = vpop.permute.xlu1 %764 }
 0x1a4   : > { %v771_v60 = vsel %vm770_vm4, %v763_v57, %v765_v58 }
 0x1a5   : > { %v775_v10 = vadd.f32 %v771_v60, %v2320_v13  ;;  %v1383_v13 = vpop.f32.mrf.mxu1 }
 0x1a7   : > { %v1035_v21 = vpop.f32.mrf.mxu2 }
 0x1a8   : > { %1156 = vrot.lane.b32.xlu0 %v1030_v59, %s2074_s16  ;;  %1441 = vrot.lane.b32.xlu2 %v1378_v61, %s2072_s11  ;;  %v1087_v26 = vpop.f32.mrf.mxu3 }
 0x1a9   : > { %1158 = vrot.lane.b32.xlu1 %v1082_v62, %s2074_s16  ;;  %v1334_v27 = vpop.f32.mrf.mxu0 }
 0x1aa   : > { %v881_v63 = vpop.permute.xlu2 %880  ;;  %v860_v0 = vpop.permute.xlu0 %859 }
 0x1ab   : > { %v862_v1 = vpop.permute.xlu1 %861  ;;  %v2451_v2 = vsel %vm865_vm5, %v858_v38, %v860_v0 }
 0x1ac   : > { %v2454_v4 = vsel %vm865_vm5, %v862_v1, %v864_v41 }
 0x1ad   : > { %v1386_v34 = vpop.f32.mrf.mxu1 }
 0x1af   : > { %v1038_v32 = vpop.f32.mrf.mxu2 }
 0x1b0   : > { %1170 = vrot.lane.b32.xlu2 %v1033_v5, %s2076_s12  ;;  %1453 = vrot.lane.b32.xlu0 %v1329_v3, %s2074_s16  ;;  %v1090_v36 = vpop.f32.mrf.mxu3 }
 0x1b1   : > { %1455 = vrot.lane.b32.xlu1 %v1381_v6, %s2074_s16  ;;  %v1336_v37 = vpop.f32.mrf.mxu0 }
 0x1b2   : > { %v801_v7 = vpop.permute.xlu2 %800  ;;  %v769_v8 = vpop.permute.xlu0 %768 }
 0x1b3   : > { %v782_v11 = vpop.permute.xlu1 %781  ;;  %v772_v12 = vsel %vm770_vm4, %v767_v44, %v769_v8 }
 0x1b4   : > { %v790_v15 = vsel %vm789_vm6, %v782_v11, %v784_v56  ;;  %v776_v30 = vadd.f32 %v772_v12, %v2330_v20 }
 0x1b5   : > { %v794_v16 = vadd.f32 %v790_v15, %v775_v10  ;;  %v1388_v44 = vpop.f32.mrf.mxu1 }
 0x1b7   : > { %v1040_v43 = vpop.f32.mrf.mxu2 }
 0x1b8   : > { %1172 = vrot.lane.b32.xlu0 %v1085_v14, %s2076_s12  ;;  %1457 = vrot.lane.b32.xlu2 %v1331_v18, %s2074_s16  ;;  %v1092_v46 = vpop.f32.mrf.mxu3 }
 0x1b9   : > { %1174 = vrot.lane.b32.xlu1 %v1035_v21, %s2076_s12  ;;  %v1339_v47 = vpop.f32.mrf.mxu0 }
 0x1ba   : > { %v898_v22 = vpop.permute.xlu2 %897  ;;  %v877_v23 = vpop.permute.xlu0 %876 }
 0x1bb   : > { %v879_v24 = vpop.permute.xlu1 %878 }
 0x1bc   : > { %v2466_v25 = vsel %vm884_vm7, %v877_v23, %v879_v24 }
 0x1bd   : > { %v1391_v57 = vpop.f32.mrf.mxu1 }
 0x1bf   : > { %v1043_v56 = vpop.f32.mrf.mxu2 }
 0x1c0   : > { %1459 = vrot.lane.b32.xlu0 %v1383_v13, %s2074_s16  ;;  %1176 = vrot.lane.b32.xlu2 %v1087_v26, %s2076_s12  ;;  %v1095_v58 = vpop.f32.mrf.mxu3 }
 0x1c1   : > { %1471 = vrot.lane.b32.xlu1 %v1334_v27, %s2076_s12  ;;  %v1341_v62 = vpop.f32.mrf.mxu0 }
 0x1c2   : > { %v807_v28 = vpop.permute.xlu2 %806  ;;  %v786_v29 = vpop.permute.xlu0 %785 }
 0x1c3   : > { %v788_v49 = vpop.permute.xlu1 %787 }
 0x1c4   : > { %v791_v33 = vsel %vm789_vm6, %v786_v29, %v788_v49 }
 0x1c5   : > { %v795_v35 = vadd.f32 %v791_v33, %v776_v30  ;;  %v1393_v6 = vpop.f32.mrf.mxu1 }
 0x1c7   : > { %v1045_v0 = vpop.f32.mrf.mxu2 }
 0x1c8   : > { %1188 = vrot.lane.b32.xlu0 %v1038_v32, %s2069_s18  ;;  %1473 = vrot.lane.b32.xlu2 %v1386_v34, %s2076_s12  ;;  %v1097_v10 = vpop.f32.mrf.mxu3 }
 0x1c9   : > { %1190 = vrot.lane.b32.xlu1 %v1090_v36, %s2069_s18  ;;  %v1344_v11 = vpop.f32.mrf.mxu0 }
 0x1ca   : > { %v824_v38 = vpop.permute.xlu2 %823  ;;  %v883_v39 = vpop.permute.xlu0 %882 }
 0x1cb   : > { %v896_v40 = vpop.permute.xlu1 %895  ;;  %v2477_v20 = vsel %vm884_vm7, %v881_v63, %v883_v39 }
 0x1cc   : > { %v904_v42 = vsel %vm903_vm8, %v896_v40, %v898_v22 }
 0x1cf   : > { %v1048_v14 = vpop.f32.mrf.mxu2 }
 0x1d0   : > { %1192 = vrot.lane.b32.xlu2 %v1040_v43, %s2069_s18  ;;  %1475 = vrot.lane.b32.xlu0 %v1336_v37, %s2076_s12 }
 0x1d1   : > { %1477 = vrot.lane.b32.xlu1 %v1388_v44, %s2076_s12  ;;  %v1346_v29 = vpop.f32.mrf.mxu0 }
 0x1d2   : > { %v1117_v48 = vpop.permute.xlu2 %1116  ;;  %v803_v41 = vpop.permute.xlu0 %802 }
 0x1d3   : > { %v805_v50 = vpop.permute.xlu1 %804  ;;  %v809_v51 = vsel %vm808_vm9, %v801_v7, %v803_v41 }
 0x1d4   : > { %v810_v52 = vsel %vm808_vm9, %v805_v50, %v807_v28  ;;  %v813_v54 = vadd.f32 %v809_v51, %v794_v16  ;;  %v1100_v28 = vpop.f32.mrf.mxu3 }
 0x1d5   : > { %v814_v55 = vadd.f32 %v810_v52, %v795_v35 }
 0x1d7   : > { %v1050_v30 = vpop.f32.mrf.mxu2 }
 0x1d8   : > { %1194 = vrot.lane.b32.xlu0 %v1092_v46, %s2069_s18  ;;  %1489 = vrot.lane.b32.xlu2 %v1339_v47, %s2069_s18 }
 0x1d9   : > { %1206 = vrot.lane.b32.xlu1 %v1043_v56, %s2070_s30  ;;  %v1349_v39 = vpop.f32.mrf.mxu0  ;;  %v2077_v56 = vmov 0  }
 0x1da   : > { %v1123_v59 = vpop.permute.xlu2 %1122  ;;  %v900_v60 = vpop.permute.xlu0 %899  ;;  %2026 = vset.pattern.permute.xlu1 %v2077_v56  ;;  %2025 = vset.pattern.permute.xlu0 %v2077_v56 }
 0x1db   : > { %v902_v61 = vpop.permute.xlu1 %901 }
 0x1dc   : > { %v905_v63 = vsel %vm903_vm8, %v900_v60, %v902_v61 }
 0x1df   : > { %v1053_v44 = vpop.f32.mrf.mxu2 }
 0x1e0   : > { %1491 = vrot.lane.b32.xlu0 %v1391_v57, %s2069_s18  ;;  %1208 = vrot.lane.b32.xlu2 %v1095_v58, %s2070_s30 }
 0x1e1   : > { %1493 = vrot.lane.b32.xlu1 %v1341_v62, %s2069_s18 }
 0x1e2   : > { %v1420_v1 = vpop.permute.xlu2 %1419  ;;  %v820_v3 = vpop.permute.xlu0 %819 }
 0x1e3   : > { %v822_v5 = vpop.permute.xlu1 %821 }
 0x1e4   : > { %v828_v7 = vsel %vm827_vm10, %v820_v3, %v822_v5 }
 0x1e5   : > { %v832_v8 = vadd.f32 %v828_v7, %v813_v54 }
 0x1e7   : > { %v851_v12 = vadd.f32 %v2435_v45, %v832_v8  ;;  %v1396_v45 = vpop.f32.mrf.mxu1 }
 0x1e8   : > { %1210 = vrot.lane.b32.xlu0 %v1045_v0, %s2070_s30  ;;  %1495 = vrot.lane.b32.xlu2 %v1393_v6, %s2069_s18  ;;  %s1973_s18 = smul.u32 48, %s2636_s22 }
 0x1e9   : > { %v870_v15 = vadd.f32 %v2451_v2, %v851_v12  ;;  %1212 = vrot.lane.b32.xlu1 %v1097_v10, %s2070_s30 }
 0x1ea   : > { %v1139_v16 = vpop.permute.xlu2 %1138  ;;  %v826_v18 = vpop.permute.xlu0 %825 }
 0x1eb   : > { %v1121_v21 = vpop.permute.xlu1 %1120  ;;  %v829_v22 = vsel %vm827_vm10, %v824_v38, %v826_v18  ;;  %v889_v23 = vadd.f32 %v2466_v25, %v870_v15 }
 0x1ec   : > { %v1125_v24 = vsel %vm770_vm4, %v1121_v21, %v1123_v59  ;;  %v833_v13 = vadd.f32 %v829_v22, %v814_v55  ;;  %v1055_v55 = vpop.f32.mrf.mxu2 }
 0x1ed   : > { %v908_v26 = vadd.f32 %v904_v42, %v889_v23  ;;  %v1558_v23 = vld [vmem:[%s2618_s1 + $0x8] sm:$0xff] }
 0x1ee   : > { %v852_v27 = vadd.f32 %v2441_v53, %v833_v13 }
 0x1ef   : > { %v1110_v49 = vadd.f32 %v2394_v9, %v908_v26  ;;  %v1398_v38 = vpop.f32.mrf.mxu1  ;;  %v1557_v26 = vld [vmem:[%s2618_s1] sm:$0xff] }
 0x1f0   : > { %v871_v2 = vadd.f32 %v2454_v4, %v852_v27  ;;  %1224 = vrot.lane.b32.xlu2 %v1048_v14, %s2073_s13  ;;  %1507 = vrot.lane.b32.xlu0 %v1344_v11, %s2070_s30 }
 0x1f1   : > { %1509 = vrot.lane.b32.xlu1 %v1396_v45, %s2070_s30 }
 0x1f2   : > { %v890_v25 = vadd.f32 %v2477_v20, %v871_v2  ;;  %v1436_v32 = vpop.permute.xlu2 %1435  ;;  %v1119_v33 = vpop.permute.xlu0 %1118 }
 0x1f3   : > { %v1418_v34 = vpop.permute.xlu1 %1417  ;;  %v1124_v53 = vsel %vm770_vm4, %v1117_v48, %v1119_v33  ;;  %v1102_v20 = vpop.f32.mrf.mxu3 }
 0x1f4   : > { %v2510_v35 = vsel %vm770_vm4, %v1418_v34, %v1420_v1  ;;  %v1128_v4 = vadd.f32 %v1124_v53, %v1110_v49  ;;  %v909_v36 = vadd.f32 %v905_v63, %v890_v25 }
 0x1f6   : > { %v1111_v37 = vadd.f32 %v2403_v17, %v909_v36  ;;  %v1351_v17 = vpop.f32.mrf.mxu0 }
 0x1f7   : > { %v1401_v48 = vpop.f32.mrf.mxu1 }
 0x1f8   : > { %1226 = vrot.lane.b32.xlu0 %v1100_v28, %s2073_s13  ;;  %1511 = vrot.lane.b32.xlu2 %v1346_v29, %s2070_s30  ;;  %v1129_v40 = vadd.f32 %v1125_v24, %v1111_v37 }
 0x1f9   : > { %1228 = vrot.lane.b32.xlu1 %v1050_v30, %s2073_s13 }
 0x1fa   : > { %v1155_v9 = vpop.permute.xlu2 %1154  ;;  %v1135_v42 = vpop.permute.xlu0 %1134 }
 0x1fb   : > { %v1137_v43 = vpop.permute.xlu1 %1136  ;;  %v1105_v54 = vpop.f32.mrf.mxu3 }
 0x1fc   : > { %v1142_v46 = vsel %vm789_vm6, %v1135_v42, %v1137_v43 }
 0x1fd   : > { %v1146_v47 = vadd.f32 %v1142_v46, %v1128_v4 }
 0x1fe   : > { %v1354_v0 = vpop.f32.mrf.mxu0 }
 0x1ff   : > { %v1403_v57 = vpop.f32.mrf.mxu1 }
 0x200   : > { %1513 = vrot.lane.b32.xlu0 %v1398_v38, %s2070_s30  ;;  %1230 = vrot.lane.b32.xlu2 %v1102_v20, %s2073_s13  ;;  %s1972_s30 = smul.u32 6, %s2156_s7 }
 0x201   : > { %1525 = vrot.lane.b32.xlu1 %v1349_v39, %s2073_s13 }
 0x202   : > { %v1442_v41 = vpop.permute.xlu2 %1441  ;;  %v1422_v50 = vpop.permute.xlu0 %1421  ;;  %s2539_s8 = sadd.s32 %s1973_s18, %s1972_s30 }
 0x203   : > { %v1424_v51 = vpop.permute.xlu1 %1423  ;;  %v1107_v3 = vpop.f32.mrf.mxu3 }
 0x204   : > { %v2521_v52 = vsel %vm770_vm4, %v1422_v50, %v1424_v51 }
 0x206   : > { %v1356_v12 = vpop.f32.mrf.mxu0 }
 0x207   : > { %v1406_v10 = vpop.f32.mrf.mxu1 }
 0x208   : > { %1242 = vrot.lane.b32.xlu0 %v1053_v44, %s2075_s17  ;;  %1246 = vrot.lane.b32.xlu2 %v1055_v55, %s2075_s17 }
 0x209   : > { %1244 = vrot.lane.b32.xlu1 %v1105_v54, %s2075_s17 }
 0x20a   : > { %v1171_v58 = vpop.permute.xlu2 %1170  ;;  %v1141_v59 = vpop.permute.xlu0 %1140 }
 0x20b   : > { %v1153_v60 = vpop.permute.xlu1 %1152  ;;  %v1143_v61 = vsel %vm789_vm6, %v1139_v16, %v1141_v59 }
 0x20c   : > { %v1160_v62 = vsel %vm808_vm9, %v1153_v60, %v1155_v9  ;;  %v1147_v63 = vadd.f32 %v1143_v61, %v1129_v40 }
 0x20d   : > { %v1164_v1 = vadd.f32 %v1160_v62, %v1146_v47  ;;  %v2078_v62 = vmov 0.0  }
 0x20f   : > { %v1408_v22 = vpop.f32.mrf.mxu1 }
 0x210   : > { %1248 = vrot.lane.b32.xlu0 %v1107_v3, %s2075_s17  ;;  %1527 = vrot.lane.b32.xlu2 %v1401_v48, %s2073_s13 }
 0x211   : > { %1531 = vrot.lane.b32.xlu1 %v1403_v57, %s2073_s13 }
 0x212   : > { %v1458_v5 = vpop.permute.xlu2 %1457  ;;  %v1438_v6 = vpop.permute.xlu0 %1437 }
 0x213   : > { %v1440_v7 = vpop.permute.xlu1 %1439  ;;  %v2534_v8 = vsel %vm789_vm6, %v1436_v32, %v1438_v6 }
 0x214   : > { %v2537_v11 = vsel %vm789_vm6, %v1440_v7, %v1442_v41 }
 0x218   : > { %1529 = vrot.lane.b32.xlu0 %v1351_v17, %s2073_s13  ;;  %1543 = vrot.lane.b32.xlu2 %v1354_v0, %s2075_s17  ;;  %s1737_s13 = sshll.u32 %s2539_s8, 3 }
 0x219   : > { %1547 = vrot.lane.b32.xlu1 %v1356_v12, %s2075_s17  ;;  %s2568_s16 = scalar_lea.vmem %s2623_s6, %s1737_s13 }
 0x21a   : > { %v1157_v14 = vpop.permute.xlu0 %1156  ;;  %v1177_v16 = vpop.permute.xlu2 %1176  ;;  %594 = vst [vmem:[%s2568_s16] sm:$0xff] %v2078_v62 }
 0x21b   : > { %v1159_v15 = vpop.permute.xlu1 %1158  ;;  %595 = vst [vmem:[%s2568_s16 + $0x18] sm:$0xff] %v2078_v62 }
 0x21c   : > { %v1161_v18 = vsel %vm808_vm9, %v1157_v14, %v1159_v15  ;;  %596 = vst [vmem:[%s2568_s16 + $0x10] sm:$0xff] %v2078_v62 }
 0x21d   : > { %v1165_v21 = vadd.f32 %v1161_v18, %v1147_v63  ;;  %597 = vst [vmem:[%s2568_s16 + $0x28] sm:$0xff] %v2078_v62 }
 0x220   : > { %1545 = vrot.lane.b32.xlu0 %v1406_v10, %s2075_s17  ;;  %1549 = vrot.lane.b32.xlu2 %v1408_v22, %s2075_s17 }
 0x221   : > { %1566 = vperm.xlu1 %2026, %v1558_v23  }
 0x222   : > { %v1454_v24 = vpop.permute.xlu0 %1453  ;;  %v1474_v27 = vpop.permute.xlu2 %1473 }
 0x223   : > { %v1456_v13 = vpop.permute.xlu1 %1455 }
 0x224   : > { %v2551_v45 = vsel %vm808_vm9, %v1454_v24, %v1456_v13 }
 0x228   : > { %1561 = vperm.xlu0 %2025, %v1557_v26  }
 0x22a   : > { %v1173_v28 = vpop.permute.xlu0 %1172  ;;  %v1193_v49 = vpop.permute.xlu2 %1192 }
 0x22b   : > { %v1175_v29 = vpop.permute.xlu1 %1174  ;;  %v1178_v2 = vsel %vm827_vm10, %v1171_v58, %v1173_v28 }
 0x22c   : > { %v1179_v30 = vsel %vm827_vm10, %v1175_v29, %v1177_v16  ;;  %v1182_v25 = vadd.f32 %v1178_v2, %v1164_v1 }
 0x22d   : > { %v1183_v32 = vadd.f32 %v1179_v30, %v1165_v21 }
 0x232   : > { %v1460_v33 = vpop.permute.xlu0 %1459  ;;  %v1490_v36 = vpop.permute.xlu2 %1489 }
 0x233   : > { %v1472_v34 = vpop.permute.xlu1 %1471  ;;  %v2559_v53 = vsel %vm808_vm9, %v1458_v5, %v1460_v33 }
 0x234   : > { %v1479_v4 = vsel %vm827_vm10, %v1472_v34, %v1474_v27 }
 0x23a   : > { %v1189_v37 = vpop.permute.xlu0 %1188  ;;  %v1209_v42 = vpop.permute.xlu2 %1208 }
 0x23b   : > { %v1191_v38 = vpop.permute.xlu1 %1190 }
 0x23c   : > { %v1196_v39 = vsel %vm846_vm3, %v1189_v37, %v1191_v38 }
 0x23d   : > { %v1200_v40 = vadd.f32 %v1196_v39, %v1182_v25 }
 0x242   : > { %v1476_v20 = vpop.permute.xlu0 %1475  ;;  %v1496_v47 = vpop.permute.xlu2 %1495 }
 0x243   : > { %v1478_v9 = vpop.permute.xlu1 %1477 }
 0x244   : > { %v1480_v43 = vsel %vm827_vm10, %v1476_v20, %v1478_v9 }
 0x24a   : > { %v1195_v44 = vpop.permute.xlu0 %1194  ;;  %v1225_v41 = vpop.permute.xlu2 %1224 }
 0x24b   : > { %v1207_v46 = vpop.permute.xlu1 %1206  ;;  %v1197_v6 = vsel %vm846_vm3, %v1193_v49, %v1195_v44 }
 0x24c   : > { %v1214_v63 = vsel %vm865_vm5, %v1207_v46, %v1209_v42  ;;  %v1201_v16 = vadd.f32 %v1197_v6, %v1183_v32 }
 0x24d   : > { %v1218_v3 = vadd.f32 %v1214_v63, %v1200_v40 }
 0x252   : > { %v1492_v48 = vpop.permute.xlu0 %1491  ;;  %v1512_v54 = vpop.permute.xlu2 %1511 }
 0x253   : > { %v1494_v17 = vpop.permute.xlu1 %1493  ;;  %v1497_v49 = vsel %vm846_vm3, %v1490_v36, %v1492_v48 }
 0x254   : > { %v1498_v40 = vsel %vm846_vm3, %v1494_v17, %v1496_v47  ;;  %v2027_v17 = vld [vmem:[%s2619_s2 + $0x1] ss:$0 sm:$0xff] }
 0x25a   : > { %v1211_v50 = vpop.permute.xlu0 %1210  ;;  %v1231_v59 = vpop.permute.xlu2 %1230 }
 0x25b   : > { %v1213_v51 = vpop.permute.xlu1 %1212 }
 0x25c   : > { %v1215_v14 = vsel %vm865_vm5, %v1211_v50, %v1213_v51 }
 0x25d   : > { %v1219_v22 = vadd.f32 %v1215_v14, %v1201_v16 }
 0x262   : > { %v1508_v55 = vpop.permute.xlu0 %1507  ;;  %v1247_v0 = vpop.permute.xlu2 %1246 }
 0x263   : > { %v1510_v56 = vpop.permute.xlu1 %1509 }
 0x26a   : > { %v1227_v57 = vpop.permute.xlu0 %1226  ;;  %v1528_v23 = vpop.permute.xlu2 %1527 }
 0x26b   : > { %v1229_v58 = vpop.permute.xlu1 %1228  ;;  %v1232_v1 = vsel %vm884_vm7, %v1225_v41, %v1227_v57 }
 0x26c   : > { %v1236_v7 = vadd.f32 %v1232_v1, %v1218_v3  ;;  %v1233_v18 = vsel %vm884_vm7, %v1229_v58, %v1231_v59 }
 0x26d   : > { %v1237_v13 = vadd.f32 %v1233_v18, %v1219_v22 }
 0x272   : > { %v1514_v60 = vpop.permute.xlu0 %1513  ;;  %v1544_v34 = vpop.permute.xlu2 %1543 }
 0x273   : > { %v1526_v61 = vpop.permute.xlu1 %1525 }
 0x27a   : > { %v1243_v5 = vpop.permute.xlu0 %1242  ;;  %v1550_v42 = vpop.permute.xlu2 %1549 }
 0x27b   : > { %v1245_v10 = vpop.permute.xlu1 %1244 }
 0x27c   : > { %v1250_v12 = vsel %vm903_vm8, %v1243_v5, %v1245_v10 }
 0x27d   : > { %v1254_v15 = vadd.f32 %v1250_v12, %v1236_v7 }
 0x27f   : > { %v1411_v21 = vadd.f32 %v2408_v19, %v1254_v15 }
 0x281   : > { %v1429_v24 = vadd.f32 %v2510_v35, %v1411_v21 }
 0x282   : > { %v1249_v26 = vpop.permute.xlu0 %1248 }
 0x283   : > { %v1447_v27 = vadd.f32 %v2534_v8, %v1429_v24  ;;  %v1532_v28 = vpop.permute.xlu1 %1531  ;;  %v1251_v29 = vsel %vm903_vm8, %v1247_v0, %v1249_v26 }
 0x284   : > { %v1255_v2 = vadd.f32 %v1251_v29, %v1237_v13 }
 0x285   : > { %v1465_v30 = vadd.f32 %v2551_v45, %v1447_v27  ;;  %v1516_v45 = vsel %vm865_vm5, %v1512_v54, %v1514_v60 }
 0x286   : > { %v1412_v25 = vadd.f32 %v2420_v31, %v1255_v2  ;;  %v1515_v31 = vsel %vm865_vm5, %v1508_v55, %v1510_v56 }
 0x287   : > { %v1483_v32 = vadd.f32 %v1479_v4, %v1465_v30 }
 0x288   : > { %v1430_v19 = vadd.f32 %v2521_v52, %v1412_v25 }
 0x289   : > { %v1501_v33 = vadd.f32 %v1497_v49, %v1483_v32 }
 0x28a   : > { %v1448_v35 = vadd.f32 %v2537_v11, %v1430_v19  ;;  %v1530_v37 = vpop.permute.xlu0 %1529 }
 0x28b   : > { %v1548_v38 = vpop.permute.xlu1 %1547  ;;  %v1534_v52 = vsel %vm884_vm7, %v1530_v37, %v1532_v28  ;;  %v1519_v9 = vadd.f32 %v1515_v31, %v1501_v33 }
 0x28c   : > { %v1466_v8 = vadd.f32 %v2559_v53, %v1448_v35  ;;  %v1552_v44 = vsel %vm903_vm8, %v1548_v38, %v1550_v42 }
 0x28e   : > { %v1484_v39 = vadd.f32 %v1480_v43, %v1466_v8  ;;  %v1533_v43 = vsel %vm884_vm7, %v1526_v61, %v1528_v23 }
 0x28f   : > { %v1537_v48 = vadd.f32 %v1533_v43, %v1519_v9 }
 0x290   : > { %v1502_v20 = vadd.f32 %v1498_v40, %v1484_v39 }
 0x292   : > { %v1520_v4 = vadd.f32 %v1516_v45, %v1502_v20  ;;  %v1546_v36 = vpop.permute.xlu0 %1545 }
 0x293   : > { %v1567_v53 = vpop.permute.xlu1 %1566  ;;  %v1551_v46 = vsel %vm903_vm8, %v1544_v34, %v1546_v36 }
 0x294   : > { %v1538_v11 = vadd.f32 %v1534_v52, %v1520_v4  ;;  %v1555_v50 = vadd.f32 %v1551_v46, %v1537_v48 }
 0x296   : > { %v1556_v47 = vadd.f32 %v1552_v44, %v1538_v11 }
 0x298   : > { %v1570_v41 = vadd.f32 %v1567_v53, %v1556_v47 }
 0x29a   : > { %v1572_v51 = vmax.f32 %v1570_v41, 0.0  ;;  %v1562_v54 = vpop.permute.xlu0 %1561 }
 0x29b   : > { %v1569_v55 = vadd.f32 %v1562_v54, %v1555_v50 }
 0x29c   : > { %v1578_v56 = vmul.f32 %v2027_v17, %v1572_v51 }
 0x29d   : > { %v1571_v57 = vmax.f32 %v1569_v55, 0.0 }
 0x29e   : > { %1580 = vst [vmem:[%s2568_s16 + $0x20] sm:$0xff] %v1578_v56 }
 0x29f   : > { %v1577_v58 = vmul.f32 %v2027_v17, %v1571_v57 }
 0x2a1   : > { %1579 = vst [vmem:[%s2568_s16 + $0x8] sm:$0xff] %v1577_v58 }
 0x2a2 PF: > { %s16_s25 = sadd.s32 1, %s2066_s25   ;;  %s2625_s21 = smov %s2058_s23 }
 0x2a3   : > { %p13_p13 = scmp.ge.s32.totalorder %s16_s25, 18   ;;  %s2626_s22 = smov %s2062_s24 }
 0x2a4   : > { %s2627_s23 = smov %s2630_s26  ;;  %s2628_s24 = smov %s2634_s27 }
 0x2a5   :  { %15 = sbr.rel (!%p13_p13) target bundleno = 3 (0x3), region = 82 }

// kernel: custom-call.2
= control target key start
LH: loop header
LB: loop body
LE: loop exit
PB: predicated region body
PF: predicated region fallthrough
CT: control target
= control target key end

     0   :  { %s105_s0 = inlined_call_operand.vmem [shape: f32[1,2,8,16,16], index: 0, kind: input, shape index: {}]   ;;  %s106_s1 = inlined_call_operand.vmem [shape: f32[1,2,8,16,16], index: 1, kind: input, shape index: {}]   ;;  %s107_s2 = inlined_call_operand.hbm [shape: c64[1,2,8,16,16], index: 2, kind: output, shape index: {}]  }
   0x1   :  { %s3_s11 = scalar_lea.hbm %s107_s2, 256 }
   0x2   :  { %4 = vsyncpa [#allocation0], 0  ;;  %s6_s14 = sshll.u32 %s105_s0, 4  ;;  %s8_s17 = sshll.u32 %s107_s2, 4  ;;  %s7_s14 = int_to_ptr.vmem [resolvable:$true] %s6_s14  ;;  %s9_s17 = int_to_ptr.hbm [resolvable:$true] %s8_s17 }
   0x3   :  { %11 = dma.vmem_to_hbm [thread:$0]  %s7_s14, 4096, %s9_s17, [#allocation0] }
   0x4   :  { %74 = dma.done.wait [#allocation0], 4096  }
   0x5   :  { %75 = vsyncadd [#allocation0], 4294963200 }
   0x6   :  { %14 = vsyncpa [#allocation0], 1 }
   0x7   :  { %15 = vsyncpa [#allocation1], 0  ;;  %s17_s20 = sshll.u32 %s106_s1, 4  ;;  %s19_s21 = sshll.u32 %s3_s11, 4  ;;  %s18_s20 = int_to_ptr.vmem [resolvable:$true] %s17_s20  ;;  %s20_s21 = int_to_ptr.hbm [resolvable:$true] %s19_s21 }
   0x8   :  { %22 = dma.vmem_to_hbm [thread:$0]  %s18_s20, 4096, %s20_s21, [#allocation1] }
   0x9   :  { %76 = dma.done.wait [#allocation1], 4096  }
   0xa   :  { %77 = vsyncadd [#allocation1], 4294963200 }
   0xb   :  { %25 = vsyncpa [#allocation1], 1 }

// kernel: img_unet_wrapper_forward.5
= control target key start
LH: loop header
LB: loop body
LE: loop exit
PB: predicated region body
PF: predicated region fallthrough
CT: control target
= control target key end

     0   :  { %s3945_s21 = smov 0   ;;  %s3947_s22 = smov 0   ;;  %s5104_s0 = inlined_call_operand.vmem [shape: bf16[3,72,16], index: 0, kind: input, shape index: {}]   ;;  %s5105_s1 = inlined_call_operand.vmem [shape: bf16[3,72,8], index: 1, kind: input, shape index: {}]   ;;  %s5106_s2 = inlined_call_operand.vmem [shape: f32[8,1], index: 2, kind: input, shape index: {}]   ;;  %s5107_s3 = inlined_call_operand.vmem [shape: bf16[2,8], index: 3, kind: input, shape index: {}]   ;;  %s5108_s4 = inlined_call_operand.vmem [shape: f32[2,1], index: 4, kind: input, shape index: {}]   ;;  %s5109_s5 = inlined_call_operand.vmem [shape: f32[1,640], index: 5, kind: input, shape index: {}]   ;;  %s5110_s6 = inlined_call_operand.vmem [shape: f32[2,8,16,640], index: 6, kind: input, shape index: {}, may-alias: {6,7,8}]   ;;  %s5111_s7 = inlined_call_operand.vmem [shape: f32[2,8,16,640], index: 7, kind: input, shape index: {}, may-alias: {6,7,8}]   ;;  %s5112_s8 = inlined_call_operand.vmem [shape: f32[2,8,16,640], index: 8, kind: input, shape index: {}, may-alias: {6,7,8}]   ;;  %s5113_s9 = inlined_call_operand.vmem [shape: f32[2,8,8,640], index: 9, kind: input, shape index: {}, may-alias: {9,10,11}]   ;;  %s5114_s10 = inlined_call_operand.vmem [shape: f32[2,8,8,640], index: 10, kind: input, shape index: {}, may-alias: {9,10,11}]   ;;  %s5115_s11 = inlined_call_operand.vmem [shape: f32[2,8,8,640], index: 11, kind: input, shape index: {}, may-alias: {9,10,11}]   ;;  %s5116_s12 = inlined_call_operand.vmem [shape: f32[2,8,2,640], index: 12, kind: output, shape index: {}]  }
   0x1   :  { %5120 = sst [smem:[#allocation8_spill]] %s5110_s6  ;;  %s3949_s23 = smov 0  }
   0x2   :  { %5121 = sst [smem:[#allocation9_spill]] %s5111_s7  ;;  %s3951_s24 = smov 0  }
   0x3   :  { %s3953_s25 = smov 0  }
   0x4 LB: > { %5122 = sst [smem:[#allocation2_spill]] %s3863_s24  ;;  %s31_s26 = sadd.s32 1, %s3859_s23  ;;  %s3867_s25 = sphi %s3953_s25, %s22_s25   ;;  %s3863_s24 = sphi %s3951_s24, %s5136_s24   ;;  %s3859_s23 = sphi %s3949_s23, %s5138_s23   ;;  %s3855_s22 = sphi %s3947_s22, %s5134_s22   ;;  %s3851_s21 = sphi %s3945_s21, %s5137_s21  }
   0x5   : > { %s34_s27 = sadd.s32 1, %s3863_s24  ;;  %p32_p0 = scmp.ge.s32.totalorder %s31_s26, 8 }
   0x6   : > { %p3459_p1 = scmp.ge.s32.totalorder %s3867_s25, 1  ;;  %p510_p2 = scmp.lt.s32.totalorder %s3867_s25, 17 }
   0x7   : > { %s5140_s26 = smov (%p32_p0, %s31_s26), 0  ;;  %s5142_s27 = smov (!%p32_p0, %s34_s27), %s3863_s24 }
   0x8   : > { %5123 = sst [smem:[#allocation3_spill]] %s5140_s26  ;;  %p511_p3 = pnand %p3459_p1, %p510_p2 }
   0x9   : > { %p36_p4 = scmp.ge.s32.totalorder %s5142_s27, 2 }
   0xa   : > { %514 = sbr.rel (%p511_p3) target bundleno = 1069 (0x42d), region = 68 }
   0xb   : > { %s5144_s27 = smov (%p36_p4, %s5142_s27), 0 }
   0xc   : > { %5124 = sst [smem:[#allocation4_spill]] %s5144_s27 }
   0xf   : > { %s3460_s28 = sadd.s32 4294967295, %s3851_s21  ;;  %p620_p5 = scmp.lt.s32.totalorder %s3855_s22, 1  ;;  %v3691_v62 = vld [vmem:[%s5104_s0] sm:$0xff]   ;;  %vm994_vm0 = vcmask 146432   ;;  %vm1003_vm1 = vcmask 130048   ;;  %vm2107_vm2 = vcmask 1043456  }
  0x10   : > { %p618_p6 = scmp.gt.s32.totalorder %s3460_s28, 0  ;;  %p3461_p7 = scmp.lt.s32.totalorder %s3460_s28, 7  ;;  %vm2091_vm3 = vcmask 64512   ;;  %vm1165_vm4 = vcmask 1039360   ;;  %vm1187_vm5 = vcmask 1031168   ;;  %vm1209_vm6 = vcmask 908288  }
  0x11   : > { %s5146_s22 = smov (!%p620_p5, %s3855_s22), 1  ;;  %p634_p8 = scmp.lt.s32.totalorder %s3851_s21, 7  ;;  %vm1231_vm7 = vcmask 900096   ;;  %vm1253_vm8 = vcmask 891904   ;;  %vm1275_vm9 = vcmask 769024   ;;  %vm1297_vm10 = vcmask 760832  }
  0x12   : > { %s5148_s28 = smov (!%p618_p6, %s3460_s28), 0  ;;  %s3981_s29 = smul.u32 80, %s5146_s22  ;;  %vm1319_vm11 = vcmask 752640   ;;  %vm3246_vm12 = vcmask 1041408  }
  0x13   : > { %s5150_s28 = smov (!%p3461_p7, %s5148_s28), 7  ;;  %s5125_s6 = sld [smem:[#allocation8_spill]] }
  0x14   : > { %s3768_s30 = smul.u32 10, %s5150_s28  ;;  %s5126_s7 = sld [smem:[#allocation9_spill]] }
  0x15   : > { %s3990_s13 = scalar_select %p634_p8, %s3851_s21, 7 }
  0x16   : > { %s626_s14 = sadd.s32 %s3981_s29, %s3768_s30  ;;  %p705_p9 = scmp.gt.s32.totalorder %s3851_s21, 0 }
  0x17   : > { %s3466_s15 = sshll.u32 %s626_s14, 3  ;;  %s3770_s16 = smul.u32 10, %s3990_s13 }
  0x18   : > { %s641_s30 = sadd.s32 1, %s3851_s21  ;;  %s5127_s26 = smov 18  }
  0x19   : > { %s628_s19 = scalar_lea.vmem %s5125_s6, %s3466_s15  ;;  %s638_s20 = sadd.s32 %s3770_s16, %s3981_s29 }
  0x1a   : > { %v770_v0 = vld [vmem:[%s628_s19 + $0x20] sm:$0xff]  ;;  %v775_v1 = vld [vmem:[%s628_s19 + $0x48] sm:$0xff]  ;;  %v768_v2 = vld [vmem:[%s628_s19 + $0x10] sm:$0xff]  ;;  %s3467_s27 = sshll.u32 %s638_s20, 3  ;;  %p642_p11 = scmp.lt.s32.totalorder %s641_s30, 7 }
  0x1b   : > { %v778_v3 = vpack.c.bf16 %v770_v0, %v770_v0  ;;  %v781_v4 = vpack.c.bf16 %v775_v1, %v775_v1  ;;  %v769_v5 = vld [vmem:[%s628_s19 + $0x18] sm:$0xff]  ;;  %v774_v7 = vld [vmem:[%s628_s19 + $0x40] sm:$0xff]  ;;  %v767_v11 = vld [vmem:[%s628_s19 + $0x8] sm:$0xff]  ;;  %s4001_s17 = scalar_lea.vmem %s5126_s7, %s3467_s27  ;;  %s5117_s27 = smov 18  }
  0x1c   : > { %v773_v6 = vld [vmem:[%s628_s19 + $0x38] sm:$0xff]  ;;  %v777_v8 = vpack.c.bf16 %v769_v5, %v768_v2  ;;  %v766_v10 = vld [vmem:[%s628_s19] sm:$0xff]  ;;  %v771_v12 = vld [vmem:[%s628_s19 + $0x28] sm:$0xff]  ;;  %s706_s15 = scalar_select %p705_p9, 1.0, 0.0  ;;  %v3692_v2 = vunpack.c.l.bf16 %v3691_v62 }
  0x1d   : > { %v780_v9 = vpack.c.bf16 %v774_v7, %v773_v6  ;;  %v973_v13 = vunpack.c.l.b16 %v778_v3  ;;  %v978_v14 = vunpack.c.l.b16 %v781_v4  ;;  %v772_v15 = vld [vmem:[%s628_s19 + $0x30] sm:$0xff]  ;;  %v776_v16 = vpack.c.bf16 %v767_v11, %v766_v10  ;;  %v795_v24 = vld [vmem:[%s4001_s17 + $0x18] sm:$0xff]  ;;  %v800_v26 = vld [vmem:[%s4001_s17 + $0x40] sm:$0xff]  ;;  %s5154_s30 = smov (!%p642_p11, %s641_s30), 7  ;;  %s3774_s24 = smul.u32 5, %s3990_s13 }
  0x1e   : > { %v971_v17 = vunpack.c.l.b16 %v777_v8  ;;  %v779_v20 = vpack.c.bf16 %v772_v15, %v771_v12  ;;  %v794_v22 = vld [vmem:[%s4001_s17 + $0x10] sm:$0xff]  ;;  %v799_v25 = vld [vmem:[%s4001_s17 + $0x38] sm:$0xff]  ;;  %v796_v30 = vld [vmem:[%s4001_s17 + $0x20] sm:$0xff]  ;;  %v972_v31 = vunpack.c.h.b16 %v777_v8  ;;  %s709_s16 = sshrl.u32 %s706_s15, 16  ;;  %p708_p10 = scmp.ne.f32.partialorder %s706_s15, %s706_s15  ;;  %v3693_v3 = vunpack.c.h.bf16 %v3691_v62 }
  0x1f   : > { %v976_v18 = vunpack.c.l.b16 %v780_v9  ;;  %v983_v19 = vpack.c.b16 %v978_v14, %v973_v13  ;;  %v969_v21 = vunpack.c.l.b16 %v776_v16  ;;  %v970_v27 = vunpack.c.h.b16 %v776_v16  ;;  %v801_v33 = vld [vmem:[%s4001_s17 + $0x48] sm:$0xff]  ;;  %v792_v43 = vld [vmem:[%s4001_s17] sm:$0xff]  ;;  %v798_v46 = vld [vmem:[%s4001_s17 + $0x30] sm:$0xff]  ;;  %s710_s18 = sand.u32 1, %s709_s16  ;;  %s5156_s30 = smov (!%p642_p11, %s5154_s30), 7 }
  0x20   : > { %v975_v28 = vunpack.c.h.b16 %v779_v20  ;;  %v974_v29 = vunpack.c.l.b16 %v779_v20  ;;  %v977_v32 = vunpack.c.h.b16 %v780_v9  ;;  %v803_v35 = vpack.c.bf16 %v795_v24, %v794_v22  ;;  %v793_v44 = vld [vmem:[%s4001_s17 + $0x8] sm:$0xff]  ;;  %s711_s19 = sadd.s32 32767, %s710_s18 }
  0x21   : > { %v981_v23 = vpack.c.b16 %v976_v18, %v971_v17  ;;  %992 = vrot.lane.b32.xlu1 %v983_v19, %s5117_s27  ;;  %v806_v36 = vpack.c.bf16 %v800_v26, %v799_v25  ;;  %v804_v37 = vpack.c.bf16 %v796_v30, %v796_v30  ;;  %v807_v39 = vpack.c.bf16 %v801_v33, %v801_v33  ;;  %v797_v45 = vld [vmem:[%s4001_s17 + $0x28] sm:$0xff]  ;;  %s712_s20 = sadd.s32 %s711_s19, %s706_s15 }
  0x22   : > { %v979_v34 = vpack.c.b16 %v974_v29, %v969_v21  ;;  %v980_v38 = vpack.c.b16 %v975_v28, %v970_v27  ;;  %v1360_v40 = vunpack.c.l.b16 %v803_v35  ;;  %v982_v42 = vpack.c.b16 %v977_v32, %v972_v31  ;;  %s713_s14 = sand.u32 4294901760, %s712_s20 }
  0x23   : > { %988 = vrot.lane.b32.xlu0 %v981_v23, %s5117_s27  ;;  %v1365_v41 = vunpack.c.l.b16 %v806_v36  ;;  %v1362_v47 = vunpack.c.l.b16 %v804_v37  ;;  %v1367_v48 = vunpack.c.l.b16 %v807_v39  ;;  %v1361_v50 = vunpack.c.h.b16 %v803_v35  ;;  %s5152_s14 = smov (%p708_p10, %s713_s14), 2143289344  ;;  %v3754_v23 = vld [vmem:[%s5104_s0 + $0x8] sm:$0xff]  }
  0x24   : > { %984 = vrot.lane.b32.xlu2 %v979_v34, %s5117_s27  ;;  %v1366_v51 = vunpack.c.h.b16 %v806_v36  ;;  %v802_v52 = vpack.c.bf16 %v793_v44, %v792_v43  ;;  %v805_v53 = vpack.c.bf16 %v798_v46, %v797_v45  ;;  %s716_s17 = sshrl.u32 %s5152_s14, 16  ;;  %v3696_v35 = vunpack.c.l.bf16 %v3754_v23  ;;  %v3755_v46 = vld [vmem:[%s5104_s0 + $0x10] sm:$0xff]  }
  0x25   : > { %v1370_v49 = vpack.c.b16 %v1365_v41, %v1360_v40  ;;  %v1372_v54 = vpack.c.b16 %v1367_v48, %v1362_v47  ;;  %s738_s6 = sshll.u32 %s716_s17, 16  ;;  %v3697_v36 = vunpack.c.h.bf16 %v3754_v23 }
  0x26   : > { %v1359_v55 = vunpack.c.h.b16 %v802_v52  ;;  %v1364_v56 = vunpack.c.h.b16 %v805_v53  ;;  %v1371_v57 = vpack.c.b16 %v1366_v51, %v1361_v50  ;;  %v1358_v59 = vunpack.c.l.b16 %v802_v52  ;;  %s739_s7 = sor.u32 %s738_s6, %s716_s17  ;;  %s3772_s17 = smul.u32 5, %s5150_s28 }
  0x27   : > { %v1363_v60 = vunpack.c.l.b16 %v805_v53  ;;  %v740_v63 = vstv %s739_s7  ;;  %v3700_v50 = vunpack.c.l.bf16 %v3755_v46  ;;  %v3701_v51 = vunpack.c.h.bf16 %v3755_v46  ;;  %v3682_v46 = vld [vmem:[%s5104_s0 + $0x24] sm:$0xff]  ;;  %s4160_s20 = scalar_select %p634_p8, 1.0, 0.0 }
  0x28   : > { %v1369_v58 = vpack.c.b16 %v1364_v56, %v1359_v55  ;;  %v4032_v4 = vunpack.c.l.bf16 %v740_v63  ;;  %s3871_s7 = smov 126  }
  0x29   : > { %986 = vrot.lane.b32.xlu1 %v980_v38, %s5117_s27  ;;  %v1368_v61 = vpack.c.b16 %v1363_v60, %v1358_v59  ;;  %v3756_v59 = vld [vmem:[%s5104_s0 + $0x18] sm:$0xff]   ;;  %s721_s14 = sshrl.u32 %s4160_s20, 16  ;;  %p720_p12 = scmp.ne.f32.partialorder %s4160_s20, %s4160_s20 }
  0x2a   : > { %v752_v5 = vmul.f32 %v3692_v2, %v4032_v4  ;;  %v753_v6 = vmul.f32 %v3693_v3, %v4032_v4  ;;  %v754_v43 = vmul.f32 %v3696_v35, %v4032_v4  ;;  %v755_v44 = vmul.f32 %v3697_v36, %v4032_v4 }
  0x2b   : > { %990 = vrot.lane.b32.xlu0 %v982_v42, %s5117_s27  ;;  %v756_v52 = vmul.f32 %v3700_v50, %v4032_v4  ;;  %v757_v53 = vmul.f32 %v3701_v51, %v4032_v4  ;;  %v3704_v2 = vunpack.c.l.bf16 %v3756_v59  ;;  %v3705_v3 = vunpack.c.h.bf16 %v3756_v59 }
  0x2c   : > { %1377 = vrot.lane.b32.xlu2 %v1370_v49, %s5117_s27  ;;  %v761_v15 = vpack.c.bf16 %v753_v6, %v752_v5  ;;  %v762_v45 = vpack.c.bf16 %v755_v44, %v754_v43 }
  0x2d   : > { %v763_v55 = vpack.c.bf16 %v757_v53, %v756_v52  ;;  %v758_v5 = vmul.f32 %v3704_v2, %v4032_v4  ;;  %v759_v6 = vmul.f32 %v3705_v3, %v4032_v4  ;;  %v3683_v2 = vld [vmem:[%s5104_s0 + $0x2c] sm:$0xff] }
  0x31   : > { %1381 = vrot.lane.b32.xlu1 %v1372_v54, %s5117_s27 }
  0x33   : > { %1379 = vrot.lane.b32.xlu0 %v1371_v57, %s5117_s27 }
  0x34   : > { %1375 = vrot.lane.b32.xlu2 %v1369_v58, %s5117_s27 }
  0x3b   : > { %1373 = vrot.lane.b32.xlu0 %v1368_v61, %s5117_s27  ;;  %s3771_s27 = smul.u32 10, %s5156_s30 }
  0x3d   : > { %s650_s16 = sadd.s32 %s3771_s27, %s3981_s29 }
  0x3e   : > { %s3471_s15 = sshll.u32 %s650_s16, 3  ;;  %s4089_s16 = smul.u32 40, %s5146_s22 }
  0x3f   : > { %s4039_s19 = scalar_lea.vmem %s5112_s8, %s3471_s15 }
  0x40   : > { %v848_v9 = vld [vmem:[%s4039_s19 + $0x10] sm:$0xff]  ;;  %v849_v10 = vld [vmem:[%s4039_s19 + $0x18] sm:$0xff]  ;;  %v854_v16 = vld [vmem:[%s4039_s19 + $0x40] sm:$0xff]  ;;  %s665_s15 = sadd.s32 %s4089_s16, %s3772_s17  ;;  %s4109_s29 = sadd.s32 %s3774_s24, %s4089_s16 }
  0x41   : > { %v853_v11 = vld [vmem:[%s4039_s19 + $0x38] sm:$0xff]  ;;  %v857_v17 = vpack.c.bf16 %v849_v10, %v848_v9  ;;  %v850_v25 = vld [vmem:[%s4039_s19 + $0x20] sm:$0xff]  ;;  %v855_v26 = vld [vmem:[%s4039_s19 + $0x48] sm:$0xff]  ;;  %s3478_s28 = sshll.u32 %s665_s15, 3  ;;  %v764_v9 = vpack.c.bf16 %v759_v6, %v758_v5  ;;  %s3479_s27 = sshll.u32 %s4109_s29, 3 }
  0x42   : > { %v860_v20 = vpack.c.bf16 %v854_v16, %v853_v11  ;;  %v846_v27 = vld [vmem:[%s4039_s19] sm:$0xff]  ;;  %v858_v28 = vpack.c.bf16 %v850_v25, %v850_v25  ;;  %v861_v29 = vpack.c.bf16 %v855_v26, %v855_v26  ;;  %v847_v30 = vld [vmem:[%s4039_s19 + $0x8] sm:$0xff]  ;;  %v852_v32 = vld [vmem:[%s4039_s19 + $0x30] sm:$0xff]  ;;  %s667_s6 = scalar_lea.vmem %s5113_s9, %s3478_s28  ;;  %s679_s13 = scalar_lea.vmem %s5114_s10, %s3479_s27 }
  0x43   : > { %v1716_v21 = vunpack.c.l.b16 %v857_v17  ;;  %v851_v31 = vld [vmem:[%s4039_s19 + $0x28] sm:$0xff]  ;;  %v856_v33 = vpack.c.bf16 %v847_v30, %v846_v27  ;;  %v1717_v47 = vunpack.c.h.b16 %v857_v17  ;;  %v896_v10 = vld [vmem:[%s667_s6 + $0x10] sm:$0xff]  ;;  %v897_v11 = vld [vmem:[%s667_s6 + $0x18] sm:$0xff]  ;;  %s3775_s17 = smul.u32 5, %s5156_s30  ;;  %s3870_s30 = smov 127  }
  0x44   : > { %v1721_v22 = vunpack.c.l.b16 %v860_v20  ;;  %v859_v34 = vpack.c.bf16 %v852_v32, %v851_v31  ;;  %v1718_v37 = vunpack.c.l.b16 %v858_v28  ;;  %v1723_v38 = vunpack.c.l.b16 %v861_v29  ;;  %v898_v16 = vld [vmem:[%s667_s6 + $0x20] sm:$0xff]  ;;  %v914_v28 = vld [vmem:[%s679_s13 + $0x10] sm:$0xff]  ;;  %v915_v29 = vld [vmem:[%s679_s13 + $0x18] sm:$0xff] }
  0x45   : > { %v1715_v39 = vunpack.c.h.b16 %v856_v33  ;;  %v1722_v48 = vunpack.c.h.b16 %v860_v20  ;;  %v1714_v56 = vunpack.c.l.b16 %v856_v33  ;;  %v918_v30 = vpack.c.bf16 %v915_v29, %v914_v28  ;;  %v912_v33 = vld [vmem:[%s679_s13] sm:$0xff]  ;;  %s689_s15 = sadd.s32 %s3775_s17, %s4089_s16  ;;  %s3874_s17 = smov 109  }
  0x46   : > { %v1726_v24 = vpack.c.b16 %v1721_v22, %v1716_v21  ;;  %v1720_v40 = vunpack.c.h.b16 %v859_v34  ;;  %v1728_v41 = vpack.c.b16 %v1723_v38, %v1718_v37  ;;  %v1719_v57 = vunpack.c.l.b16 %v859_v34  ;;  %v913_v34 = vld [vmem:[%s679_s13 + $0x8] sm:$0xff]  ;;  %v916_v35 = vld [vmem:[%s679_s13 + $0x20] sm:$0xff]  ;;  %s3483_s28 = sshll.u32 %s689_s15, 3 }
  0x47   : > { %v1727_v49 = vpack.c.b16 %v1722_v48, %v1717_v47  ;;  %v2451_v36 = vunpack.c.h.b16 %v918_v30  ;;  %v917_v37 = vpack.c.bf16 %v913_v34, %v912_v33  ;;  %v919_v38 = vpack.c.bf16 %v916_v35, %v916_v35  ;;  %s691_s19 = scalar_lea.vmem %s5115_s11, %s3483_s28 }
  0x48   : > { %1733 = vrot.lane.b32.xlu1 %v1726_v24, %s5127_s26  ;;  %v1725_v42 = vpack.c.b16 %v1720_v40, %v1715_v39  ;;  %1737 = vrot.lane.b32.xlu0 %v1728_v41, %s5127_s26  ;;  %v1724_v58 = vpack.c.b16 %v1719_v57, %v1714_v56  ;;  %v955_v47 = vld [vmem:[%s691_s19 + $0x10] sm:$0xff]  ;;  %v956_v48 = vld [vmem:[%s691_s19 + $0x18] sm:$0xff]  ;;  %v2450_v50 = vunpack.c.l.b16 %v918_v30 }
  0x49   : > { %1735 = vrot.lane.b32.xlu2 %v1727_v49, %s5127_s26  ;;  %v2456_v41 = vpack.c.b16 %v2451_v36, %v2451_v36  ;;  %v2449_v43 = vunpack.c.h.b16 %v917_v37  ;;  %v959_v49 = vpack.c.bf16 %v956_v48, %v955_v47  ;;  %v2448_v51 = vunpack.c.l.b16 %v917_v37  ;;  %v953_v52 = vld [vmem:[%s691_s19] sm:$0xff]  ;;  %v954_v53 = vld [vmem:[%s691_s19 + $0x8] sm:$0xff]  ;;  %v3758_v47 = vld [vmem:[%s5104_s0 + $0x50] sm:$0xff]  }
  0x4a   : > { %v2455_v56 = vpack.c.b16 %v2450_v50, %v2450_v50  ;;  %v3712_v50 = vunpack.c.l.bf16 %v3758_v47 }
  0x4b   : > { %v2453_v57 = vpack.c.b16 %v2448_v51, %v2448_v51  ;;  %v2806_v59 = vunpack.c.l.b16 %v959_v49  ;;  %v3713_v51 = vunpack.c.h.bf16 %v3758_v47 }
  0x50   : > { %1731 = vrot.lane.b32.xlu1 %v1725_v42, %s5127_s26  ;;  %v2452_v42 = vunpack.c.l.b16 %v919_v38 }
  0x51   : > { %1729 = vrot.lane.b32.xlu2 %v1724_v58, %s5127_s26 }
  0x52   : > { %v2457_v44 = vpack.c.b16 %v2452_v42, %v2452_v42 }
  0x7e   : > { %v985_v7 = vpop.permute.xlu2 %984 }
  0x86   : > { %v1378_v54 = vpop.permute.xlu2 %1377 }
  0x8e   : > { %v1376_v62 = vpop.permute.xlu2 %1375 }
  0x93   : > { %v993_v0 = vpop.permute.xlu1 %992 }
  0x95   : > { %v989_v1 = vpop.permute.xlu0 %988 }
  0x9b   : > { %v987_v8 = vpop.permute.xlu1 %986 }
  0x9c   : > { %v995_v13 = vsel %vm994_vm0, %v985_v7, %v987_v8  ;;  %v996_v14 = vsel %vm994_vm0, %v987_v8, %v989_v1 }
  0x9d   : > { %v991_v12 = vpop.permute.xlu0 %990  ;;  %1026 = vmatpush.bf16.msra.mxu0 %v995_v13  ;;  %1059 = vmatpush.bf16.msra.mxu1 %v996_v14  ;;  %v900_v13 = vpack.c.bf16 %v897_v11, %v896_v10  ;;  %v894_v14 = vld [vmem:[%s667_s6] sm:$0xff] }
  0x9e   : > { %v997_v18 = vsel %vm994_vm0, %v989_v1, %v991_v12  ;;  %v998_v19 = vsel %vm994_vm0, %v991_v12, %v993_v0  ;;  %v1384_v1 = vsel %vm994_vm0, %v1376_v62, %v1378_v54  ;;  %v737_v12 = vld [vmem:[%s5104_s0 + $0x20] sm:$0xf] }
  0x9f   : > { %1092 = vmatpush.bf16.msra.mxu2 %v997_v18  ;;  %1125 = vmatpush.bf16.msra.mxu3 %v998_v19  ;;  %v2070_v17 = vunpack.c.h.b16 %v900_v13  ;;  %v901_v19 = vpack.c.bf16 %v898_v16, %v898_v16  ;;  %v750_v20 = vunpack.c.l.bf16 %v737_v12  ;;  %v2069_v32 = vunpack.c.l.b16 %v900_v13  ;;  %v3685_v10 = vld [vmem:[%s5104_s0 + $0x3c] sm:$0xff] }
  0xa0   : > { %3521 = vmatmul.msk.bf16.vlgmr.msra.gmra.mxu0 %vm1003_vm1, %v761_v15  ;;  %3526 = vmatmul.msk.bf16.vlgmr.msra.gmra.mxu1 %vm1003_vm1, %v761_v15 }
  0xa1   : > { %1446 = vmatpush.bf16.msrb.mxu1 %v1384_v1  ;;  %v2075_v21 = vpack.c.b16 %v2070_v17, %v2070_v17  ;;  %v2071_v22 = vunpack.c.l.b16 %v901_v19  ;;  %v760_v25 = vmul.f32 %v4032_v4, %v750_v20  ;;  %v2074_v40 = vpack.c.b16 %v2069_v32, %v2069_v32  ;;  %v3757_v32 = vld [vmem:[%s5104_s0 + $0x48] sm:$0xff]  }
  0xa2   : > { %3531 = vmatmul.msk.bf16.vlgmr.msra.gmra.mxu2 %vm1003_vm1, %v761_v15  ;;  %3536 = vmatmul.msk.bf16.vlgmr.msra.gmra.mxu3 %vm1003_vm1, %v761_v15  ;;  %v895_v15 = vld [vmem:[%s667_s6 + $0x8] sm:$0xff]  ;;  %v3708_v36 = vunpack.c.l.bf16 %v3757_v32  ;;  %v3709_v37 = vunpack.c.h.bf16 %v3757_v32 }
  0xa3   : > { %v1382_v61 = vpop.permute.xlu1 %1381  ;;  %v899_v18 = vpack.c.bf16 %v895_v15, %v894_v14  ;;  %2083 = vrot.lane.b32.xlu0 %v2075_v21, %s5127_s26  ;;  %v2076_v24 = vpack.c.b16 %v2071_v22, %v2071_v22  ;;  %v765_v27 = vpack.c.bf16 %v760_v25, %v760_v25  ;;  %2081 = vrot.lane.b32.xlu2 %v2074_v40, %s5127_s26 }
  0xa5   : > { %v1380_v60 = vpop.permute.xlu0 %1379  ;;  %v2068_v23 = vunpack.c.h.b16 %v899_v18  ;;  %2085 = vrot.lane.b32.xlu1 %v2076_v24, %s5127_s26  ;;  %v2067_v31 = vunpack.c.l.b16 %v899_v18  ;;  %v3493_v24 = vld [vmem:[%s5104_s0 + $0x44] sm:$0xf] }
  0xa6   : > { %v1385_v63 = vsel %vm994_vm0, %v1378_v54, %v1380_v60  ;;  %v1386_v0 = vsel %vm994_vm0, %v1380_v60, %v1382_v61  ;;  %v2807_v54 = vunpack.c.h.b16 %v959_v49  ;;  %v957_v61 = vld [vmem:[%s691_s19 + $0x20] sm:$0xff]  ;;  %v1346_v25 = vunpack.c.l.b16 %v3493_v24 }
  0xa7   : > { %1479 = vmatpush.bf16.msrb.mxu2 %v1385_v63  ;;  %1512 = vmatpush.bf16.msrb.mxu3 %v1386_v0  ;;  %v2073_v26 = vpack.c.b16 %v2068_v23, %v2068_v23  ;;  %v2072_v39 = vpack.c.b16 %v2067_v31, %v2067_v31  ;;  %v960_v63 = vpack.c.bf16 %v957_v61, %v957_v61 }
  0xa8   : > { %v2812_v58 = vpack.c.b16 %v2807_v54, %v2807_v54  ;;  %v1351_v28 = vpack.c.b16 %v1346_v25, %v1346_v25 }
  0xa9   : > { %v2808_v1 = vunpack.c.l.b16 %v960_v63 }
  0xab   : > { %2079 = vrot.lane.b32.xlu0 %v2073_v26, %s5127_s26  ;;  %2462 = vrot.lane.b32.xlu2 %v2455_v56, %s5127_s26  ;;  %v2813_v3 = vpack.c.b16 %v2808_v1, %v2808_v1 }
  0xad   : > { %v1374_v7 = vpop.permute.xlu0 %1373  ;;  %2077 = vrot.lane.b32.xlu1 %v2072_v39, %s5127_s26 }
  0xae   : > { %v1383_v8 = vsel %vm994_vm0, %v1374_v7, %v1376_v62  ;;  %v2811_v62 = vpack.c.b16 %v2806_v59, %v2806_v59  ;;  %v3684_v7 = vld [vmem:[%s5104_s0 + $0x34] sm:$0xff] }
  0xaf   : > { %1413 = vmatpush.bf16.msrb.mxu0 %v1383_v8  ;;  %v1736_v8 = vpop.permute.xlu2 %1735 }
  0xb0   : > { %3522 = vmatmul.msk.bf16.gmra.mxu0 %vm1003_vm1, %v762_v45  ;;  %3527 = vmatmul.msk.bf16.gmra.mxu1 %vm1003_vm1, %v762_v45 }
  0xb2   : > { %3532 = vmatmul.msk.bf16.gmra.mxu2 %vm1003_vm1, %v762_v45  ;;  %3537 = vmatmul.msk.bf16.gmra.mxu3 %vm1003_vm1, %v762_v45  ;;  %v2454_v45 = vpack.c.b16 %v2449_v43, %v2449_v43 }
  0xb3   : > { %2464 = vrot.lane.b32.xlu0 %v2456_v41, %s5127_s26  ;;  %2818 = vrot.lane.b32.xlu2 %v2811_v62, %s5127_s26 }
  0xb5   : > { %2466 = vrot.lane.b32.xlu1 %v2457_v44, %s5127_s26 }
  0xb7   : > { %v1730_v12 = vpop.permute.xlu2 %1729 }
  0xba   : > { %v1738_v11 = vpop.permute.xlu0 %1737 }
  0xbb   : > { %2460 = vrot.lane.b32.xlu0 %v2454_v45, %s5127_s26  ;;  %v1742_v15 = vsel %vm994_vm0, %v1736_v8, %v1738_v11 }
  0xbc   : > { %1868 = vmatpush.bf16.msra.mxu3 %v1742_v15 }
  0xbd   : > { %2458 = vrot.lane.b32.xlu1 %v2453_v57, %s5127_s26 }
  0xc0   : > { %3523 = vmatmul.msk.bf16.gmra.mxu0 %vm1003_vm1, %v763_v55  ;;  %3528 = vmatmul.msk.bf16.gmra.mxu1 %vm1003_vm1, %v763_v55 }
  0xc2   : > { %3533 = vmatmul.msk.bf16.gmra.mxu2 %vm1003_vm1, %v763_v55  ;;  %3538 = vmatmul.msk.bf16.gmra.mxu3 %vm1003_vm1, %v763_v55  ;;  %v958_v55 = vpack.c.bf16 %v954_v53, %v953_v52 }
  0xc3   : > { %2820 = vrot.lane.b32.xlu0 %v2812_v58, %s5127_s26 }
  0xc4   : > { %v2804_v60 = vunpack.c.l.b16 %v958_v55  ;;  %v2805_v5 = vunpack.c.h.b16 %v958_v55 }
  0xc5   : > { %2822 = vrot.lane.b32.xlu1 %v2813_v3, %s5127_s26 }
  0xc6   : > { %v2809_v0 = vpack.c.b16 %v2804_v60, %v2804_v60  ;;  %v2810_v6 = vpack.c.b16 %v2805_v5, %v2805_v5 }
  0xc8   : > { %2816 = vrot.lane.b32.xlu2 %v2810_v6, %s5127_s26 }
  0xcb   : > { %2814 = vrot.lane.b32.xlu0 %v2809_v0, %s5127_s26  ;;  %s722_s26 = sand.u32 1, %s721_s14 }
  0xcc   : > { %s723_s13 = sadd.s32 32767, %s722_s26 }
  0xcd   : > { %s724_s21 = sadd.s32 %s723_s13, %s4160_s20  ;;  %s3872_s20 = smov 111  }
  0xce   : > { %s725_s28 = sand.u32 4294901760, %s724_s21  ;;  %s3873_s13 = smov 110  }
  0xcf   : > { %s5158_s28 = smov (%p720_p12, %s725_s28), 2143289344 }
  0xd0   : > { %3524 = vmatmul.msk.bf16.gmra.mxu0 %vm1003_vm1, %v764_v9  ;;  %3529 = vmatmul.msk.bf16.gmra.mxu1 %vm1003_vm1, %v764_v9  ;;  %s728_s6 = sshrl.u32 %s5158_s28, 16  ;;  %s3875_s28 = smov 94  }
  0xd1   : > { %s818_s19 = sshll.u32 %s728_s6, 16 }
  0xd2   : > { %3534 = vmatmul.msk.bf16.gmra.mxu2 %vm1003_vm1, %v764_v9  ;;  %3539 = vmatmul.msk.bf16.gmra.mxu3 %vm1003_vm1, %v764_v9  ;;  %v1734_v9 = vpop.permute.xlu1 %1733  ;;  %s819_s16 = sor.u32 %s818_s19, %s728_s6  ;;  %s3876_s6 = smov 93  }
  0xd3   : > { %v1741_v16 = vsel %vm994_vm0, %v1734_v9, %v1736_v8  ;;  %v820_v31 = vstv %s819_s16  ;;  %s3877_s19 = smov 92  }
  0xd4   : > { %1835 = vmatpush.bf16.msra.mxu2 %v1741_v16  ;;  %v4200_v33 = vunpack.c.l.bf16 %v820_v31 }
  0xd6   : > { %v832_v40 = vmul.f32 %v3708_v36, %v4200_v33  ;;  %v833_v41 = vmul.f32 %v3709_v37, %v4200_v33  ;;  %v834_v54 = vmul.f32 %v3712_v50, %v4200_v33  ;;  %v835_v55 = vmul.f32 %v3713_v51, %v4200_v33 }
  0xd8   : > { %v841_v44 = vpack.c.bf16 %v833_v41, %v832_v40  ;;  %v842_v59 = vpack.c.bf16 %v835_v55, %v834_v54 }
  0xda   : > { %v1732_v17 = vpop.permute.xlu1 %1731 }
  0xdb   : > { %v1739_v18 = vsel %vm994_vm0, %v1730_v12, %v1732_v17  ;;  %v1740_v19 = vsel %vm994_vm0, %v1732_v17, %v1734_v9 }
  0xdc   : > { %1769 = vmatpush.bf16.msra.mxu0 %v1739_v18  ;;  %1802 = vmatpush.bf16.msra.mxu1 %v1740_v19 }
  0xe0   : > { %3525 = vmatmul.msk.bf16.gmra.mxu0 %vm1003_vm1, %v765_v27  ;;  %3530 = vmatmul.msk.bf16.gmra.mxu1 %vm1003_vm1, %v765_v27 }
  0xe2   : > { %3535 = vmatmul.msk.bf16.gmra.mxu2 %vm1003_vm1, %v765_v27  ;;  %3540 = vmatmul.msk.bf16.gmra.mxu3 %vm1003_vm1, %v765_v27 }
  0xf0   : > { %3557 = vmatmul.msk.bf16.vlgmr.msrb.gmra.mxu0 %vm1003_vm1, %v3682_v46  ;;  %3562 = vmatmul.msk.bf16.vlgmr.msrb.gmra.mxu1 %vm1003_vm1, %v3682_v46 }
  0xf2   : > { %3567 = vmatmul.msk.bf16.vlgmr.msrb.gmra.mxu2 %vm1003_vm1, %v3682_v46  ;;  %3572 = vmatmul.msk.bf16.vlgmr.msrb.gmra.mxu3 %vm1003_vm1, %v3682_v46 }
  0xfd   : > { %v2082_v3 = vpop.permute.xlu2 %2081 }
 0x100   : > { %3558 = vmatmul.msk.bf16.gmra.mxu0 %vm1003_vm1, %v3683_v2  ;;  %3563 = vmatmul.msk.bf16.gmra.mxu1 %vm1003_vm1, %v3683_v2 }
 0x102   : > { %3568 = vmatmul.msk.bf16.gmra.mxu2 %vm1003_vm1, %v3683_v2  ;;  %3573 = vmatmul.msk.bf16.gmra.mxu3 %vm1003_vm1, %v3683_v2  ;;  %v3759_v2 = vld [vmem:[%s5104_s0 + $0x58] sm:$0xff]  }
 0x103   : > { %v3716_v9 = vunpack.c.l.bf16 %v3759_v2 }
 0x105   : > { %v836_v18 = vmul.f32 %v3716_v9, %v4200_v33  ;;  %v2463_v24 = vpop.permute.xlu2 %2462 }
 0x110   : > { %3559 = vmatmul.msk.bf16.gmra.mxu0 %vm1003_vm1, %v3684_v7  ;;  %3564 = vmatmul.msk.bf16.gmra.mxu1 %vm1003_vm1, %v3684_v7 }
 0x112   : > { %3569 = vmatmul.msk.bf16.gmra.mxu2 %vm1003_vm1, %v3684_v7  ;;  %3574 = vmatmul.msk.bf16.gmra.mxu3 %vm1003_vm1, %v3684_v7 }
 0x115   : > { %v2084_v56 = vpop.permute.xlu0 %2083 }
 0x116   : > { %v2089_v5 = vsel %vm994_vm0, %v2082_v3, %v2084_v56 }
 0x117   : > { %v2086_v62 = vpop.permute.xlu1 %2085  ;;  %v2115_v15 = vsel %vm2107_vm2, %v2089_v5, 0 }
 0x118   : > { %v2090_v63 = vsel %vm994_vm0, %v2084_v56, %v2086_v62  ;;  %2193 = vmatpush.bf16.msrb.mxu2 %v2115_v15  ;;  %v2819_v56 = vpop.permute.xlu2 %2818 }
 0x119   : > { %v2118_v1 = vsel %vm2107_vm2, %v2090_v63, 0 }
 0x11a   : > { %2226 = vmatpush.bf16.msrb.mxu3 %v2118_v1 }
 0x11d   : > { %v4168_v13 = vpop.f32.mrf.mxu0  ;;  %v4170_v14 = vpop.f32.mrf.mxu1 }
 0x11e   : > { %v2080_v0 = vpop.permute.xlu0 %2079 }
 0x11f   : > { %v2088_v6 = vsel %vm994_vm0, %v2080_v0, %v2082_v3  ;;  %v2078_v17 = vpop.permute.xlu1 %2077 }
 0x120   : > { %3560 = vmatmul.msk.bf16.gmra.mxu0 %vm1003_vm1, %v3685_v10  ;;  %3565 = vmatmul.msk.bf16.gmra.mxu1 %vm1003_vm1, %v3685_v10  ;;  %v2112_v16 = vsel %vm2107_vm2, %v2088_v6, 0 }
 0x121   : > { %2160 = vmatpush.bf16.msrb.mxu1 %v2112_v16 }
 0x122   : > { %3570 = vmatmul.msk.bf16.gmra.mxu2 %vm1003_vm1, %v3685_v10  ;;  %3575 = vmatmul.msk.bf16.gmra.mxu3 %vm1003_vm1, %v3685_v10  ;;  %v3717_v10 = vunpack.c.h.bf16 %v3759_v2 }
 0x124   : > { %v837_v19 = vmul.f32 %v3717_v10, %v4200_v33 }
 0x125   : > { %v4183_v20 = vpop.f32.mrf.mxu2  ;;  %v1127_v21 = vpop.f32.mrf.mxu3 }
 0x126   : > { %v1030_v22 = vpop.f32.mrf.mxu0  ;;  %v1063_v23 = vpop.f32.mrf.mxu1 }
 0x127   : > { %1159 = vrot.lane.b32.xlu1 %v1063_v23, %s3870_s30  ;;  %1157 = vrot.lane.b32.xlu0 %v1030_v22, %s3870_s30  ;;  %v2465_v21 = vpop.permute.xlu0 %2464  ;;  %v2087_v22 = vsel %vm994_vm0, %v2078_v17, %v2080_v0  ;;  %v2467_v31 = vpop.permute.xlu1 %2466 }
 0x128   : > { %v2109_v23 = vsel %vm2107_vm2, %v2087_v22, 0  ;;  %v2817_v0 = vpop.permute.xlu2 %2816 }
 0x129   : > { %2127 = vmatpush.bf16.msrb.mxu0 %v2109_v23 }
 0x12d   : > { %v1096_v26 = vpop.f32.mrf.mxu2  ;;  %v1128_v27 = vpop.f32.mrf.mxu3 }
 0x12e   : > { %1161 = vrot.lane.b32.xlu2 %v1096_v26, %s3870_s30  ;;  %v1033_v29 = vpop.f32.mrf.mxu0  ;;  %v1066_v30 = vpop.f32.mrf.mxu1 }
 0x12f   : > { %1163 = vrot.lane.b32.xlu0 %v1128_v27, %s3870_s30  ;;  %1179 = vrot.lane.b32.xlu1 %v1033_v29, %s3871_s7  ;;  %v843_v27 = vpack.c.bf16 %v837_v19, %v836_v18  ;;  %v2461_v32 = vpop.permute.xlu0 %2460 }
 0x130   : > { %3561 = vmatmul.msk.bf16.gmra.mxu0 %vm1003_vm1, %v1351_v28  ;;  %3566 = vmatmul.msk.bf16.gmra.mxu1 %vm1003_vm1, %v1351_v28  ;;  %v2469_v36 = vsel %vm994_vm0, %v2461_v32, %v2463_v24 }
 0x132   : > { %3571 = vmatmul.msk.bf16.gmra.mxu2 %vm1003_vm1, %v1351_v28  ;;  %3576 = vmatmul.msk.bf16.gmra.mxu3 %vm1003_vm1, %v1351_v28 }
 0x135   : > { %v1099_v34 = vpop.f32.mrf.mxu2  ;;  %v1131_v35 = vpop.f32.mrf.mxu3 }
 0x136   : > { %1181 = vrot.lane.b32.xlu2 %v1066_v30, %s3871_s7  ;;  %v1035_v38 = vpop.f32.mrf.mxu0  ;;  %v1068_v39 = vpop.f32.mrf.mxu1  ;;  %v2470_v30 = vsel %vm994_vm0, %v2463_v24, %v2465_v21 }
 0x137   : > { %1183 = vrot.lane.b32.xlu0 %v1099_v34, %s3871_s7  ;;  %1185 = vrot.lane.b32.xlu1 %v1131_v35, %s3871_s7  ;;  %v2471_v34 = vsel %vm994_vm0, %v2465_v21, %v2467_v31  ;;  %v3760_v35 = vld [vmem:[%s5104_s0 + $0x60] sm:$0xff]  }
 0x138   : > { %v2497_v37 = vsel %vm2107_vm2, %v2471_v34, 0 }
 0x13d   : > { %v1101_v42 = vpop.f32.mrf.mxu2  ;;  %v1133_v43 = vpop.f32.mrf.mxu3 }
 0x13e   : > { %1201 = vrot.lane.b32.xlu2 %v1035_v38, %s3872_s20  ;;  %v1038_v45 = vpop.f32.mrf.mxu0  ;;  %v1071_v46 = vpop.f32.mrf.mxu1  ;;  %v2494_v38 = vsel %vm2107_vm2, %v2470_v30, 0 }
 0x13f   : > { %1203 = vrot.lane.b32.xlu0 %v1068_v39, %s3872_s20  ;;  %1205 = vrot.lane.b32.xlu1 %v1101_v42, %s3872_s20  ;;  %v2491_v39 = vsel %vm2107_vm2, %v2469_v36, 0  ;;  %v3720_v42 = vunpack.c.l.bf16 %v3760_v35 }
 0x140   : > { %3577 = vmatmul.msk.bf16.vlgmr.msra.gmra.mxu0 %vm1003_vm1, %v841_v44  ;;  %3582 = vmatmul.msk.bf16.vlgmr.msra.gmra.mxu1 %vm1003_vm1, %v841_v44 }
 0x141   : > { %2539 = vmatpush.bf16.msra.mxu1 %v2491_v39  ;;  %v838_v47 = vmul.f32 %v3720_v42, %v4200_v33 }
 0x142   : > { %3587 = vmatmul.msk.bf16.vlgmr.msra.gmra.mxu2 %vm1003_vm1, %v841_v44  ;;  %3592 = vmatmul.msk.bf16.vlgmr.msra.gmra.mxu3 %vm1003_vm1, %v841_v44 }
 0x143   : > { %2572 = vmatpush.bf16.msra.mxu2 %v2494_v38  ;;  %2605 = vmatpush.bf16.msra.mxu3 %v2497_v37  ;;  %v3761_v38 = vld [vmem:[%s5105_s1 + $0x8] sm:$0xff]  }
 0x145   : > { %v1104_v48 = vpop.f32.mrf.mxu2  ;;  %v1136_v49 = vpop.f32.mrf.mxu3 }
 0x146   : > { %1207 = vrot.lane.b32.xlu2 %v1133_v43, %s3872_s20  ;;  %v1040_v52 = vpop.f32.mrf.mxu0  ;;  %v1073_v53 = vpop.f32.mrf.mxu1  ;;  %v3721_v43 = vunpack.c.h.bf16 %v3760_v35 }
 0x147   : > { %1225 = vrot.lane.b32.xlu1 %v1071_v46, %s3873_s13  ;;  %1223 = vrot.lane.b32.xlu0 %v1038_v45, %s3873_s13  ;;  %v2459_v46 = vpop.permute.xlu1 %2458 }
 0x14d   : > { %v1106_v57 = vpop.f32.mrf.mxu2  ;;  %v1138_v58 = vpop.f32.mrf.mxu3 }
 0x14e   : > { %1227 = vrot.lane.b32.xlu2 %v1104_v48, %s3873_s13  ;;  %v1043_v60 = vpop.f32.mrf.mxu0  ;;  %v4223_v61 = vpop.f32.mrf.mxu1  ;;  %v839_v48 = vmul.f32 %v3721_v43, %v4200_v33  ;;  %v3728_v43 = vunpack.c.l.bf16 %v3761_v38 }
 0x14f   : > { %1247 = vrot.lane.b32.xlu1 %v1073_v53, %s3874_s17  ;;  %1245 = vrot.lane.b32.xlu0 %v1040_v52, %s3874_s17  ;;  %v2823_v22 = vpop.permute.xlu1 %2822 }
 0x150   : > { %3583 = vmatmul.msk.bf16.gmra.mxu1 %vm1003_vm1, %v842_v59  ;;  %3578 = vmatmul.msk.bf16.gmra.mxu0 %vm1003_vm1, %v842_v59  ;;  %v844_v53 = vpack.c.bf16 %v839_v48, %v838_v47  ;;  %v882_v48 = vmul.f32 %v3728_v43, %v4032_v4 }
 0x152   : > { %3588 = vmatmul.msk.bf16.gmra.mxu2 %vm1003_vm1, %v842_v59  ;;  %3593 = vmatmul.msk.bf16.gmra.mxu3 %vm1003_vm1, %v842_v59 }
 0x155   : > { %v1109_v7 = vpop.f32.mrf.mxu2  ;;  %v1141_v8 = vpop.f32.mrf.mxu3 }
 0x156   : > { %1229 = vrot.lane.b32.xlu2 %v1136_v49, %s3873_s13  ;;  %v1045_v11 = vpop.f32.mrf.mxu0  ;;  %v1078_v12 = vpop.f32.mrf.mxu1  ;;  %v2468_v49 = vsel %vm994_vm0, %v2459_v46, %v2461_v32 }
 0x157   : > { %1251 = vrot.lane.b32.xlu0 %v1138_v58, %s3874_s17  ;;  %1267 = vrot.lane.b32.xlu1 %v1043_v60, %s3875_s28  ;;  %v2488_v50 = vsel %vm2107_vm2, %v2468_v49, 0 }
 0x158   : > { %2506 = vmatpush.bf16.msra.mxu0 %v2488_v50 }
 0x15d   : > { %v1111_v25 = vpop.f32.mrf.mxu2  ;;  %v1143_v26 = vpop.f32.mrf.mxu3 }
 0x15e   : > { %1249 = vrot.lane.b32.xlu2 %v1106_v57, %s3874_s17  ;;  %v1048_v28 = vpop.f32.mrf.mxu0  ;;  %v1081_v29 = vpop.f32.mrf.mxu1  ;;  %v3502_v57 = vld [vmem:[%s5104_s0 + $0x68] sm:$0xf] }
 0x15f   : > { %1271 = vrot.lane.b32.xlu0 %v1109_v7, %s3875_s28  ;;  %1273 = vrot.lane.b32.xlu1 %v1141_v8, %s3875_s28  ;;  %v830_v60 = vunpack.c.l.bf16 %v3502_v57  ;;  %v2821_v7 = vpop.permute.xlu0 %2820  ;;  %v3723_v8 = vld [vmem:[%s5105_s1] sm:$0xff]  }
 0x160   : > { %3584 = vmatmul.msk.bf16.gmra.mxu1 %vm1003_vm1, %v843_v27  ;;  %3579 = vmatmul.msk.bf16.gmra.mxu0 %vm1003_vm1, %v843_v27  ;;  %v2827_v30 = vsel %vm994_vm0, %v2821_v7, %v2823_v22  ;;  %v2826_v31 = vsel %vm994_vm0, %v2819_v56, %v2821_v7  ;;  %v3763_v22 = vld [vmem:[%s5105_s1 + $0x18] sm:$0xff]  }
 0x161   : > { %v840_v63 = vmul.f32 %v4200_v33, %v830_v60  ;;  %v2853_v35 = vsel %vm2107_vm2, %v2827_v30, 0  ;;  %v2850_v37 = vsel %vm2107_vm2, %v2826_v31, 0 }
 0x162   : > { %3589 = vmatmul.msk.bf16.gmra.mxu2 %vm1003_vm1, %v843_v27  ;;  %3594 = vmatmul.msk.bf16.gmra.mxu3 %vm1003_vm1, %v843_v27 }
 0x163   : > { %v845_v3 = vpack.c.bf16 %v840_v63, %v840_v63 }
 0x165   : > { %v1114_v40 = vpop.f32.mrf.mxu2  ;;  %v1146_v41 = vpop.f32.mrf.mxu3 }
 0x166   : > { %1269 = vrot.lane.b32.xlu2 %v4223_v61, %s3875_s28  ;;  %v1050_v44 = vpop.f32.mrf.mxu0  ;;  %v1083_v45 = vpop.f32.mrf.mxu1 }
 0x167   : > { %1291 = vrot.lane.b32.xlu0 %v1078_v12, %s3876_s6  ;;  %1293 = vrot.lane.b32.xlu1 %v1111_v25, %s3876_s6  ;;  %v3725_v12 = vunpack.c.h.bf16 %v3723_v8  ;;  %v2815_v21 = vpop.permute.xlu0 %2814  ;;  %v3729_v44 = vunpack.c.h.bf16 %v3761_v38 }
 0x169   : > { %v881_v19 = vmul.f32 %v3725_v12, %v4032_v4  ;;  %v883_v49 = vmul.f32 %v3729_v44, %v4032_v4  ;;  %v870_v44 = vld [vmem:[%s5105_s1 + $0x20] sm:$0xf] }
 0x16d   : > { %v1116_v51 = vpop.f32.mrf.mxu2  ;;  %v1148_v52 = vpop.f32.mrf.mxu3 }
 0x16e   : > { %1289 = vrot.lane.b32.xlu2 %v1045_v11, %s3876_s6  ;;  %v4272_v54 = vpop.f32.mrf.mxu0  ;;  %v4274_v55 = vpop.f32.mrf.mxu1  ;;  %v3724_v11 = vunpack.c.l.bf16 %v3723_v8 }
 0x16f   : > { %1313 = vrot.lane.b32.xlu1 %v1081_v29, %s3877_s19  ;;  %1311 = vrot.lane.b32.xlu0 %v1048_v28, %s3877_s19  ;;  %v2824_v29 = vsel %vm994_vm0, %v2815_v21, %v2817_v0 }
 0x170   : > { %3585 = vmatmul.msk.bf16.gmra.mxu1 %vm1003_vm1, %v844_v53  ;;  %3580 = vmatmul.msk.bf16.gmra.mxu0 %vm1003_vm1, %v844_v53  ;;  %v880_v18 = vmul.f32 %v3724_v11, %v4032_v4  ;;  %v2844_v34 = vsel %vm2107_vm2, %v2824_v29, 0 }
 0x172   : > { %3590 = vmatmul.msk.bf16.gmra.mxu2 %vm1003_vm1, %v844_v53  ;;  %3595 = vmatmul.msk.bf16.gmra.mxu3 %vm1003_vm1, %v844_v53  ;;  %v889_v25 = vpack.c.bf16 %v881_v19, %v880_v18 }
 0x175   : > { %v4285_v58 = vpop.f32.mrf.mxu2  ;;  %v1514_v59 = vpop.f32.mrf.mxu3 }
 0x176   : > { %1295 = vrot.lane.b32.xlu2 %v1143_v26, %s3876_s6  ;;  %v1417_v61 = vpop.f32.mrf.mxu0  ;;  %v1450_v62 = vpop.f32.mrf.mxu1  ;;  %v2825_v26 = vsel %vm994_vm0, %v2817_v0, %v2819_v56  ;;  %v890_v56 = vpack.c.bf16 %v883_v49, %v882_v48 }
 0x177   : > { %1317 = vrot.lane.b32.xlu0 %v1146_v41, %s3877_s19  ;;  %1544 = vrot.lane.b32.xlu1 %v1417_v61, %s3870_s30  ;;  %v2847_v36 = vsel %vm2107_vm2, %v2825_v26, 0  ;;  %v3762_v61 = vld [vmem:[%s5105_s1 + $0x10] sm:$0xff]  }
 0x17d   : > { %v1483_v1 = vpop.f32.mrf.mxu2  ;;  %v1515_v2 = vpop.f32.mrf.mxu3 }
 0x17e   : > { %1315 = vrot.lane.b32.xlu2 %v1114_v40, %s3877_s19  ;;  %v1420_v5 = vpop.f32.mrf.mxu0  ;;  %v1453_v6 = vpop.f32.mrf.mxu1 }
 0x17f   : > { %1548 = vrot.lane.b32.xlu0 %v1483_v1, %s3870_s30  ;;  %1550 = vrot.lane.b32.xlu1 %v1515_v2, %s3870_s30  ;;  %v3732_v2 = vunpack.c.l.bf16 %v3762_v61 }
 0x180   : > { %3586 = vmatmul.msk.bf16.gmra.mxu1 %vm1003_vm1, %v845_v3  ;;  %3581 = vmatmul.msk.bf16.gmra.mxu0 %vm1003_vm1, %v845_v3 }
 0x181   : > { %v884_v8 = vmul.f32 %v3732_v2, %v4032_v4 }
 0x182   : > { %3591 = vmatmul.msk.bf16.gmra.mxu2 %vm1003_vm1, %v845_v3  ;;  %3596 = vmatmul.msk.bf16.gmra.mxu3 %vm1003_vm1, %v845_v3  ;;  %v3733_v3 = vunpack.c.h.bf16 %v3762_v61 }
 0x185   : > { %v1486_v9 = vpop.f32.mrf.mxu2  ;;  %v1518_v10 = vpop.f32.mrf.mxu3 }
 0x186   : > { %1546 = vrot.lane.b32.xlu2 %v1450_v62, %s3870_s30  ;;  %v1422_v15 = vpop.f32.mrf.mxu0  ;;  %v1455_v16 = vpop.f32.mrf.mxu1 }
 0x187   : > { %1569 = vrot.lane.b32.xlu0 %v1486_v9, %s3871_s7  ;;  %1571 = vrot.lane.b32.xlu1 %v1518_v10, %s3871_s7  ;;  %v885_v9 = vmul.f32 %v3733_v3, %v4032_v4 }
 0x188   : > { %v4304_v17 = vpop.permute.xlu2 %1161 }
 0x18d   : > { %v1488_v23 = vpop.f32.mrf.mxu2  ;;  %v1520_v24 = vpop.f32.mrf.mxu3 }
 0x18e   : > { %1565 = vrot.lane.b32.xlu2 %v1420_v5, %s3871_s7  ;;  %v1425_v27 = vpop.f32.mrf.mxu0  ;;  %v1458_v28 = vpop.f32.mrf.mxu1 }
 0x18f   : > { %1588 = vrot.lane.b32.xlu0 %v1455_v16, %s3872_s20  ;;  %1590 = vrot.lane.b32.xlu1 %v1488_v23, %s3872_s20  ;;  %v891_v16 = vpack.c.bf16 %v885_v9, %v884_v8 }
 0x190   : > { %v4315_v32 = vpop.permute.xlu2 %1181  ;;  %3602 = vmatmul.msk.bf16.vlgmr.msrb.gmra.mxu1 %vm2091_vm3, %v889_v25  ;;  %3597 = vmatmul.msk.bf16.vlgmr.msrb.gmra.mxu0 %vm2091_vm3, %v889_v25 }
 0x191   : > { %2895 = vmatpush.bf16.msrb.mxu1 %v2847_v36  ;;  %2862 = vmatpush.bf16.msrb.mxu0 %v2844_v34 }
 0x192   : > { %3607 = vmatmul.msk.bf16.vlgmr.msrb.gmra.mxu2 %vm2091_vm3, %v889_v25  ;;  %3612 = vmatmul.msk.bf16.vlgmr.msrb.gmra.mxu3 %vm2091_vm3, %v889_v25 }
 0x193   : > { %2928 = vmatpush.bf16.msrb.mxu2 %v2850_v37  ;;  %2961 = vmatpush.bf16.msrb.mxu3 %v2853_v35 }
 0x195   : > { %v1491_v39 = vpop.f32.mrf.mxu2  ;;  %v1523_v40 = vpop.f32.mrf.mxu3 }
 0x196   : > { %1567 = vrot.lane.b32.xlu2 %v1453_v6, %s3871_s7  ;;  %v1427_v41 = vpop.f32.mrf.mxu0  ;;  %v1460_v42 = vpop.f32.mrf.mxu1 }
 0x197   : > { %1609 = vrot.lane.b32.xlu1 %v1458_v28, %s3873_s13  ;;  %1607 = vrot.lane.b32.xlu0 %v1425_v27, %s3873_s13  ;;  %v3736_v27 = vunpack.c.l.bf16 %v3763_v22  ;;  %v3737_v28 = vunpack.c.h.bf16 %v3763_v22 }
 0x198   : > { %v4331_v45 = vpop.permute.xlu2 %1201 }
 0x199   : > { %v4333_v46 = vpop.permute.xlu1 %1159  ;;  %v4335_v47 = vpop.permute.xlu0 %1157  ;;  %v886_v34 = vmul.f32 %v3736_v27, %v4032_v4  ;;  %v887_v35 = vmul.f32 %v3737_v28, %v4032_v4 }
 0x19d   : > { %v1493_v50 = vpop.f32.mrf.mxu2  ;;  %v1525_v51 = vpop.f32.mrf.mxu3 }
 0x19e   : > { %1586 = vrot.lane.b32.xlu2 %v1422_v15, %s3872_s20  ;;  %v1430_v52 = vpop.f32.mrf.mxu0  ;;  %v1463_v53 = vpop.f32.mrf.mxu1 }
 0x19f   : > { %1613 = vrot.lane.b32.xlu0 %v1523_v40, %s3873_s13  ;;  %1628 = vrot.lane.b32.xlu1 %v1427_v41, %s3874_s17  ;;  %v892_v40 = vpack.c.bf16 %v887_v35, %v886_v34 }
 0x1a0   : > { %v4342_v57 = vpop.permute.xlu2 %1207  ;;  %3598 = vmatmul.msk.bf16.gmra.mxu0 %vm2091_vm3, %v890_v56  ;;  %3603 = vmatmul.msk.bf16.gmra.mxu1 %vm2091_vm3, %v890_v56 }
 0x1a1   : > { %v4344_v59 = vpop.permute.xlu0 %1163  ;;  %v4346_v60 = vpop.permute.xlu1 %1179 }
 0x1a2   : > { %3608 = vmatmul.msk.bf16.gmra.mxu2 %vm2091_vm3, %v890_v56  ;;  %3613 = vmatmul.msk.bf16.gmra.mxu3 %vm2091_vm3, %v890_v56 }
 0x1a5   : > { %v1496_v62 = vpop.f32.mrf.mxu2  ;;  %v1528_v63 = vpop.f32.mrf.mxu3 }
 0x1a6   : > { %1592 = vrot.lane.b32.xlu2 %v1520_v24, %s3872_s20  ;;  %v1432_v0 = vpop.f32.mrf.mxu0  ;;  %v1465_v1 = vpop.f32.mrf.mxu1 }
 0x1a7   : > { %1632 = vrot.lane.b32.xlu0 %v1493_v50, %s3874_s17  ;;  %1634 = vrot.lane.b32.xlu1 %v1525_v51, %s3874_s17 }
 0x1a8   : > { %v4358_v5 = vpop.permute.xlu2 %1227 }
 0x1a9   : > { %v4360_v6 = vpop.permute.xlu0 %1183  ;;  %v4362_v7 = vpop.permute.xlu1 %1185 }
 0x1ad   : > { %v1498_v10 = vpop.f32.mrf.mxu2  ;;  %v1530_v11 = vpop.f32.mrf.mxu3 }
 0x1ae   : > { %1611 = vrot.lane.b32.xlu2 %v1491_v39, %s3873_s13  ;;  %v1435_v12 = vpop.f32.mrf.mxu0  ;;  %v1468_v15 = vpop.f32.mrf.mxu1 }
 0x1af   : > { %1651 = vrot.lane.b32.xlu0 %v1463_v53, %s3875_s28  ;;  %1653 = vrot.lane.b32.xlu1 %v1496_v62, %s3875_s28 }
 0x1b0   : > { %v4369_v18 = vpop.permute.xlu2 %1229  ;;  %3599 = vmatmul.msk.bf16.gmra.mxu0 %vm2091_vm3, %v891_v16  ;;  %3604 = vmatmul.msk.bf16.gmra.mxu1 %vm2091_vm3, %v891_v16 }
 0x1b1   : > { %v4371_v19 = vpop.permute.xlu0 %1203  ;;  %v4373_v21 = vpop.permute.xlu1 %1205 }
 0x1b2   : > { %3609 = vmatmul.msk.bf16.gmra.mxu2 %vm2091_vm3, %v891_v16  ;;  %3614 = vmatmul.msk.bf16.gmra.mxu3 %vm2091_vm3, %v891_v16 }
 0x1b5   : > { %v1501_v23 = vpop.f32.mrf.mxu2  ;;  %v1533_v24 = vpop.f32.mrf.mxu3 }
 0x1b6   : > { %1630 = vrot.lane.b32.xlu2 %v1460_v42, %s3874_s17  ;;  %v1437_v25 = vpop.f32.mrf.mxu0  ;;  %v1470_v26 = vpop.f32.mrf.mxu1 }
 0x1b7   : > { %1672 = vrot.lane.b32.xlu1 %v1465_v1, %s3876_s6  ;;  %1670 = vrot.lane.b32.xlu0 %v1432_v0, %s3876_s6 }
 0x1b8   : > { %v4385_v29 = vpop.permute.xlu2 %1249 }
 0x1b9   : > { %v4387_v30 = vpop.permute.xlu1 %1225  ;;  %v4389_v31 = vpop.permute.xlu0 %1223 }
 0x1bd   : > { %v1503_v36 = vpop.f32.mrf.mxu2  ;;  %v1535_v37 = vpop.f32.mrf.mxu3 }
 0x1be   : > { %1649 = vrot.lane.b32.xlu2 %v1430_v52, %s3875_s28  ;;  %v4394_v38 = vpop.f32.mrf.mxu0  ;;  %v4396_v39 = vpop.f32.mrf.mxu1  ;;  %v879_v52 = vunpack.c.l.bf16 %v870_v44 }
 0x1bf   : > { %5128 = vst [vmem:[#allocation5_spill] sm:$0xff] %v4394_v38  ;;  %1674 = vrot.lane.b32.xlu1 %v1498_v10, %s3876_s6  ;;  %1691 = vrot.lane.b32.xlu0 %v1435_v12, %s3877_s19 }
 0x1c0   : > { %5129 = vst [vmem:[#allocation6_spill] sm:$0xff] %v4396_v39  ;;  %v4400_v41 = vpop.permute.xlu2 %1269  ;;  %3600 = vmatmul.msk.bf16.gmra.mxu0 %vm2091_vm3, %v892_v40  ;;  %3605 = vmatmul.msk.bf16.gmra.mxu1 %vm2091_vm3, %v892_v40  ;;  %v888_v62 = vmul.f32 %v879_v52, %v4032_v4 }
 0x1c1   : > { %v4402_v42 = vpop.permute.xlu1 %1247  ;;  %v4404_v43 = vpop.permute.xlu0 %1245 }
 0x1c2   : > { %3610 = vmatmul.msk.bf16.gmra.mxu2 %vm2091_vm3, %v892_v40  ;;  %3615 = vmatmul.msk.bf16.gmra.mxu3 %vm2091_vm3, %v892_v40  ;;  %v893_v3 = vpack.c.bf16 %v888_v62, %v888_v62 }
 0x1c5   : > { %v4413_v48 = vpop.f32.mrf.mxu2  ;;  %v1870_v49 = vpop.f32.mrf.mxu3 }
 0x1c6   : > { %5130 = vst [vmem:[#allocation7_spill] sm:$0xff] %v4413_v48  ;;  %1655 = vrot.lane.b32.xlu2 %v1528_v63, %s3875_s28  ;;  %v1773_v50 = vpop.f32.mrf.mxu0  ;;  %v1806_v51 = vpop.f32.mrf.mxu1 }
 0x1c7   : > { %1693 = vrot.lane.b32.xlu1 %v1468_v15, %s3877_s19  ;;  %1697 = vrot.lane.b32.xlu0 %v1533_v24, %s3877_s19 }
 0x1c8   : > { %v4418_v53 = vpop.permute.xlu2 %1289 }
 0x1c9   : > { %v4420_v56 = vpop.permute.xlu0 %1251  ;;  %v4422_v61 = vpop.permute.xlu1 %1267 }
 0x1cd   : > { %v1839_v0 = vpop.f32.mrf.mxu2  ;;  %v1871_v1 = vpop.f32.mrf.mxu3 }
 0x1ce   : > { %1676 = vrot.lane.b32.xlu2 %v1530_v11, %s3876_s6  ;;  %v1776_v63 = vpop.f32.mrf.mxu0  ;;  %v1809_v2 = vpop.f32.mrf.mxu1 }
 0x1cf   : > { %1904 = vrot.lane.b32.xlu0 %v1839_v0, %s3870_s30  ;;  %1900 = vrot.lane.b32.xlu1 %v1773_v50, %s3870_s30 }
 0x1d0   : > { %v4428_v8 = vpop.permute.xlu2 %1295  ;;  %3601 = vmatmul.msk.bf16.gmra.mxu0 %vm2091_vm3, %v893_v3  ;;  %3606 = vmatmul.msk.bf16.gmra.mxu1 %vm2091_vm3, %v893_v3 }
 0x1d1   : > { %v4430_v9 = vpop.permute.xlu0 %1271  ;;  %v4432_v10 = vpop.permute.xlu1 %1273 }
 0x1d2   : > { %3611 = vmatmul.msk.bf16.gmra.mxu2 %vm2091_vm3, %v893_v3  ;;  %3616 = vmatmul.msk.bf16.gmra.mxu3 %vm2091_vm3, %v893_v3 }
 0x1d5   : > { %v1842_v4 = vpop.f32.mrf.mxu2  ;;  %v1874_v11 = vpop.f32.mrf.mxu3 }
 0x1d6   : > { %1695 = vrot.lane.b32.xlu2 %v1501_v23, %s3877_s19  ;;  %v1778_v12 = vpop.f32.mrf.mxu0  ;;  %v1811_v15 = vpop.f32.mrf.mxu1  ;;  %v3686_v23 = vld [vmem:[%s5105_s1 + $0x24] sm:$0xff] }
 0x1d7   : > { %1923 = vrot.lane.b32.xlu0 %v1809_v2, %s3871_s7  ;;  %1906 = vrot.lane.b32.xlu1 %v1871_v1, %s3870_s30  ;;  %v3687_v1 = vld [vmem:[%s5105_s1 + $0x2c] sm:$0xff] }
 0x1d8   : > { %v4441_v16 = vpop.permute.xlu2 %1315 }
 0x1d9   : > { %v4443_v22 = vpop.permute.xlu0 %1291  ;;  %v4445_v24 = vpop.permute.xlu1 %1293 }
 0x1dd   : > { %v1844_v25 = vpop.f32.mrf.mxu2  ;;  %v1876_v26 = vpop.f32.mrf.mxu3 }
 0x1de   : > { %1902 = vrot.lane.b32.xlu2 %v1806_v51, %s3870_s30  ;;  %v1781_v27 = vpop.f32.mrf.mxu0  ;;  %v4448_v28 = vpop.f32.mrf.mxu1 }
 0x1df   : > { %1925 = vrot.lane.b32.xlu1 %v1842_v4, %s3871_s7  ;;  %1942 = vrot.lane.b32.xlu0 %v1778_v12, %s3872_s20 }
 0x1e0   : > { %v4455_v34 = vpop.permute.xlu2 %1546  ;;  %3633 = vmatmul.msk.bf16.vlgmr.msra.gmra.mxu0 %vm2091_vm3, %v3686_v23  ;;  %3638 = vmatmul.msk.bf16.vlgmr.msra.gmra.mxu1 %vm2091_vm3, %v3686_v23 }
 0x1e1   : > { %v4457_v35 = vpop.permute.xlu1 %1313  ;;  %v4459_v36 = vpop.permute.xlu0 %1311 }
 0x1e2   : > { %3643 = vmatmul.msk.bf16.vlgmr.msra.gmra.mxu2 %vm2091_vm3, %v3686_v23  ;;  %3648 = vmatmul.msk.bf16.vlgmr.msra.gmra.mxu3 %vm2091_vm3, %v3686_v23 }
 0x1e5   : > { %v1879_v37 = vpop.f32.mrf.mxu3  ;;  %v1847_v40 = vpop.f32.mrf.mxu2 }
 0x1e6   : > { %1921 = vrot.lane.b32.xlu2 %v1776_v63, %s3871_s7  ;;  %v4466_v44 = vpop.f32.mrf.mxu0  ;;  %v1816_v49 = vpop.f32.mrf.mxu1 }
 0x1e7   : > { %1944 = vrot.lane.b32.xlu1 %v1811_v15, %s3872_s20  ;;  %1948 = vrot.lane.b32.xlu0 %v1876_v26, %s3872_s20 }
 0x1e8   : > { %v4470_v50 = vpop.permute.xlu2 %1565 }
 0x1e9   : > { %v4472_v51 = vpop.permute.xlu0 %1317  ;;  %v4474_v52 = vpop.permute.xlu1 %1544 }
 0x1ed   : > { %v4476_v62 = vpop.f32.mrf.mxu3  ;;  %v1849_v0 = vpop.f32.mrf.mxu2 }
 0x1ee   : > { %1927 = vrot.lane.b32.xlu2 %v1874_v11, %s3871_s7  ;;  %v1786_v63 = vpop.f32.mrf.mxu0  ;;  %v4482_v2 = vpop.f32.mrf.mxu1  ;;  %v1166_v11 = vsel %vm1165_vm4, %v4335_v47, %v4333_v46  ;;  %v1210_v47 = vsel %vm1209_vm6, %v4331_v45, %v4371_v19  ;;  %v1190_v45 = vsel %vm1187_vm5, %v4360_v6, %v4362_v7  ;;  %v1276_v7 = vsel %vm1275_vm9, %v4422_v61, %v4400_v41 }
 0x1ef   : > { %1967 = vrot.lane.b32.xlu0 %v1847_v40, %s3873_s13  ;;  %1963 = vrot.lane.b32.xlu1 %v1781_v27, %s3873_s13  ;;  %v1188_v27 = vsel %vm1187_vm5, %v4346_v60, %v4315_v32  ;;  %v1298_v61 = vsel %vm1297_vm10, %v4418_v53, %v4443_v22  ;;  %v1320_v53 = vsel %vm1319_vm11, %v4459_v36, %v4457_v35 }
 0x1f0   : > { %v4486_v3 = vpop.permute.xlu2 %1567  ;;  %3634 = vmatmul.msk.bf16.gmra.mxu0 %vm2091_vm3, %v3687_v1  ;;  %3639 = vmatmul.msk.bf16.gmra.mxu1 %vm2091_vm3, %v3687_v1 }
 0x1f1   : > { %v4488_v4 = vpop.permute.xlu0 %1548  ;;  %v4490_v12 = vpop.permute.xlu1 %1550 }
 0x1f2   : > { %3644 = vmatmul.msk.bf16.gmra.mxu2 %vm2091_vm3, %v3687_v1  ;;  %3649 = vmatmul.msk.bf16.gmra.mxu3 %vm2091_vm3, %v3687_v1  ;;  %v1172_v1 = vadd.f32 %v1166_v11, %v4168_v13  ;;  %v1168_v13 = vsel %vm1165_vm4, %v4304_v17, %v4344_v59  ;;  %v1254_v11 = vsel %vm1253_vm8, %v4404_v43, %v4402_v42 }
 0x1f4   : > { %v1194_v39 = vadd.f32 %v1188_v27, %v1172_v1  ;;  %v1174_v27 = vadd.f32 %v1168_v13, %v4183_v20 }
 0x1f5   : > { %v4499_v15 = vpop.f32.mrf.mxu3  ;;  %v4501_v26 = vpop.f32.mrf.mxu2 }
 0x1f6   : > { %1946 = vrot.lane.b32.xlu2 %v1844_v25, %s3872_s20  ;;  %v4507_v23 = vpop.f32.mrf.mxu0  ;;  %v4509_v40 = vpop.f32.mrf.mxu1  ;;  %v1196_v43 = vadd.f32 %v1190_v45, %v1174_v27  ;;  %v1234_v27 = vsel %vm1231_vm7, %v4358_v5, %v4369_v18 }
 0x1f7   : > { %1986 = vrot.lane.b32.xlu0 %v1816_v49, %s3874_s17  ;;  %1969 = vrot.lane.b32.xlu1 %v1879_v37, %s3873_s13  ;;  %v1232_v37 = vsel %vm1231_vm7, %v4389_v31, %v4387_v30  ;;  %v1216_v49 = vadd.f32 %v1210_v47, %v1194_v39  ;;  %v1212_v31 = vsel %vm1209_vm6, %v4373_v21, %v4342_v57  ;;  %v3688_v57 = vld [vmem:[%s5105_s1 + $0x34] sm:$0xff] }
 0x1f8   : > { %v4517_v48 = vpop.permute.xlu2 %1586  ;;  %v1218_v13 = vadd.f32 %v1212_v31, %v1196_v43 }
 0x1f9   : > { %v4519_v60 = vpop.permute.xlu0 %1569  ;;  %v4521_v25 = vpop.permute.xlu1 %1571  ;;  %v1238_v1 = vadd.f32 %v1232_v37, %v1216_v49 }
 0x1fa   : > { %v1240_v36 = vadd.f32 %v1234_v27, %v1218_v13 }
 0x1fb   : > { %v1260_v47 = vadd.f32 %v1254_v11, %v1238_v1  ;;  %v1189_v11 = vsel %vm1187_vm5, %v4315_v32, %v4360_v6  ;;  %v1211_v32 = vsel %vm1209_vm6, %v4371_v19, %v4373_v21  ;;  %v1278_v6 = vsel %vm1275_vm9, %v4430_v9, %v4432_v10 }
 0x1fc   : > { %v1233_v19 = vsel %vm1231_vm7, %v4387_v30, %v4358_v5  ;;  %v1300_v21 = vsel %vm1297_vm10, %v4445_v24, %v4428_v8  ;;  %v1552_v10 = vsel %vm1165_vm4, %v4474_v52, %v4455_v34  ;;  %v1255_v5 = vsel %vm1253_vm8, %v4402_v42, %v4385_v29 }
 0x1fd   : > { %v4536_v38 = vpop.f32.mrf.mxu3  ;;  %v4538_v59 = vpop.f32.mrf.mxu2  ;;  %v1282_v37 = vadd.f32 %v1276_v7, %v1260_v47  ;;  %v1322_v30 = vsel %vm1319_vm11, %v4441_v16, %v4472_v51  ;;  %v1573_v8 = vsel %vm1187_vm5, %v4470_v50, %v4486_v3  ;;  %v1299_v50 = vsel %vm1297_vm10, %v4443_v22, %v4445_v24  ;;  %v3689_v22 = vld [vmem:[%s5105_s1 + $0x3c] sm:$0xff] }
 0x1fe   : > { %1965 = vrot.lane.b32.xlu2 %v4448_v28, %s3873_s13  ;;  %v4548_v39 = vpop.f32.mrf.mxu0  ;;  %v4550_v20 = vpop.f32.mrf.mxu1  ;;  %v1321_v24 = vsel %vm1319_vm11, %v4457_v35, %v4441_v16 }
 0x1ff   : > { %1988 = vrot.lane.b32.xlu1 %v1849_v0, %s3874_s17  ;;  %2005 = vrot.lane.b32.xlu0 %v1786_v63, %s3875_s28  ;;  %v1167_v0 = vsel %vm1165_vm4, %v4333_v46, %v4304_v17  ;;  %v1304_v63 = vadd.f32 %v1298_v61, %v1282_v37  ;;  %v1256_v17 = vsel %vm1253_vm8, %v4385_v29, %v4420_v56 }
 0x200   : > { %v4560_v28 = vpop.permute.xlu2 %1592  ;;  %3635 = vmatmul.msk.bf16.gmra.mxu0 %vm2091_vm3, %v3688_v57  ;;  %3640 = vmatmul.msk.bf16.gmra.mxu1 %vm2091_vm3, %v3688_v57  ;;  %v1173_v46 = vadd.f32 %v1167_v0, %v4170_v14  ;;  %v1262_v43 = vadd.f32 %v1256_v17, %v1240_v36 }
 0x201   : > { %v4562_v49 = vpop.permute.xlu0 %1588  ;;  %v4564_v45 = vpop.permute.xlu1 %1590  ;;  %v1326_v1 = vadd.f32 %v1320_v53, %v1304_v63 }
 0x202   : > { %3645 = vmatmul.msk.bf16.gmra.mxu2 %vm2091_vm3, %v3688_v57  ;;  %3650 = vmatmul.msk.bf16.gmra.mxu3 %vm2091_vm3, %v3688_v57  ;;  %v1195_v14 = vadd.f32 %v1189_v11, %v1173_v46  ;;  %v1284_v57 = vadd.f32 %v1278_v6, %v1262_v43  ;;  %v1594_v0 = vsel %vm1209_vm6, %v4517_v48, %v4562_v49 }
 0x204   : > { %v1217_v47 = vadd.f32 %v1211_v32, %v1195_v14  ;;  %v1306_v13 = vadd.f32 %v1300_v21, %v1284_v57 }
 0x205   : > { %v4586_v31 = vpop.f32.mrf.mxu3  ;;  %v4588_v7 = vpop.f32.mrf.mxu2 }
 0x206   : > { %1984 = vrot.lane.b32.xlu2 %v4466_v44, %s3874_s17  ;;  %v1793_v18 = vpop.f32.mrf.mxu0  ;;  %v1826_v56 = vpop.f32.mrf.mxu1  ;;  %v1239_v52 = vadd.f32 %v1233_v19, %v1217_v47  ;;  %v1328_v42 = vadd.f32 %v1322_v30, %v1306_v13 }
 0x207   : > { %2007 = vrot.lane.b32.xlu1 %v4482_v2, %s3875_s28  ;;  %2011 = vrot.lane.b32.xlu0 %v4499_v15, %s3875_s28  ;;  %v1537_v2 = vadd.f32 %v4272_v54, %v1326_v1  ;;  %v1277_v54 = vsel %vm1275_vm9, %v4400_v41, %v4430_v9 }
 0x208   : > { %v4611_v44 = vpop.permute.xlu2 %1611  ;;  %v1261_v29 = vadd.f32 %v1255_v5, %v1239_v52  ;;  %v1539_v36 = vadd.f32 %v4285_v58, %v1328_v42  ;;  %v1596_v58 = vsel %vm1209_vm6, %v4564_v45, %v4560_v28 }
 0x209   : > { %v4614_v61 = vpop.permute.xlu1 %1609  ;;  %v1608_v15 = vpop.permute.xlu0 %1607  ;;  %v1558_v37 = vadd.f32 %v1552_v10, %v1537_v2 }
 0x20a   : > { %v1615_v11 = vsel %vm1231_vm7, %v1608_v15, %v4614_v61  ;;  %v1283_v48 = vadd.f32 %v1277_v54, %v1261_v29 }
 0x20b   : > { %v1579_v53 = vadd.f32 %v1573_v8, %v1558_v37 }
 0x20c   : > { %v1305_v46 = vadd.f32 %v1299_v50, %v1283_v48  ;;  %v3764_v50 = vld [vmem:[%s5105_s1 + $0x48] sm:$0xff]  }
 0x20d   : > { %v1891_v63 = vpop.f32.mrf.mxu3  ;;  %v1859_v51 = vpop.f32.mrf.mxu2  ;;  %v1600_v27 = vadd.f32 %v1594_v0, %v1579_v53 }
 0x20e   : > { %1990 = vrot.lane.b32.xlu2 %v4476_v62, %s3874_s17  ;;  %v4638_v41 = vpop.f32.mrf.mxu0  ;;  %v4640_v9 = vpop.f32.mrf.mxu1  ;;  %v1554_v62 = vsel %vm1165_vm4, %v4488_v4, %v4490_v12  ;;  %v1327_v35 = vadd.f32 %v1321_v24, %v1305_v46  ;;  %v3740_v24 = vunpack.c.l.bf16 %v3764_v50 }
 0x20f   : > { %2030 = vrot.lane.b32.xlu0 %v4538_v59, %s3876_s6  ;;  %2026 = vrot.lane.b32.xlu1 %v4507_v23, %s3876_s6  ;;  %v1621_v59 = vadd.f32 %v1615_v11, %v1600_v27  ;;  %v1575_v23 = vsel %vm1187_vm5, %v4519_v60, %v4521_v25  ;;  %v1560_v12 = vadd.f32 %v1554_v62, %v1539_v36  ;;  %v3741_v62 = vunpack.c.h.bf16 %v3764_v50  ;;  %v3766_v50 = vld [vmem:[%s5105_s1 + $0x58] sm:$0xff]  }
 0x210   : > { %v1631_v17 = vpop.permute.xlu2 %1630  ;;  %3636 = vmatmul.msk.bf16.gmra.mxu0 %vm2091_vm3, %v3689_v22  ;;  %3641 = vmatmul.msk.bf16.gmra.mxu1 %vm2091_vm3, %v3689_v22  ;;  %v1553_v25 = vsel %vm1165_vm4, %v4455_v34, %v4488_v4  ;;  %v1538_v21 = vadd.f32 %v4274_v55, %v1327_v35  ;;  %v1574_v34 = vsel %vm1187_vm5, %v4486_v3, %v4519_v60 }
 0x211   : > { %v1614_v1 = vpop.permute.xlu0 %1613  ;;  %v1629_v32 = vpop.permute.xlu1 %1628  ;;  %v1581_v18 = vadd.f32 %v1575_v23, %v1560_v12  ;;  %v1616_v60 = vsel %vm1231_vm7, %v4614_v61, %v4611_v44 }
 0x212   : > { %v1636_v16 = vsel %vm1253_vm8, %v1629_v32, %v1631_v17  ;;  %3646 = vmatmul.msk.bf16.gmra.mxu2 %vm2091_vm3, %v3689_v22  ;;  %3651 = vmatmul.msk.bf16.gmra.mxu3 %vm2091_vm3, %v3689_v22  ;;  %v1617_v14 = vsel %vm1231_vm7, %v4611_v44, %v1614_v1  ;;  %v1559_v47 = vadd.f32 %v1553_v25, %v1538_v21 }
 0x213   : > { %v1642_v6 = vadd.f32 %v1636_v16, %v1621_v59  ;;  %v1602_v10 = vadd.f32 %v1596_v58, %v1581_v18  ;;  %v939_v32 = vmul.f32 %v3740_v24, %v4200_v33 }
 0x214   : > { %v1580_v5 = vadd.f32 %v1574_v34, %v1559_v47 }
 0x215   : > { %v4667_v56 = vpop.f32.mrf.mxu2  ;;  %v2228_v43 = vpop.f32.mrf.mxu3  ;;  %v1623_v57 = vadd.f32 %v1617_v14, %v1602_v10 }
 0x216   : > { %2009 = vrot.lane.b32.xlu2 %v4501_v26, %s3875_s28  ;;  %v2131_v19 = vpop.f32.mrf.mxu0  ;;  %v2164_v28 = vpop.f32.mrf.mxu1  ;;  %v3511_v26 = vld [vmem:[%s5105_s1 + $0x44] sm:$0xf]  ;;  %v3765_v43 = vld [vmem:[%s5105_s1 + $0x50] sm:$0xff]  }
 0x217   : > { %2049 = vrot.lane.b32.xlu0 %v4550_v20, %s3877_s19  ;;  %2032 = vrot.lane.b32.xlu1 %v4536_v38, %s3876_s6  ;;  %v1595_v20 = vsel %vm1209_vm6, %v4562_v49, %v4564_v45  ;;  %v2439_v3 = vunpack.c.l.b16 %v3511_v26  ;;  %v3745_v34 = vunpack.c.h.bf16 %v3765_v43 }
 0x218   : > { %v1650_v4 = vpop.permute.xlu2 %1649  ;;  %v1601_v8 = vadd.f32 %v1595_v20, %v1580_v5 }
 0x219   : > { %v1633_v55 = vpop.permute.xlu0 %1632  ;;  %v1635_v2 = vpop.permute.xlu1 %1634  ;;  %v2444_v49 = vpack.c.b16 %v2439_v3, %v2439_v3 }
 0x21a   : > { %v1637_v38 = vsel %vm1253_vm8, %v1631_v17, %v1633_v55  ;;  %v1638_v15 = vsel %vm1253_vm8, %v1633_v55, %v1635_v2  ;;  %v1622_v54 = vadd.f32 %v1616_v60, %v1601_v8 }
 0x21b   : > { %v1644_v30 = vadd.f32 %v1638_v15, %v1623_v57 }
 0x21c   : > { %v1643_v29 = vadd.f32 %v1637_v38, %v1622_v54  ;;  %v942_v38 = vmul.f32 %v3745_v34, %v4200_v33 }
 0x21d   : > { %v2197_v52 = vpop.f32.mrf.mxu2  ;;  %v2229_v13 = vpop.f32.mrf.mxu3 }
 0x21e   : > { %2028 = vrot.lane.b32.xlu2 %v4509_v40, %s3876_s6  ;;  %v2134_v37 = vpop.f32.mrf.mxu0  ;;  %v4700_v45 = vpop.f32.mrf.mxu1 }
 0x21f   : > { %2051 = vrot.lane.b32.xlu1 %v4588_v7, %s3877_s19  ;;  %2258 = vrot.lane.b32.xlu0 %v2131_v19, %s3870_s30 }
 0x220   : > { %v1656_v0 = vpop.permute.xlu2 %1655  ;;  %3637 = vmatmul.msk.bf16.gmra.mxu0 %vm2091_vm3, %v2444_v49  ;;  %3642 = vmatmul.msk.bf16.gmra.mxu1 %vm2091_vm3, %v2444_v49 }
 0x221   : > { %v1652_v42 = vpop.permute.xlu0 %1651  ;;  %v1654_v44 = vpop.permute.xlu1 %1653 }
 0x222   : > { %v1657_v40 = vsel %vm1275_vm9, %v1650_v4, %v1652_v42  ;;  %v1658_v61 = vsel %vm1275_vm9, %v1652_v42, %v1654_v44  ;;  %v1659_v53 = vsel %vm1275_vm9, %v1654_v44, %v1656_v0  ;;  %3647 = vmatmul.msk.bf16.gmra.mxu2 %vm2091_vm3, %v2444_v49  ;;  %3652 = vmatmul.msk.bf16.gmra.mxu3 %vm2091_vm3, %v2444_v49  ;;  %v5132_v44 = vld [vmem:[#allocation6_spill] sm:$0xff] }
 0x223   : > { %v1663_v7 = vadd.f32 %v1657_v40, %v1642_v6  ;;  %v1664_v63 = vadd.f32 %v1658_v61, %v1643_v29  ;;  %v1665_v51 = vadd.f32 %v1659_v53, %v1644_v30  ;;  %v5131_v29 = vld [vmem:[#allocation5_spill] sm:$0xff] }
 0x225   : > { %v2200_v11 = vpop.f32.mrf.mxu2  ;;  %v2232_v48 = vpop.f32.mrf.mxu3 }
 0x226   : > { %2047 = vrot.lane.b32.xlu2 %v4548_v39, %s3877_s19  ;;  %v4714_v27 = vpop.f32.mrf.mxu0  ;;  %v2169_v22 = vpop.f32.mrf.mxu1  ;;  %v940_v39 = vmul.f32 %v3741_v62, %v4200_v33 }
 0x227   : > { %2264 = vrot.lane.b32.xlu0 %v2229_v13, %s3870_s30  ;;  %2260 = vrot.lane.b32.xlu1 %v2164_v28, %s3870_s30  ;;  %v3744_v28 = vunpack.c.l.bf16 %v3765_v43 }
 0x228   : > { %v1677_v17 = vpop.permute.xlu2 %1676  ;;  %v948_v12 = vpack.c.bf16 %v940_v39, %v939_v32 }
 0x229   : > { %v1673_v46 = vpop.permute.xlu1 %1672  ;;  %v1671_v36 = vpop.permute.xlu0 %1670  ;;  %v941_v20 = vmul.f32 %v3744_v28, %v4200_v33 }
 0x22a   : > { %v1678_v59 = vsel %vm1297_vm10, %v1671_v36, %v1673_v46  ;;  %v5133_v36 = vld [vmem:[#allocation7_spill] sm:$0xff] }
 0x22b   : > { %v1684_v1 = vadd.f32 %v1678_v59, %v1663_v7  ;;  %v949_v13 = vpack.c.bf16 %v942_v38, %v941_v20 }
 0x22d   : > { %v2202_v23 = vpop.f32.mrf.mxu2  ;;  %v4723_v16 = vpop.f32.mrf.mxu3 }
 0x22e   : > { %2053 = vrot.lane.b32.xlu2 %v4586_v31, %s3877_s19  ;;  %v2139_v35 = vpop.f32.mrf.mxu0  ;;  %v2172_v6 = vpop.f32.mrf.mxu1 }
 0x22f   : > { %2283 = vrot.lane.b32.xlu0 %v2200_v11, %s3871_s7  ;;  %2279 = vrot.lane.b32.xlu1 %v2134_v37, %s3871_s7 }
 0x230   : > { %v1696_v58 = vpop.permute.xlu2 %1695  ;;  %3653 = vmatmul.msk.bf16.vlgmr.msrb.gmra.mxu0 %vm2091_vm3, %v948_v12  ;;  %3658 = vmatmul.msk.bf16.vlgmr.msrb.gmra.mxu1 %vm2091_vm3, %v948_v12 }
 0x231   : > { %v1675_v18 = vpop.permute.xlu1 %1674  ;;  %v1692_v25 = vpop.permute.xlu0 %1691 }
 0x232   : > { %v1679_v14 = vsel %vm1297_vm10, %v1673_v46, %v1675_v18  ;;  %v1680_v31 = vsel %vm1297_vm10, %v1675_v18, %v1677_v17  ;;  %3663 = vmatmul.msk.bf16.vlgmr.msrb.gmra.mxu2 %vm2091_vm3, %v948_v12  ;;  %3668 = vmatmul.msk.bf16.vlgmr.msrb.gmra.mxu3 %vm2091_vm3, %v948_v12 }
 0x233   : > { %v1685_v19 = vadd.f32 %v1679_v14, %v1664_v63  ;;  %v1686_v21 = vadd.f32 %v1680_v31, %v1665_v51 }
 0x235   : > { %v4736_v10 = vpop.f32.mrf.mxu2  ;;  %v2237_v4 = vpop.f32.mrf.mxu3 }
 0x236   : > { %2262 = vrot.lane.b32.xlu2 %v2197_v52, %s3870_s30  ;;  %v2141_v26 = vpop.f32.mrf.mxu0  ;;  %v4741_v47 = vpop.f32.mrf.mxu1 }
 0x237   : > { %2285 = vrot.lane.b32.xlu1 %v2232_v48, %s3871_s7  ;;  %2302 = vrot.lane.b32.xlu0 %v2169_v22, %s3872_s20  ;;  %v3748_v48 = vunpack.c.l.bf16 %v3766_v50  ;;  %v3749_v22 = vunpack.c.h.bf16 %v3766_v50 }
 0x238   : > { %v1903_v57 = vpop.permute.xlu2 %1902 }
 0x239   : > { %v1694_v55 = vpop.permute.xlu1 %1693  ;;  %v1698_v2 = vpop.permute.xlu0 %1697  ;;  %v943_v39 = vmul.f32 %v3748_v48, %v4200_v33 }
 0x23a   : > { %v1699_v15 = vsel %vm1319_vm11, %v1692_v25, %v1694_v55  ;;  %v1700_v5 = vsel %vm1319_vm11, %v1694_v55, %v1696_v58  ;;  %v1701_v30 = vsel %vm1319_vm11, %v1696_v58, %v1698_v2 }
 0x23b   : > { %v1705_v3 = vadd.f32 %v1699_v15, %v1684_v1  ;;  %v1706_v60 = vadd.f32 %v1700_v5, %v1685_v19  ;;  %v1707_v8 = vadd.f32 %v1701_v30, %v1686_v21 }
 0x23d   : > { %v2207_v52 = vpop.f32.mrf.mxu2  ;;  %v2239_v37 = vpop.f32.mrf.mxu3  ;;  %v1893_v42 = vadd.f32 %v5131_v29, %v1705_v3  ;;  %v1894_v40 = vadd.f32 %v5132_v44, %v1706_v60  ;;  %v1895_v59 = vadd.f32 %v5133_v36, %v1707_v8 }
 0x23e   : > { %2281 = vrot.lane.b32.xlu2 %v4700_v45, %s3871_s7  ;;  %v4750_v54 = vpop.f32.mrf.mxu0  ;;  %v2177_v49 = vpop.f32.mrf.mxu1 }
 0x23f   : > { %2304 = vrot.lane.b32.xlu1 %v2202_v23, %s3872_s20  ;;  %2321 = vrot.lane.b32.xlu0 %v2139_v35, %s3873_s13  ;;  %v944_v23 = vmul.f32 %v3749_v22, %v4200_v33 }
 0x240   : > { %v1922_v0 = vpop.permute.xlu2 %1921  ;;  %3654 = vmatmul.msk.bf16.gmra.mxu0 %vm2091_vm3, %v949_v13  ;;  %3659 = vmatmul.msk.bf16.gmra.mxu1 %vm2091_vm3, %v949_v13 }
 0x241   : > { %v1905_v61 = vpop.permute.xlu0 %1904  ;;  %v1901_v53 = vpop.permute.xlu1 %1900  ;;  %v950_v25 = vpack.c.bf16 %v944_v23, %v943_v39 }
 0x242   : > { %v1909_v45 = vsel %vm1165_vm4, %v1903_v57, %v1905_v61  ;;  %v1908_v7 = vsel %vm1165_vm4, %v1901_v53, %v1903_v57  ;;  %3664 = vmatmul.msk.bf16.gmra.mxu2 %vm2091_vm3, %v949_v13  ;;  %3669 = vmatmul.msk.bf16.gmra.mxu3 %vm2091_vm3, %v949_v13 }
 0x243   : > { %v1915_v63 = vadd.f32 %v1909_v45, %v1894_v40  ;;  %v1914_v51 = vadd.f32 %v1908_v7, %v1893_v42 }
 0x245   : > { %v2210_v11 = vpop.f32.mrf.mxu2  ;;  %v4767_v24 = vpop.f32.mrf.mxu3 }
 0x246   : > { %2300 = vrot.lane.b32.xlu2 %v4714_v27, %s3872_s20  ;;  %v4769_v62 = vpop.f32.mrf.mxu0  ;;  %v4773_v17 = vpop.f32.mrf.mxu1 }
 0x247   : > { %2327 = vrot.lane.b32.xlu0 %v2237_v4, %s3873_s13  ;;  %2323 = vrot.lane.b32.xlu1 %v2172_v6, %s3873_s13 }
 0x248   : > { %v1928_v46 = vpop.permute.xlu2 %1927 }
 0x249   : > { %v1924_v1 = vpop.permute.xlu0 %1923  ;;  %v1907_v32 = vpop.permute.xlu1 %1906 }
 0x24a   : > { %v1929_v27 = vsel %vm1187_vm5, %v1922_v0, %v1924_v1  ;;  %v1910_v35 = vsel %vm1165_vm4, %v1905_v61, %v1907_v32 }
 0x24b   : > { %v1935_v12 = vadd.f32 %v1929_v27, %v1914_v51  ;;  %v1916_v58 = vadd.f32 %v1910_v35, %v1895_v59 }
 0x24d   : > { %v2212_v18 = vpop.f32.mrf.mxu2  ;;  %v4782_v6 = vpop.f32.mrf.mxu3 }
 0x24e   : > { %2306 = vrot.lane.b32.xlu2 %v4723_v16, %s3872_s20  ;;  %v2149_v14 = vpop.f32.mrf.mxu0  ;;  %v4786_v31 = vpop.f32.mrf.mxu1 }
 0x24f   : > { %2346 = vrot.lane.b32.xlu0 %v2207_v52, %s3874_s17  ;;  %2342 = vrot.lane.b32.xlu1 %v2141_v26, %s3874_s17 }
 0x250   : > { %v1947_v43 = vpop.permute.xlu2 %1946  ;;  %3660 = vmatmul.msk.bf16.gmra.mxu1 %vm2091_vm3, %v950_v25  ;;  %3655 = vmatmul.msk.bf16.gmra.mxu0 %vm2091_vm3, %v950_v25 }
 0x251   : > { %v1926_v19 = vpop.permute.xlu1 %1925  ;;  %v1943_v21 = vpop.permute.xlu0 %1942 }
 0x252   : > { %v1930_v28 = vsel %vm1187_vm5, %v1924_v1, %v1926_v19  ;;  %v1931_v16 = vsel %vm1187_vm5, %v1926_v19, %v1928_v46  ;;  %3665 = vmatmul.msk.bf16.gmra.mxu2 %vm2091_vm3, %v950_v25  ;;  %3670 = vmatmul.msk.bf16.gmra.mxu3 %vm2091_vm3, %v950_v25 }
 0x253   : > { %v1936_v34 = vadd.f32 %v1930_v28, %v1915_v63  ;;  %v1937_v4 = vadd.f32 %v1931_v16, %v1916_v58 }
 0x255   : > { %v4794_v26 = vpop.f32.mrf.mxu2  ;;  %v2247_v57 = vpop.f32.mrf.mxu3 }
 0x256   : > { %2325 = vrot.lane.b32.xlu2 %v4736_v10, %s3873_s13  ;;  %v2151_v55 = vpop.f32.mrf.mxu0  ;;  %v2184_v2 = vpop.f32.mrf.mxu1  ;;  %v3767_v10 = vld [vmem:[%s5105_s1 + $0x60] sm:$0xff]  }
 0x257   : > { %2348 = vrot.lane.b32.xlu1 %v2239_v37, %s3874_s17  ;;  %2365 = vrot.lane.b32.xlu0 %v2177_v49, %s3875_s28  ;;  %v3752_v37 = vunpack.c.l.bf16 %v3767_v10  ;;  %v3753_v49 = vunpack.c.h.bf16 %v3767_v10 }
 0x258   : > { %v1966_v20 = vpop.permute.xlu2 %1965 }
 0x259   : > { %v1945_v38 = vpop.permute.xlu1 %1944  ;;  %v1949_v15 = vpop.permute.xlu0 %1948  ;;  %v945_v44 = vmul.f32 %v3752_v37, %v4200_v33  ;;  %v946_v40 = vmul.f32 %v3753_v49, %v4200_v33 }
 0x25a   : > { %v1950_v5 = vsel %vm1209_vm6, %v1943_v21, %v1945_v38  ;;  %v1951_v30 = vsel %vm1209_vm6, %v1945_v38, %v1947_v43  ;;  %v1952_v3 = vsel %vm1209_vm6, %v1947_v43, %v1949_v15 }
 0x25b   : > { %v1956_v60 = vadd.f32 %v1950_v5, %v1935_v12  ;;  %v1957_v8 = vadd.f32 %v1951_v30, %v1936_v34  ;;  %v1958_v52 = vadd.f32 %v1952_v3, %v1937_v4  ;;  %v951_v7 = vpack.c.bf16 %v946_v40, %v945_v44 }
 0x25d   : > { %v2217_v13 = vpop.f32.mrf.mxu2  ;;  %v2249_v0 = vpop.f32.mrf.mxu3 }
 0x25e   : > { %2344 = vrot.lane.b32.xlu2 %v4741_v47, %s3874_s17  ;;  %v4808_v29 = vpop.f32.mrf.mxu0  ;;  %v4812_v42 = vpop.f32.mrf.mxu1 }
 0x25f   : > { %2367 = vrot.lane.b32.xlu1 %v2210_v11, %s3875_s28  ;;  %2388 = vrot.lane.b32.xlu0 %v2212_v18, %s3876_s6 }
 0x260   : > { %v1985_v61 = vpop.permute.xlu2 %1984  ;;  %3656 = vmatmul.msk.bf16.gmra.mxu0 %vm2091_vm3, %v951_v7  ;;  %3661 = vmatmul.msk.bf16.gmra.mxu1 %vm2091_vm3, %v951_v7 }
 0x261   : > { %v1968_v53 = vpop.permute.xlu0 %1967  ;;  %v1964_v45 = vpop.permute.xlu1 %1963 }
 0x262   : > { %v1972_v63 = vsel %vm1231_vm7, %v1966_v20, %v1968_v53  ;;  %v1971_v47 = vsel %vm1231_vm7, %v1964_v45, %v1966_v20  ;;  %3666 = vmatmul.msk.bf16.gmra.mxu2 %vm2091_vm3, %v951_v7  ;;  %3671 = vmatmul.msk.bf16.gmra.mxu3 %vm2091_vm3, %v951_v7 }
 0x263   : > { %v1978_v51 = vadd.f32 %v1972_v63, %v1957_v8  ;;  %v1977_v50 = vadd.f32 %v1971_v47, %v1956_v60 }
 0x265   : > { %v4822_v11 = vpop.f32.mrf.mxu2  ;;  %v2607_v48 = vpop.f32.mrf.mxu3 }
 0x266   : > { %2363 = vrot.lane.b32.xlu2 %v4750_v54, %s3875_s28  ;;  %v2510_v22 = vpop.f32.mrf.mxu0  ;;  %v4829_v46 = vpop.f32.mrf.mxu1 }
 0x267   : > { %2405 = vrot.lane.b32.xlu0 %v2149_v14, %s3877_s19  ;;  %2386 = vrot.lane.b32.xlu1 %v4773_v17, %s3876_s6  ;;  %v3520_v17 = vld [vmem:[%s5105_s1 + $0x68] sm:$0xf] }
 0x268   : > { %v1991_v36 = vpop.permute.xlu2 %1990  ;;  %v938_v18 = vunpack.c.l.bf16 %v3520_v17 }
 0x269   : > { %v1987_v59 = vpop.permute.xlu0 %1986  ;;  %v1970_v1 = vpop.permute.xlu1 %1969 }
 0x26a   : > { %v1992_v32 = vsel %vm1253_vm8, %v1985_v61, %v1987_v59  ;;  %v1973_v39 = vsel %vm1231_vm7, %v1968_v53, %v1970_v1  ;;  %v947_v19 = vmul.f32 %v938_v18, %v4200_v33 }
 0x26b   : > { %v1998_v23 = vadd.f32 %v1992_v32, %v1977_v50  ;;  %v1979_v27 = vadd.f32 %v1973_v39, %v1958_v52 }
 0x26c   : > { %v952_v34 = vpack.c.bf16 %v947_v19, %v947_v19 }
 0x26d   : > { %v2576_v35 = vpop.f32.mrf.mxu2  ;;  %v2608_v54 = vpop.f32.mrf.mxu3 }
 0x26e   : > { %2369 = vrot.lane.b32.xlu2 %v4767_v24, %s3875_s28  ;;  %v2513_v12 = vpop.f32.mrf.mxu0  ;;  %v2546_v58 = vpop.f32.mrf.mxu1 }
 0x26f   : > { %2411 = vrot.lane.b32.xlu0 %v2247_v57, %s3877_s19  ;;  %2390 = vrot.lane.b32.xlu1 %v4782_v6, %s3876_s6 }
 0x270   : > { %v2010_v25 = vpop.permute.xlu2 %2009  ;;  %3657 = vmatmul.msk.bf16.gmra.mxu0 %vm2091_vm3, %v952_v34  ;;  %3662 = vmatmul.msk.bf16.gmra.mxu1 %vm2091_vm3, %v952_v34 }
 0x271   : > { %v1989_v14 = vpop.permute.xlu1 %1988  ;;  %v2006_v43 = vpop.permute.xlu0 %2005 }
 0x272   : > { %v1993_v24 = vsel %vm1253_vm8, %v1987_v59, %v1989_v14  ;;  %v1994_v21 = vsel %vm1253_vm8, %v1989_v14, %v1991_v36  ;;  %3667 = vmatmul.msk.bf16.gmra.mxu2 %vm2091_vm3, %v952_v34  ;;  %3672 = vmatmul.msk.bf16.gmra.mxu3 %vm2091_vm3, %v952_v34 }
 0x273   : > { %v1999_v28 = vadd.f32 %v1993_v24, %v1978_v51  ;;  %v2000_v16 = vadd.f32 %v1994_v21, %v1979_v27 }
 0x275   : > { %v2579_v4 = vpop.f32.mrf.mxu2  ;;  %v2611_v57 = vpop.f32.mrf.mxu3 }
 0x276   : > { %2384 = vrot.lane.b32.xlu2 %v4769_v62, %s3876_s6  ;;  %v4848_v6 = vpop.f32.mrf.mxu0  ;;  %v2548_v33 = vpop.f32.mrf.mxu1 }
 0x277   : > { %2637 = vrot.lane.b32.xlu0 %v2510_v22, %s3870_s30  ;;  %2643 = vrot.lane.b32.xlu1 %v2608_v54, %s3870_s30 }
 0x278   : > { %v2029_v55 = vpop.permute.xlu2 %2028 }
 0x279   : > { %v2008_v2 = vpop.permute.xlu1 %2007  ;;  %v2012_v20 = vpop.permute.xlu0 %2011 }
 0x27a   : > { %v2013_v38 = vsel %vm1275_vm9, %v2006_v43, %v2008_v2  ;;  %v2014_v15 = vsel %vm1275_vm9, %v2008_v2, %v2010_v25  ;;  %v2015_v62 = vsel %vm1275_vm9, %v2010_v25, %v2012_v20 }
 0x27b   : > { %v2019_v5 = vadd.f32 %v2013_v38, %v1998_v23  ;;  %v2020_v30 = vadd.f32 %v2014_v15, %v1999_v28  ;;  %v2021_v3 = vadd.f32 %v2015_v62, %v2000_v16 }
 0x27d   : > { %v2581_v60 = vpop.f32.mrf.mxu2  ;;  %v2613_v8 = vpop.f32.mrf.mxu3 }
 0x27e   : > { %2407 = vrot.lane.b32.xlu2 %v4786_v31, %s3877_s19  ;;  %v2518_v52 = vpop.f32.mrf.mxu0  ;;  %v4861_v10 = vpop.f32.mrf.mxu1 }
 0x27f   : > { %2658 = vrot.lane.b32.xlu1 %v2513_v12, %s3871_s7  ;;  %2641 = vrot.lane.b32.xlu0 %v2576_v35, %s3870_s30 }
 0x280   : > { %v2048_v13 = vpop.permute.xlu2 %2047 }
 0x281   : > { %v2031_v37 = vpop.permute.xlu0 %2030  ;;  %v2027_v49 = vpop.permute.xlu1 %2026 }
 0x282   : > { %v2035_v0 = vsel %vm1297_vm10, %v2029_v55, %v2031_v37  ;;  %v2034_v44 = vsel %vm1297_vm10, %v2027_v49, %v2029_v55 }
 0x283   : > { %v2041_v40 = vadd.f32 %v2035_v0, %v2020_v30  ;;  %v2040_v61 = vadd.f32 %v2034_v44, %v2019_v5 }
 0x285   : > { %v2584_v53 = vpop.f32.mrf.mxu2  ;;  %v4867_v31 = vpop.f32.mrf.mxu3 }
 0x286   : > { %2409 = vrot.lane.b32.xlu2 %v4794_v26, %s3877_s19  ;;  %v2520_v45 = vpop.f32.mrf.mxu0  ;;  %v2553_v7 = vpop.f32.mrf.mxu1 }
 0x287   : > { %2662 = vrot.lane.b32.xlu1 %v2579_v4, %s3871_s7  ;;  %2660 = vrot.lane.b32.xlu0 %v2546_v58, %s3871_s7 }
 0x288   : > { %v2054_v63 = vpop.permute.xlu2 %2053 }
 0x289   : > { %v2050_v47 = vpop.permute.xlu0 %2049  ;;  %v2033_v51 = vpop.permute.xlu1 %2032 }
 0x28a   : > { %v2055_v50 = vsel %vm1319_vm11, %v2048_v13, %v2050_v47  ;;  %v2036_v48 = vsel %vm1297_vm10, %v2031_v37, %v2033_v51 }
 0x28b   : > { %v2061_v22 = vadd.f32 %v2055_v50, %v2040_v61  ;;  %v2042_v36 = vadd.f32 %v2036_v48, %v2021_v3 }
 0x28d   : > { %v4873_v59 = vpop.f32.mrf.mxu2  ;;  %v2618_v26 = vpop.f32.mrf.mxu3  ;;  %v2251_v21 = vadd.f32 %v4638_v41, %v2061_v22 }
 0x28e   : > { %2639 = vrot.lane.b32.xlu2 %v4829_v46, %s3870_s30  ;;  %v4877_v1 = vpop.f32.mrf.mxu0  ;;  %v2556_v32 = vpop.f32.mrf.mxu1 }
 0x28f   : > { %2683 = vrot.lane.b32.xlu0 %v2581_v60, %s3872_s20  ;;  %2681 = vrot.lane.b32.xlu1 %v2548_v33, %s3872_s20 }
 0x290   : > { %v2263_v39 = vpop.permute.xlu2 %2262 }
 0x291   : > { %v2052_v23 = vpop.permute.xlu1 %2051  ;;  %v2259_v27 = vpop.permute.xlu0 %2258 }
 0x292   : > { %v2056_v35 = vsel %vm1319_vm11, %v2050_v47, %v2052_v23  ;;  %v2057_v54 = vsel %vm1319_vm11, %v2052_v23, %v2054_v63 }
 0x293   : > { %v2062_v12 = vadd.f32 %v2056_v35, %v2041_v40  ;;  %v2063_v17 = vadd.f32 %v2057_v54, %v2042_v36 }
 0x295   : > { %v2589_v58 = vpop.f32.mrf.mxu2  ;;  %v2621_v46 = vpop.f32.mrf.mxu3  ;;  %v2253_v19 = vadd.f32 %v4667_v56, %v2063_v17  ;;  %v2252_v28 = vadd.f32 %v4640_v9, %v2062_v12 }
 0x296   : > { %2664 = vrot.lane.b32.xlu2 %v2611_v57, %s3871_s7  ;;  %v4884_v18 = vpop.f32.mrf.mxu0  ;;  %v2558_v25 = vpop.f32.mrf.mxu1 }
 0x297   : > { %2700 = vrot.lane.b32.xlu0 %v2518_v52, %s3873_s13  ;;  %2685 = vrot.lane.b32.xlu1 %v2613_v8, %s3872_s20 }
 0x298   : > { %v2282_v14 = vpop.permute.xlu2 %2281 }
 0x299   : > { %v2265_v43 = vpop.permute.xlu0 %2264  ;;  %v2261_v24 = vpop.permute.xlu1 %2260 }
 0x29a   : > { %v2268_v16 = vsel %vm1165_vm4, %v2263_v39, %v2265_v43  ;;  %v2266_v34 = vsel %vm1165_vm4, %v2259_v27, %v2261_v24  ;;  %v2267_v4 = vsel %vm1165_vm4, %v2261_v24, %v2263_v39 }
 0x29b   : > { %v2274_v57 = vadd.f32 %v2268_v16, %v2253_v19  ;;  %v2272_v33 = vadd.f32 %v2266_v34, %v2251_v21  ;;  %v2273_v55 = vadd.f32 %v2267_v4, %v2252_v28 }
 0x29d   : > { %v4894_v2 = vpop.f32.mrf.mxu2  ;;  %v4898_v56 = vpop.f32.mrf.mxu3 }
 0x29e   : > { %2679 = vrot.lane.b32.xlu2 %v4848_v6, %s3872_s20  ;;  %v4900_v20 = vpop.f32.mrf.mxu0  ;;  %v4904_v41 = vpop.f32.mrf.mxu1 }
 0x29f   : > { %2704 = vrot.lane.b32.xlu1 %v2584_v53, %s3873_s13  ;;  %2723 = vrot.lane.b32.xlu0 %v2553_v7, %s3874_s17 }
 0x2a0   : > { %v2301_v9 = vpop.permute.xlu2 %2300 }
 0x2a1   : > { %v2284_v38 = vpop.permute.xlu0 %2283  ;;  %v2280_v15 = vpop.permute.xlu1 %2279 }
 0x2a2   : > { %v2288_v62 = vsel %vm1187_vm5, %v2282_v14, %v2284_v38  ;;  %v2287_v5 = vsel %vm1187_vm5, %v2280_v15, %v2282_v14 }
 0x2a3   : > { %v2294_v30 = vadd.f32 %v2288_v62, %v2273_v55  ;;  %v2293_v3 = vadd.f32 %v2287_v5, %v2272_v33 }
 0x2a5   : > { %v4908_v6 = vpop.f32.mrf.mxu2  ;;  %v2626_v60 = vpop.f32.mrf.mxu3 }
 0x2a6   : > { %2702 = vrot.lane.b32.xlu2 %v4861_v10, %s3873_s13  ;;  %v2530_v8 = vpop.f32.mrf.mxu0  ;;  %v2563_v52 = vpop.f32.mrf.mxu1 }
 0x2a7   : > { %2721 = vrot.lane.b32.xlu1 %v2520_v45, %s3874_s17  ;;  %2727 = vrot.lane.b32.xlu0 %v2618_v26, %s3874_s17 }
 0x2a8   : > { %v2307_v13 = vpop.permute.xlu2 %2306 }
 0x2a9   : > { %v2286_v37 = vpop.permute.xlu1 %2285  ;;  %v2303_v49 = vpop.permute.xlu0 %2302 }
 0x2aa   : > { %v2289_v0 = vsel %vm1187_vm5, %v2284_v38, %v2286_v37  ;;  %v2308_v44 = vsel %vm1209_vm6, %v2301_v9, %v2303_v49 }
 0x2ab   : > { %v2295_v40 = vadd.f32 %v2289_v0, %v2274_v57  ;;  %v2314_v61 = vadd.f32 %v2308_v44, %v2293_v3 }
 0x2ad   : > { %v2596_v53 = vpop.f32.mrf.mxu2  ;;  %v2628_v10 = vpop.f32.mrf.mxu3 }
 0x2ae   : > { %2706 = vrot.lane.b32.xlu2 %v4867_v31, %s3873_s13  ;;  %v4922_v22 = vpop.f32.mrf.mxu0 }
 0x2af   : > { %2746 = vrot.lane.b32.xlu0 %v2589_v58, %s3875_s28  ;;  %2744 = vrot.lane.b32.xlu1 %v2556_v32, %s3875_s28  ;;  %v4933_v58 = vpop.f32.mrf.mxu1 }
 0x2b0   : > { %v2326_v45 = vpop.permute.xlu2 %2325 }
 0x2b1   : > { %v2305_v7 = vpop.permute.xlu1 %2304  ;;  %v2322_v63 = vpop.permute.xlu0 %2321 }
 0x2b2   : > { %v2309_v47 = vsel %vm1209_vm6, %v2303_v49, %v2305_v7  ;;  %v2310_v51 = vsel %vm1209_vm6, %v2305_v7, %v2307_v13 }
 0x2b3   : > { %v2315_v50 = vadd.f32 %v2309_v47, %v2294_v30  ;;  %v2316_v48 = vadd.f32 %v2310_v51, %v2295_v40 }
 0x2b5   : > { %v4924_v36 = vpop.f32.mrf.mxu2  ;;  %v2963_v31 = vpop.f32.mrf.mxu3 }
 0x2b6   : > { %2725 = vrot.lane.b32.xlu2 %v4873_v59, %s3874_s17 }
 0x2b7   : > { %2748 = vrot.lane.b32.xlu1 %v2621_v46, %s3875_s28  ;;  %2765 = vrot.lane.b32.xlu0 %v2558_v25, %s3876_s6  ;;  %v2866_v46 = vpop.f32.mrf.mxu0 }
 0x2b8   : > { %v2345_v26 = vpop.permute.xlu2 %2344 }
 0x2b9   : > { %v2328_v32 = vpop.permute.xlu0 %2327  ;;  %v2324_v39 = vpop.permute.xlu1 %2323 }
 0x2ba   : > { %v2331_v23 = vsel %vm1231_vm7, %v2326_v45, %v2328_v32  ;;  %v2329_v27 = vsel %vm1231_vm7, %v2322_v63, %v2324_v39  ;;  %v2330_v35 = vsel %vm1231_vm7, %v2324_v39, %v2326_v45 }
 0x2bb   : > { %v2337_v54 = vadd.f32 %v2331_v23, %v2316_v48  ;;  %v2335_v12 = vadd.f32 %v2329_v27, %v2314_v61  ;;  %v2336_v17 = vadd.f32 %v2330_v35, %v2315_v50 }
 0x2bd   : > { %v4935_v59 = vpop.f32.mrf.mxu2  ;;  %v2964_v16 = vpop.f32.mrf.mxu3 }
 0x2be   : > { %2742 = vrot.lane.b32.xlu2 %v4877_v1, %s3875_s28  ;;  %v2899_v1 = vpop.f32.mrf.mxu1 }
 0x2bf   : > { %2763 = vrot.lane.b32.xlu1 %v4884_v18, %s3876_s6  ;;  %2790 = vrot.lane.b32.xlu0 %v2626_v60, %s3877_s19  ;;  %v2869_v4 = vpop.f32.mrf.mxu0 }
 0x2c0   : > { %v2364_v25 = vpop.permute.xlu2 %2363 }
 0x2c1   : > { %v2347_v14 = vpop.permute.xlu0 %2346  ;;  %v2343_v43 = vpop.permute.xlu1 %2342 }
 0x2c2   : > { %v2351_v19 = vsel %vm1253_vm8, %v2345_v26, %v2347_v14  ;;  %v2350_v24 = vsel %vm1253_vm8, %v2343_v43, %v2345_v26 }
 0x2c3   : > { %v2357_v21 = vadd.f32 %v2351_v19, %v2336_v17  ;;  %v2356_v28 = vadd.f32 %v2350_v24, %v2335_v12 }
 0x2c5   : > { %v2935_v34 = vpop.f32.mrf.mxu2  ;;  %v2967_v37 = vpop.f32.mrf.mxu3 }
 0x2c6   : > { %2769 = vrot.lane.b32.xlu2 %v4898_v56, %s3876_s6  ;;  %v2902_v8 = vpop.f32.mrf.mxu1 }
 0x2c7   : > { %2767 = vrot.lane.b32.xlu1 %v4894_v2, %s3876_s6  ;;  %2999 = vrot.lane.b32.xlu0 %v2964_v16, %s3870_s30  ;;  %v2871_v56 = vpop.f32.mrf.mxu0 }
 0x2c8   : > { %v2370_v18 = vpop.permute.xlu2 %2369 }
 0x2c9   : > { %v2349_v57 = vpop.permute.xlu1 %2348  ;;  %v2366_v33 = vpop.permute.xlu0 %2365 }
 0x2ca   : > { %v2352_v55 = vsel %vm1253_vm8, %v2347_v14, %v2349_v57  ;;  %v2371_v9 = vsel %vm1275_vm9, %v2364_v25, %v2366_v33 }
 0x2cb   : > { %v2358_v38 = vadd.f32 %v2352_v55, %v2337_v54  ;;  %v2377_v15 = vadd.f32 %v2371_v9, %v2356_v28 }
 0x2cd   : > { %v4951_v62 = vpop.f32.mrf.mxu2 }
 0x2ce   : > { %2784 = vrot.lane.b32.xlu2 %v4900_v20, %s3877_s19  ;;  %v2904_v7 = vpop.f32.mrf.mxu1 }
 0x2cf   : > { %2786 = vrot.lane.b32.xlu1 %v4904_v41, %s3877_s19  ;;  %3014 = vrot.lane.b32.xlu0 %v2869_v4, %s3871_s7  ;;  %v4964_v41 = vpop.f32.mrf.mxu0 }
 0x2d0   : > { %v2385_v2 = vpop.permute.xlu2 %2384 }
 0x2d1   : > { %v2368_v5 = vpop.permute.xlu1 %2367  ;;  %v2389_v30 = vpop.permute.xlu0 %2388 }
 0x2d2   : > { %v2372_v3 = vsel %vm1275_vm9, %v2366_v33, %v2368_v5  ;;  %v2373_v60 = vsel %vm1275_vm9, %v2368_v5, %v2370_v18 }
 0x2d3   : > { %v2378_v52 = vadd.f32 %v2372_v3, %v2357_v21  ;;  %v2379_v13 = vadd.f32 %v2373_v60, %v2358_v38 }
 0x2d5   : > { %v2940_v49 = vpop.f32.mrf.mxu2 }
 0x2d6   : > { %2788 = vrot.lane.b32.xlu2 %v4908_v6, %s3877_s19  ;;  %v2969_v6 = vpop.f32.mrf.mxu3  ;;  %v2907_v43 = vpop.f32.mrf.mxu1 }
 0x2d7   : > { %2995 = vrot.lane.b32.xlu1 %v2899_v1, %s3870_s30  ;;  %3018 = vrot.lane.b32.xlu0 %v2935_v34, %s3871_s7  ;;  %v2876_v23 = vpop.f32.mrf.mxu0 }
 0x2d8   : > { %v2408_v20 = vpop.permute.xlu2 %2407 }
 0x2d9   : > { %v2406_v0 = vpop.permute.xlu0 %2405  ;;  %v2387_v44 = vpop.permute.xlu1 %2386 }
 0x2da   : > { %v2413_v40 = vsel %vm1319_vm11, %v2406_v0, %v2408_v20  ;;  %v2392_v61 = vsel %vm1297_vm10, %v2385_v2, %v2387_v44  ;;  %v2393_v53 = vsel %vm1297_vm10, %v2387_v44, %v2389_v30  ;;  %v3878_v44 = vmov 0  }
 0x2db   : > { %v2398_v10 = vadd.f32 %v2392_v61, %v2377_v15  ;;  %v2399_v45 = vadd.f32 %v2393_v53, %v2378_v52  ;;  %3827 = vset.pattern.permute.xlu0 %v3878_v44  ;;  %3828 = vset.pattern.permute.xlu2 %v3878_v44 }
 0x2dd   : > { %v2419_v63 = vadd.f32 %v2413_v40, %v2398_v10  ;;  %v2942_v47 = vpop.f32.mrf.mxu2 }
 0x2de   : > { %2993 = vrot.lane.b32.xlu2 %v2866_v46, %s3870_s30  ;;  %v2972_v54 = vpop.f32.mrf.mxu3  ;;  %v2909_v9 = vpop.f32.mrf.mxu1 }
 0x2df   : > { %3020 = vrot.lane.b32.xlu1 %v2967_v37, %s3871_s7  ;;  %3037 = vrot.lane.b32.xlu0 %v2904_v7, %s3872_s20  ;;  %v2630_v25 = vadd.f32 %v4808_v29, %v2419_v63  ;;  %v2879_v21 = vpop.f32.mrf.mxu0 }
 0x2e0   : > { %v2410_v51 = vpop.permute.xlu2 %2409 }
 0x2e1   : > { %v2414_v50 = vsel %vm1319_vm11, %v2408_v20, %v2410_v51  ;;  %v2412_v48 = vpop.permute.xlu0 %2411  ;;  %v2391_v31 = vpop.permute.xlu1 %2390 }
 0x2e2   : > { %v2420_v26 = vadd.f32 %v2414_v50, %v2399_v45  ;;  %v2415_v32 = vsel %vm1319_vm11, %v2410_v51, %v2412_v48  ;;  %v2394_v39 = vsel %vm1297_vm10, %v2389_v30, %v2391_v31 }
 0x2e3   : > { %v2400_v27 = vadd.f32 %v2394_v39, %v2379_v13 }
 0x2e4   : > { %v2631_v18 = vadd.f32 %v4812_v42, %v2420_v26 }
 0x2e5   : > { %v2421_v35 = vadd.f32 %v2415_v32, %v2400_v27  ;;  %v4979_v12 = vpop.f32.mrf.mxu2 }
 0x2e6   : > { %2997 = vrot.lane.b32.xlu2 %v4935_v59, %s3870_s30  ;;  %v2974_v59 = vpop.f32.mrf.mxu3  ;;  %v2912_v52 = vpop.f32.mrf.mxu1 }
 0x2e7   : > { %3041 = vrot.lane.b32.xlu0 %v2969_v6, %s3872_s20  ;;  %3035 = vrot.lane.b32.xlu1 %v2871_v56, %s3872_s20  ;;  %v2632_v29 = vadd.f32 %v4822_v11, %v2421_v35  ;;  %v2881_v38 = vpop.f32.mrf.mxu0 }
 0x2e8   : > { %v2640_v17 = vpop.permute.xlu2 %2639 }
 0x2e9   : > { %v2638_v46 = vpop.permute.xlu0 %2637  ;;  %v2644_v14 = vpop.permute.xlu1 %2643 }
 0x2ea   : > { %v2645_v19 = vsel %vm1165_vm4, %v2638_v46, %v2640_v17 }
 0x2eb   : > { %v2651_v24 = vadd.f32 %v2645_v19, %v2630_v25 }
 0x2ed   : > { %v2947_v28 = vpop.f32.mrf.mxu2 }
 0x2ee   : > { %3016 = vrot.lane.b32.xlu2 %v2902_v8, %s3871_s7  ;;  %v2977_v15 = vpop.f32.mrf.mxu3  ;;  %v2914_v31 = vpop.f32.mrf.mxu1 }
 0x2ef   : > { %3060 = vrot.lane.b32.xlu0 %v2940_v49, %s3873_s13  ;;  %3058 = vrot.lane.b32.xlu1 %v2907_v43, %s3873_s13  ;;  %v5001_v13 = vpop.f32.mrf.mxu0  ;;  %v3157_v43 = vld [vmem:[%s5106_s2] sm:$0xff] }
 0x2f0   : > { %v2665_v16 = vpop.permute.xlu2 %2664 }
 0x2f1   : > { %v2659_v34 = vpop.permute.xlu1 %2658  ;;  %v2642_v1 = vpop.permute.xlu0 %2641 }
 0x2f2   : > { %v2646_v4 = vsel %vm1165_vm4, %v2640_v17, %v2642_v1  ;;  %v2647_v57 = vsel %vm1165_vm4, %v2642_v1, %v2644_v14 }
 0x2f3   : > { %v2652_v33 = vadd.f32 %v2646_v4, %v2631_v18  ;;  %v2653_v55 = vadd.f32 %v2647_v57, %v2632_v29 }
 0x2f5   : > { %v4994_v42 = vpop.f32.mrf.mxu2 }
 0x2f6   : > { %3039 = vrot.lane.b32.xlu2 %v4951_v62, %s3872_s20  ;;  %v2917_v25 = vpop.f32.mrf.mxu1 }
 0x2f7   : > { %3062 = vrot.lane.b32.xlu1 %v2972_v54, %s3873_s13  ;;  %3077 = vrot.lane.b32.xlu0 %v2876_v23, %s3874_s17  ;;  %v2886_v45 = vpop.f32.mrf.mxu0 }
 0x2f8   : > { %v2680_v2 = vpop.permute.xlu2 %2679 }
 0x2f9   : > { %v2663_v11 = vpop.permute.xlu1 %2662  ;;  %v2661_v56 = vpop.permute.xlu0 %2660 }
 0x2fa   : > { %v2668_v5 = vsel %vm1187_vm5, %v2663_v11, %v2665_v16  ;;  %v2666_v30 = vsel %vm1187_vm5, %v2659_v34, %v2661_v56  ;;  %v2667_v3 = vsel %vm1187_vm5, %v2661_v56, %v2663_v11 }
 0x2fb   : > { %v2674_v60 = vadd.f32 %v2668_v5, %v2653_v55  ;;  %v2672_v8 = vadd.f32 %v2666_v30, %v2651_v24  ;;  %v2673_v62 = vadd.f32 %v2667_v3, %v2652_v33 }
 0x2fd   : > { %v2952_v49 = vpop.f32.mrf.mxu2 }
 0x2fe   : > { %3056 = vrot.lane.b32.xlu2 %v4964_v41, %s3873_s13  ;;  %v2979_v41 = vpop.f32.mrf.mxu3  ;;  %v2919_v18 = vpop.f32.mrf.mxu1 }
 0x2ff   : > { %3081 = vrot.lane.b32.xlu1 %v2942_v47, %s3874_s17  ;;  %3100 = vrot.lane.b32.xlu0 %v2912_v52, %s3875_s28 }
 0x300   : > { %v2703_v37 = vpop.permute.xlu2 %2702 }
 0x301   : > { %v2684_v20 = vpop.permute.xlu0 %2683  ;;  %v2682_v0 = vpop.permute.xlu1 %2681 }
 0x302   : > { %v2687_v40 = vsel %vm1209_vm6, %v2680_v2, %v2682_v0  ;;  %v2688_v61 = vsel %vm1209_vm6, %v2682_v0, %v2684_v20 }
 0x303   : > { %v2693_v53 = vadd.f32 %v2687_v40, %v2672_v8  ;;  %v2694_v10 = vadd.f32 %v2688_v61, %v2673_v62 }
 0x306   : > { %3079 = vrot.lane.b32.xlu2 %v2909_v9, %s3874_s17  ;;  %v2982_v26 = vpop.f32.mrf.mxu3 }
 0x307   : > { %3104 = vrot.lane.b32.xlu0 %v2977_v15, %s3875_s28  ;;  %3098 = vrot.lane.b32.xlu1 %v2879_v21, %s3875_s28 }
 0x308   : > { %v2707_v7 = vpop.permute.xlu2 %2706 }
 0x309   : > { %v2701_v63 = vpop.permute.xlu0 %2700  ;;  %v2686_v6 = vpop.permute.xlu1 %2685 }
 0x30a   : > { %v2708_v47 = vsel %vm1231_vm7, %v2701_v63, %v2703_v37  ;;  %v2689_v51 = vsel %vm1209_vm6, %v2684_v20, %v2686_v6 }
 0x30b   : > { %v2714_v50 = vadd.f32 %v2708_v47, %v2693_v53  ;;  %v2695_v48 = vadd.f32 %v2689_v51, %v2674_v60 }
 0x30e   : > { %3083 = vrot.lane.b32.xlu2 %v2974_v59, %s3874_s17  ;;  %v2984_v14 = vpop.f32.mrf.mxu3 }
 0x30f   : > { %3123 = vrot.lane.b32.xlu0 %v2947_v28, %s3876_s6  ;;  %3119 = vrot.lane.b32.xlu1 %v2881_v38, %s3876_s6 }
 0x310   : > { %v2726_v32 = vpop.permute.xlu2 %2725 }
 0x311   : > { %v2705_v39 = vpop.permute.xlu1 %2704  ;;  %v2724_v23 = vpop.permute.xlu0 %2723 }
 0x312   : > { %v2709_v27 = vsel %vm1231_vm7, %v2703_v37, %v2705_v39  ;;  %v2710_v35 = vsel %vm1231_vm7, %v2705_v39, %v2707_v7  ;;  %v2730_v54 = vsel %vm1253_vm8, %v2724_v23, %v2726_v32 }
 0x313   : > { %v2715_v17 = vadd.f32 %v2709_v27, %v2694_v10  ;;  %v2716_v46 = vadd.f32 %v2710_v35, %v2695_v48 }
 0x315   : > { %v2736_v19 = vadd.f32 %v2730_v54, %v2715_v17 }
 0x316   : > { %3102 = vrot.lane.b32.xlu2 %v4979_v12, %s3875_s28 }
 0x317   : > { %3125 = vrot.lane.b32.xlu1 %v2979_v41, %s3876_s6  ;;  %3160 = vperm.xlu0 %3827, %v3157_v43  }
 0x318   : > { %v2743_v24 = vpop.permute.xlu2 %2742 }
 0x319   : > { %v2722_v21 = vpop.permute.xlu1 %2721  ;;  %v2728_v59 = vpop.permute.xlu0 %2727 }
 0x31a   : > { %v2729_v28 = vsel %vm1253_vm8, %v2722_v21, %v2724_v23  ;;  %v2731_v16 = vsel %vm1253_vm8, %v2726_v32, %v2728_v59 }
 0x31b   : > { %v2735_v34 = vadd.f32 %v2729_v28, %v2714_v50  ;;  %v2737_v1 = vadd.f32 %v2731_v16, %v2716_v46 }
 0x31e   : > { %3121 = vrot.lane.b32.xlu2 %v2914_v31, %s3876_s6  ;;  %s3484_s6 = sshll.u32 %s4109_s29, 1 }
 0x31f   : > { %3144 = vrot.lane.b32.xlu1 %v4994_v42, %s3877_s19  ;;  %s703_s21 = scalar_lea.vmem %s5116_s12, %s3484_s6 }
 0x320   : > { %v2770_v29 = vpop.permute.xlu2 %2769 }
 0x321   : > { %v2747_v12 = vpop.permute.xlu0 %2746  ;;  %v2745_v4 = vpop.permute.xlu1 %2744 }
 0x322   : > { %v2750_v57 = vsel %vm1275_vm9, %v2743_v24, %v2745_v4  ;;  %v2751_v33 = vsel %vm1275_vm9, %v2745_v4, %v2747_v12 }
 0x323   : > { %v2756_v55 = vadd.f32 %v2750_v57, %v2735_v34  ;;  %v2757_v9 = vadd.f32 %v2751_v33, %v2736_v19 }
 0x326   : > { %3146 = vrot.lane.b32.xlu2 %v2982_v26, %s3877_s19 }
 0x327   : > { %3140 = vrot.lane.b32.xlu1 %v5001_v13, %s3877_s19 }
 0x328   : > { %v2785_v38 = vpop.permute.xlu2 %2784 }
 0x329   : > { %v2749_v15 = vpop.permute.xlu1 %2748  ;;  %v2766_v2 = vpop.permute.xlu0 %2765 }
 0x32a   : > { %v2752_v11 = vsel %vm1275_vm9, %v2747_v12, %v2749_v15 }
 0x32b   : > { %v2758_v42 = vadd.f32 %v2752_v11, %v2737_v1 }
 0x32e   : > { %3142 = vrot.lane.b32.xlu2 %v2917_v25, %s3877_s19 }
 0x330   : > { %v2789_v56 = vpop.permute.xlu2 %2788 }
 0x331   : > { %v2764_v5 = vpop.permute.xlu1 %2763  ;;  %v2791_v30 = vpop.permute.xlu0 %2790 }
 0x332   : > { %v2771_v3 = vsel %vm1297_vm10, %v2764_v5, %v2766_v2  ;;  %v2794_v60 = vsel %vm1319_vm11, %v2789_v56, %v2791_v30 }
 0x333   : > { %v2777_v8 = vadd.f32 %v2771_v3, %v2756_v55 }
 0x338   : > { %v2994_v62 = vpop.permute.xlu2 %2993 }
 0x339   : > { %v2768_v52 = vpop.permute.xlu1 %2767  ;;  %v3000_v37 = vpop.permute.xlu0 %2999 }
 0x33a   : > { %v2772_v13 = vsel %vm1297_vm10, %v2766_v2, %v2768_v52  ;;  %v2773_v49 = vsel %vm1297_vm10, %v2768_v52, %v2770_v29 }
 0x33b   : > { %v2778_v20 = vadd.f32 %v2772_v13, %v2757_v9  ;;  %v2779_v0 = vadd.f32 %v2773_v49, %v2758_v42 }
 0x33d   : > { %v2800_v44 = vadd.f32 %v2794_v60, %v2779_v0 }
 0x33f   : > { %v2988_v18 = vadd.f32 %v4924_v36, %v2800_v44  ;;  %v3173_v36 = vld [vmem:[%s5108_s4] sm:$0x3] }
 0x340   : > { %v2998_v40 = vpop.permute.xlu2 %2997  ;;  %3176 = vperm.xlu2 %3828, %v3173_v36  }
 0x341   : > { %v2787_v61 = vpop.permute.xlu1 %2786  ;;  %v3015_v53 = vpop.permute.xlu0 %3014  ;;  %v3003_v4 = vsel %vm1165_vm4, %v2998_v40, %v3000_v37 }
 0x342   : > { %v2792_v10 = vsel %vm1319_vm11, %v2785_v38, %v2787_v61  ;;  %v2793_v41 = vsel %vm1319_vm11, %v2787_v61, %v2789_v56  ;;  %v3009_v9 = vadd.f32 %v3003_v4, %v2988_v18  ;;  %v3230_v4 = vld [vmem:[%s5109_s5 + $0x1] sm:$0x7] }
 0x343   : > { %v2798_v45 = vadd.f32 %v2792_v10, %v2777_v8  ;;  %v2799_v7 = vadd.f32 %v2793_v41, %v2778_v20 }
 0x345   : > { %v2986_v47 = vadd.f32 %v4922_v22, %v2798_v45  ;;  %v2987_v34 = vadd.f32 %v4933_v58, %v2799_v7 }
 0x348   : > { %v3017_v63 = vpop.permute.xlu2 %3016 }
 0x349   : > { %v2996_v6 = vpop.permute.xlu1 %2995  ;;  %v3019_v51 = vpop.permute.xlu0 %3018  ;;  %v3022_v31 = vsel %vm1187_vm5, %v3015_v53, %v3017_v63 }
 0x34a   : > { %v3001_v50 = vsel %vm1165_vm4, %v2994_v62, %v2996_v6  ;;  %v3002_v16 = vsel %vm1165_vm4, %v2996_v6, %v2998_v40  ;;  %v3023_v57 = vsel %vm1187_vm5, %v3017_v63, %v3019_v51 }
 0x34b   : > { %v3007_v48 = vadd.f32 %v3001_v50, %v2986_v47  ;;  %v3008_v29 = vadd.f32 %v3002_v16, %v2987_v34 }
 0x34d   : > { %v3028_v26 = vadd.f32 %v3022_v31, %v3007_v48  ;;  %v3029_v38 = vadd.f32 %v3023_v57, %v3008_v29 }
 0x350   : > { %v3040_v32 = vpop.permute.xlu2 %3039 }
 0x351   : > { %v3021_v39 = vpop.permute.xlu1 %3020  ;;  %v3038_v23 = vpop.permute.xlu0 %3037 }
 0x352   : > { %v3024_v33 = vsel %vm1187_vm5, %v3019_v51, %v3021_v39  ;;  %v3044_v55 = vsel %vm1209_vm6, %v3038_v23, %v3040_v32 }
 0x353   : > { %v3030_v11 = vadd.f32 %v3024_v33, %v3009_v9  ;;  %v3050_v42 = vadd.f32 %v3044_v55, %v3029_v38  ;;  %v3233_v55 = vperm.slane %v3230_v4, 1  ;;  %v3234_v38 = vperm.slane %v3230_v4, 2 }
 0x358   : > { %v3057_v27 = vpop.permute.xlu2 %3056 }
 0x359   : > { %v3042_v35 = vpop.permute.xlu0 %3041  ;;  %v3036_v54 = vpop.permute.xlu1 %3035 }
 0x35a   : > { %v3045_v2 = vsel %vm1209_vm6, %v3040_v32, %v3042_v35  ;;  %v3043_v20 = vsel %vm1209_vm6, %v3036_v54, %v3038_v23 }
 0x35b   : > { %v3051_v30 = vadd.f32 %v3045_v2, %v3030_v11  ;;  %v3049_v45 = vadd.f32 %v3043_v20, %v3028_v26 }
 0x360   : > { %v3080_v17 = vpop.permute.xlu2 %3079 }
 0x361   : > { %v3059_v46 = vpop.permute.xlu1 %3058  ;;  %v3061_v25 = vpop.permute.xlu0 %3060 }
 0x362   : > { %v3065_v58 = vsel %vm1231_vm7, %v3059_v46, %v3061_v25  ;;  %v3064_v41 = vsel %vm1231_vm7, %v3057_v27, %v3059_v46 }
 0x363   : > { %v3071_v3 = vadd.f32 %v3065_v58, %v3050_v42  ;;  %v3070_v31 = vadd.f32 %v3064_v41, %v3049_v45  ;;  %v3232_v58 = vperm.slane %v3230_v4, 0 }
 0x368   : > { %v3084_v14 = vpop.permute.xlu2 %3083 }
 0x369   : > { %v3063_v43 = vpop.permute.xlu1 %3062  ;;  %v3078_v19 = vpop.permute.xlu0 %3077 }
 0x36a   : > { %v3066_v56 = vsel %vm1231_vm7, %v3061_v25, %v3063_v43  ;;  %v3085_v47 = vsel %vm1253_vm8, %v3078_v19, %v3080_v17 }
 0x36b   : > { %v3072_v52 = vadd.f32 %v3066_v56, %v3051_v30  ;;  %v3091_v35 = vadd.f32 %v3085_v47, %v3070_v31 }
 0x370   : > { %v3103_v24 = vpop.permute.xlu2 %3102 }
 0x371   : > { %v3082_v22 = vpop.permute.xlu1 %3081  ;;  %v3101_v21 = vpop.permute.xlu0 %3100 }
 0x372   : > { %v3086_v5 = vsel %vm1253_vm8, %v3080_v17, %v3082_v22  ;;  %v3087_v8 = vsel %vm1253_vm8, %v3082_v22, %v3084_v14  ;;  %v3107_v0 = vsel %vm1275_vm9, %v3101_v21, %v3103_v24 }
 0x373   : > { %v3092_v37 = vadd.f32 %v3086_v5, %v3071_v3  ;;  %v3093_v49 = vadd.f32 %v3087_v8, %v3072_v52 }
 0x375   : > { %v3113_v61 = vadd.f32 %v3107_v0, %v3092_v37 }
 0x378   : > { %v3122_v28 = vpop.permute.xlu2 %3121 }
 0x379   : > { %v3099_v59 = vpop.permute.xlu1 %3098  ;;  %v3105_v1 = vpop.permute.xlu0 %3104 }
 0x37a   : > { %v3108_v13 = vsel %vm1275_vm9, %v3103_v24, %v3105_v1  ;;  %v3106_v23 = vsel %vm1275_vm9, %v3099_v59, %v3101_v21  ;;  %v3169_v59 = vld [vmem:[%s5107_s3] sm:$0x1] }
 0x37b   : > { %v3114_v53 = vadd.f32 %v3108_v13, %v3093_v49  ;;  %v3112_v27 = vadd.f32 %v3106_v23, %v3091_v35 }
 0x380   : > { %v3147_v15 = vpop.permute.xlu2 %3146 }
 0x381   : > { %v3120_v12 = vpop.permute.xlu1 %3119  ;;  %v3124_v62 = vpop.permute.xlu0 %3123 }
 0x382   : > { %v3128_v44 = vsel %vm1297_vm10, %v3122_v28, %v3124_v62  ;;  %v3127_v26 = vsel %vm1297_vm10, %v3120_v12, %v3122_v28  ;;  %v3879_v12 = vmov 0.0  }
 0x383   : > { %v3134_v7 = vadd.f32 %v3128_v44, %v3113_v61  ;;  %v3133_v43 = vadd.f32 %v3127_v26, %v3112_v27  ;;  %961 = vst [vmem:[%s703_s21] sm:$0x3] %v3879_v12 }
 0x384   : > { %962 = vst [vmem:[%s703_s21 + $0x8] sm:$0x3] %v3879_v12 }
 0x388   : > { %v3143_v10 = vpop.permute.xlu2 %3142 }
 0x389   : > { %v3126_v60 = vpop.permute.xlu1 %3125  ;;  %v3161_v48 = vpop.permute.xlu0 %3160 }
 0x38a   : > { %v3129_v40 = vsel %vm1297_vm10, %v3124_v62, %v3126_v60 }
 0x38b   : > { %v3135_v63 = vadd.f32 %v3129_v40, %v3114_v53 }
 0x391   : > { %v3145_v6 = vpop.permute.xlu1 %3144 }
 0x392   : > { %v3150_v51 = vsel %vm1319_vm11, %v3145_v6, %v3147_v15  ;;  %v3149_v50 = vsel %vm1319_vm11, %v3143_v10, %v3145_v6 }
 0x393   : > { %v3156_v32 = vadd.f32 %v3150_v51, %v3135_v63  ;;  %v3155_v39 = vadd.f32 %v3149_v50, %v3134_v7 }
 0x395   : > { %v3164_v54 = vadd.f32 %v3161_v48, %v3155_v39  ;;  %v3165_v25 = vadd.f32 %v3161_v48, %v3156_v32 }
 0x397   : > { %v3167_v46 = vmax.f32 %v3164_v54, 0.0  ;;  %v3168_v14 = vmax.f32 %v3165_v25, 0.0 }
 0x399   : > { %v3171_v17 = vpack.c.bf16 %v3167_v46, %v3167_v46  ;;  %v3172_v19 = vpack.c.bf16 %v3168_v14, %v3168_v14  ;;  %v3141_v22 = vpop.permute.xlu1 %3140 }
 0x39a   : > { %v3148_v24 = vsel %vm1319_vm11, %v3141_v22, %v3143_v10  ;;  %v3177_v57 = vpop.permute.xlu2 %3176 }
 0x39b   : > { %v3154_v16 = vadd.f32 %v3148_v24, %v3133_v43  ;;  %v3186_v34 = vsel %vm2107_vm2, %v3171_v17, 0  ;;  %v3189_v21 = vsel %vm2107_vm2, %v3172_v19, 0 }
 0x39c   : > { %3211 = vmatpush.bf16.msra.mxu1 %v3186_v34  ;;  %3224 = vmatpush.bf16.msra.mxu2 %v3189_v21 }
 0x39d   : > { %v3163_v28 = vadd.f32 %v3161_v48, %v3154_v16 }
 0x39f   : > { %v3166_v1 = vmax.f32 %v3163_v28, 0.0  ;;  %3675 = vmatmul.msk.bf16.vlgmr.msra.gmra.mxu2 %vm2091_vm3, %v3169_v59  ;;  %3674 = vmatmul.msk.bf16.vlgmr.msra.gmra.mxu1 %vm2091_vm3, %v3169_v59 }
 0x3a1   : > { %v3170_v18 = vpack.c.bf16 %v3166_v1, %v3166_v1 }
 0x3a3   : > { %v3183_v29 = vsel %vm2107_vm2, %v3170_v18, 0 }
 0x3a4   : > { %3198 = vmatpush.bf16.msra.mxu0 %v3183_v29 }
 0x3a7   : > { %3673 = vmatmul.msk.bf16.vlgmr.msra.gmra.mxu0 %vm2091_vm3, %v3169_v59 }
 0x41c   : > { %v3213_v33 = vpop.f32.mrf.mxu1 }
 0x41d   : > { %v3214_v9 = vadd.f32 %v3213_v33, %v3177_v57 }
 0x41f   : > { %v3239_v15 = vmul.f32 %v3233_v55, %v3214_v9 }
 0x421   : > { %v3244_v30 = vrot.slane %v3239_v15, 6 }
 0x422   : > { %v3226_v2 = vpop.f32.mrf.mxu2 }
 0x423   : > { %v3227_v11 = vadd.f32 %v3226_v2, %v3177_v57 }
 0x424   : > { %v3200_v42 = vpop.f32.mrf.mxu0  ;;  %v3215_v36 = vpop.f32.mrf.mxu1 }
 0x425   : > { %v3201_v56 = vadd.f32 %v3200_v42, %v3177_v57  ;;  %v3240_v5 = vmul.f32 %v3234_v38, %v3227_v11 }
 0x427   : > { %v3238_v3 = vmul.f32 %v3232_v58, %v3201_v56  ;;  %v3245_v60 = vrot.slane %v3240_v5, 4 }
 0x429   : > { %v3247_v8 = vsel %vm3246_vm12, %v3238_v3, %v3244_v30 }
 0x42a   : > { %v3248_v62 = vsel %vm2107_vm2, %v3247_v8, %v3245_v60  ;;  %v3228_v52 = vpop.f32.mrf.mxu2 }
 0x42b   : > { %3250 = vst [vmem:[%s703_s21 + $0x2] sm:$0x3f] %v3248_v62 }
 0x42c   : > { %v3202_v37 = vpop.f32.mrf.mxu0 }
 0x42d PF: > { %s22_s25 = sadd.s32 1, %s3867_s25   ;;  %s5134_s22 = sld [smem:[#allocation2_spill]] }
 0x42e   : > { %p19_p13 = scmp.ge.s32.totalorder %s22_s25, 18   ;;  %s5135_s29 = sld [smem:[#allocation3_spill]] }
 0x42f   : > { %s5136_s24 = sld [smem:[#allocation4_spill]]  ;;  %s5137_s21 = smov %s3859_s23 }
 0x430   :  { %21 = sbr.rel (!%p19_p13) target bundleno = 4 (0x4), region = 117 }
 0x434   : > { %s5138_s23 = smov %s5135_s29 }

</bundles_post_ra>
